<compile_context>
chip_gen: v6e
topology: v6e:2x2x1
jax: 0.10.0
libtpu: 0.0.40
codegen_flags: <defaults>
</compile_context>

<pallas_src>
import jax
import jax.numpy as jnp
from jax.experimental import pallas as pl
from jax.experimental.pallas import tpu as pltpu


def ffwd_kernel(x_ref, w1_ref, b1_ref, w2_ref, b2_ref, o_ref):
    # x_ref:  (TM, C)  bf16 tile of flattened tokens
    # w1_ref: (C, H)   bf16 first linear weight (in, out), resident
    # b1_ref: (1, H)   f32 first bias
    # w2_ref: (H, C)   bf16 second linear weight (in, out), resident
    # b2_ref: (1, C)   f32 second bias
    # o_ref:  (TM, C)  f32 output tile
    h = jnp.dot(x_ref[...], w1_ref[...], preferred_element_type=jnp.float32)
    h = jnp.maximum(h + b1_ref[...], 0.0)                    # bias + ReLU in f32
    o = jnp.dot(h.astype(w2_ref.dtype), w2_ref[...],         # bf16 into 2nd MXU pass
                preferred_element_type=jnp.float32)
    o_ref[...] = (o + b2_ref[...]).astype(o_ref.dtype)       # Dropout (eval) = identity


def _round_up(a, b):
    return (a + b - 1) // b * b


def feed_forward(x, w1, b1, w2, b2, *, tile_m=128):
    """x: (B, T, C) float32.  Returns (B, T, C) float32."""
    B, T, C = x.shape
    M = B * T
    H = w1.shape[1]
    assert w1.shape == (C, H) and w2.shape == (H, C)
    assert C % 128 == 0 and H % 128 == 0, "C and 4C must be lane-aligned (x128)"

    # Keep the row tile a multiple of 16 (bf16 sublane packing) and no larger
    # than the (padded) problem.
    tile_m = max(16, min(_round_up(tile_m, 16), _round_up(M, 16)))
    M_pad = _round_up(M, tile_m)

    x2 = x.reshape(M, C)
    if M_pad != M:
        x2 = jnp.pad(x2, ((0, M_pad - M), (0, 0)))

    # bf16 MXU inputs, f32 accumulation inside the kernel.
    x2 = x2.astype(jnp.bfloat16)
    w1b = w1.astype(jnp.bfloat16)
    w2b = w2.astype(jnp.bfloat16)
    b1_2 = b1.reshape(1, H).astype(jnp.float32)
    b2_2 = b2.reshape(1, C).astype(jnp.float32)

    grid = (M_pad // tile_m,)

    # Explicit VMEM budget (double-buffered inputs/outputs + h intermediate).
    w_bytes = 2 * (C * H + H * C) * 2              # bf16 weights, x2 buffers
    x_bytes = 2 * tile_m * C * 2                   # bf16 x tile, x2 buffers
    o_bytes = 2 * tile_m * C * 4                   # f32 out tile, x2 buffers
    b_bytes = 2 * (H + C) * 4                      # f32 biases, x2 buffers
    h_bytes = tile_m * H * (4 + 2)                 # f32 h + bf16 copy
    budget = w_bytes + x_bytes + o_bytes + b_bytes + h_bytes
    vmem_limit = min(max(int(budget * 1.5) + (4 << 20), 32 << 20), 100 << 20)

    cost = pl.CostEstimate(
        flops=2 * 2 * M_pad * C * H,               # two matmuls
        transcendentals=0,
        bytes_accessed=(M_pad * C * 2              # x (bf16)
                        + (C * H + H * C) * 2      # weights (bf16)
                        + (H + C) * 4              # biases (f32)
                        + M_pad * C * 4),          # out (f32)
    )

    out = pl.pallas_call(
        ffwd_kernel,
        out_shape=jax.ShapeDtypeStruct((M_pad, C), jnp.float32),
        grid_spec=pltpu.PrefetchScalarGridSpec(
            num_scalar_prefetch=0,
            grid=grid,
            in_specs=[
                pl.BlockSpec((tile_m, C), lambda i: (i, 0)),   # x tile
                pl.BlockSpec((C, H), lambda i: (0, 0)),        # W1 (resident)
                pl.BlockSpec((1, H), lambda i: (0, 0)),        # b1
                pl.BlockSpec((H, C), lambda i: (0, 0)),        # W2 (resident)
                pl.BlockSpec((1, C), lambda i: (0, 0)),        # b2
            ],
            out_specs=pl.BlockSpec((tile_m, C), lambda i: (i, 0)),
        ),
        compiler_params=pltpu.CompilerParams(
            dimension_semantics=("parallel",),
            vmem_limit_bytes=vmem_limit,
        ),
        cost_estimate=cost,
    )(x2, w1b, b1_2, w2b, b2_2)

    if M_pad != M:
        out = out[:M]
    return out.reshape(B, T, C)


def ref_feed_forward_bf16(x, w1, b1, w2, b2):
    """Reference with the same bf16 MXU input precision as the kernel."""
    B, T, C = x.shape
    xb = x.reshape(-1, C).astype(jnp.bfloat16)
    h = jnp.dot(xb, w1.astype(jnp.bfloat16),
                preferred_element_type=jnp.float32) + b1
    h = jnp.maximum(h, 0.0).astype(jnp.bfloat16)
    o = jnp.dot(h, w2.astype(jnp.bfloat16),
                preferred_element_type=jnp.float32) + b2
    return o.reshape(B, T, C).astype(x.dtype)


if __name__ == "__main__":
    # Shapes consistent with the module: n_embd = 384, hidden = 4*384 = 1536.
    B, T, C = 2, 128, 384
    H = 4 * C

    key = jax.random.PRNGKey(0)
    kx, k1, k2, k3, k4 = jax.random.split(key, 5)

    x = jax.random.normal(kx, (B, T, C), dtype=jnp.float32)
    # Deterministic parameter init (uniform, like PyTorch's default Linear init scale).
    bound1 = 1.0 / (C ** 0.5)
    bound2 = 1.0 / (H ** 0.5)
    w1 = jax.random.uniform(k1, (C, H), jnp.float32, -bound1, bound1)
    b1 = jax.random.uniform(k2, (H,), jnp.float32, -bound1, bound1)
    w2 = jax.random.uniform(k3, (H, C), jnp.float32, -bound2, bound2)
    b2 = jax.random.uniform(k4, (C,), jnp.float32, -bound2, bound2)

    out = feed_forward(x, w1, b1, w2, b2, tile_m=128)   # grid = (2,)
    out = jax.block_until_ready(out)

    ref = ref_feed_forward_bf16(x, w1, b1, w2, b2)
    assert out.shape == (B, T, C)
    assert jnp.allclose(out, ref, atol=2e-2, rtol=2e-2), "mismatch vs reference"

    print("KERNEL_OK")
</pallas_src>

<mosaic_0001>
module attributes {stable_mosaic.version = 11 : i64} {
  func.func @ffwd_kernel(%arg0: i32, %arg1: memref<128x384xbf16, #tpu.memory_space<vmem>>, %arg2: memref<384x1536xbf16, #tpu.memory_space<vmem>>, %arg3: memref<1x1536xf32, #tpu.memory_space<vmem>>, %arg4: memref<1536x384xbf16, #tpu.memory_space<vmem>>, %arg5: memref<1x384xf32, #tpu.memory_space<vmem>>, %arg6: memref<128x384xf32, #tpu.memory_space<vmem>>) attributes {dimension_semantics = [#tpu.dimension_semantics<parallel>], iteration_bounds = array<i64: 2>, scalar_prefetch = 0 : i64, scratch_operands = 0 : i64, tpu.core_type = #tpu.core_type<tc>, window_params = [{transform_indices = @transform_0, window_bounds = array<i64: 128, 384>}, {pipeline_mode = #tpu.pipeline_mode<synchronous>, transform_indices = @transform_1, window_bounds = array<i64: 384, 1536>}, {pipeline_mode = #tpu.pipeline_mode<synchronous>, transform_indices = @transform_2, window_bounds = array<i64: 1, 1536>}, {pipeline_mode = #tpu.pipeline_mode<synchronous>, transform_indices = @transform_3, window_bounds = array<i64: 1536, 384>}, {pipeline_mode = #tpu.pipeline_mode<synchronous>, transform_indices = @transform_4, window_bounds = array<i64: 1, 384>}, {transform_indices = @transform_5, window_bounds = array<i64: 128, 384>}]} {
    %c0 = arith.constant 0 : index
    %c0_0 = arith.constant 0 : index
    %0 = vector.load %arg1[%c0, %c0_0] : memref<128x384xbf16, #tpu.memory_space<vmem>>, vector<128x384xbf16>
    %c0_1 = arith.constant 0 : index
    %c0_2 = arith.constant 0 : index
    %1 = vector.load %arg2[%c0_1, %c0_2] : memref<384x1536xbf16, #tpu.memory_space<vmem>>, vector<384x1536xbf16>
    %cst = arith.constant dense<0.000000e+00> : vector<128x1536xf32>
    %2 = tpu.matmul %0, %1, %cst {dimension_numbers = #tpu.dot_dimension_numbers<[1], [0], [0], [1], [0, 0, 1, 1], [], []>} : vector<128x384xbf16>, vector<384x1536xbf16>, vector<128x1536xf32> -> vector<128x1536xf32>
    %c0_3 = arith.constant 0 : index
    %c0_4 = arith.constant 0 : index
    %3 = vector.load %arg3[%c0_3, %c0_4] : memref<1x1536xf32, #tpu.memory_space<vmem>>, vector<1x1536xf32>
    %4 = vector.broadcast %3 : vector<1x1536xf32> to vector<128x1536xf32>
    %5 = arith.addf %2, %4 : vector<128x1536xf32>
    %cst_5 = arith.constant 0.000000e+00 : f32
    %6 = vector.broadcast %cst_5 : f32 to vector<128x1536xf32>
    %7 = arith.maximumf %5, %6 : vector<128x1536xf32>
    %8 = arith.truncf %7 : vector<128x1536xf32> to vector<128x1536xbf16>
    %c0_6 = arith.constant 0 : index
    %c0_7 = arith.constant 0 : index
    %9 = vector.load %arg4[%c0_6, %c0_7] : memref<1536x384xbf16, #tpu.memory_space<vmem>>, vector<1536x384xbf16>
    %cst_8 = arith.constant dense<0.000000e+00> : vector<128x384xf32>
    %10 = tpu.matmul %8, %9, %cst_8 {dimension_numbers = #tpu.dot_dimension_numbers<[1], [0], [0], [1], [0, 0, 1, 1], [], []>} : vector<128x1536xbf16>, vector<1536x384xbf16>, vector<128x384xf32> -> vector<128x384xf32>
    %c0_9 = arith.constant 0 : index
    %c0_10 = arith.constant 0 : index
    %11 = vector.load %arg5[%c0_9, %c0_10] : memref<1x384xf32, #tpu.memory_space<vmem>>, vector<1x384xf32>
    %12 = vector.broadcast %11 : vector<1x384xf32> to vector<128x384xf32>
    %13 = arith.addf %10, %12 : vector<128x384xf32>
    %c0_11 = arith.constant 0 : index
    %c0_12 = arith.constant 0 : index
    %14 = vector.load %arg6[%c0_11, %c0_12] : memref<128x384xf32, #tpu.memory_space<vmem>>, vector<128x384xf32>
    tpu.vector_store %arg6[%c0_11, %c0_12], %13 {strides = array<i32>} : memref<128x384xf32, #tpu.memory_space<vmem>>, vector<128x384xf32>,
    return
  }
  func.func @transform_0(%arg0: i32) -> (i32, i32) {
    %c0_i32 = arith.constant 0 : i32
    %c0_i32_0 = arith.constant 0 : i32
    return %arg0, %c0_i32 : i32, i32
  }
  func.func @transform_1(%arg0: i32) -> (i32, i32) {
    %c0_i32 = arith.constant 0 : i32
    %c0_i32_0 = arith.constant 0 : i32
    %c0_i32_1 = arith.constant 0 : i32
    return %c0_i32, %c0_i32_0 : i32, i32
  }
  func.func @transform_2(%arg0: i32) -> (i32, i32) {
    %c0_i32 = arith.constant 0 : i32
    %c0_i32_0 = arith.constant 0 : i32
    %c0_i32_1 = arith.constant 0 : i32
    return %c0_i32, %c0_i32_0 : i32, i32
  }
  func.func @transform_3(%arg0: i32) -> (i32, i32) {
    %c0_i32 = arith.constant 0 : i32
    %c0_i32_0 = arith.constant 0 : i32
    %c0_i32_1 = arith.constant 0 : i32
    return %c0_i32, %c0_i32_0 : i32, i32
  }
  func.func @transform_4(%arg0: i32) -> (i32, i32) {
    %c0_i32 = arith.constant 0 : i32
    %c0_i32_0 = arith.constant 0 : i32
    %c0_i32_1 = arith.constant 0 : i32
    return %c0_i32, %c0_i32_0 : i32, i32
  }
  func.func @transform_5(%arg0: i32) -> (i32, i32) {
    %c0_i32 = arith.constant 0 : i32
    %c0_i32_0 = arith.constant 0 : i32
    return %arg0, %c0_i32 : i32, i32
  }
}

</mosaic_0001>

<bundles_post_ra>
// kernel: tpu_custom_call.1
= control target key start
LH: loop header
LB: loop body
LE: loop exit
PB: predicated region body
PF: predicated region fallthrough
CT: control target
= control target key end

     0   :  { %10 = vsyncpa [#allocation3], 0  ;;  %s12261_s0 = inlined_call_operand.hbm [shape: bf16[256,384], index: 0, kind: input, shape index: {}]   ;;  %s12262_s1 = inlined_call_operand.hbm [shape: bf16[384,1536], index: 1, kind: input, shape index: {}]   ;;  %s12263_s2 = inlined_call_operand.hbm [shape: f32[1,1536], index: 2, kind: input, shape index: {}]   ;;  %s12264_s3 = inlined_call_operand.hbm [shape: bf16[1536,384], index: 3, kind: input, shape index: {}]   ;;  %s12265_s4 = inlined_call_operand.hbm [shape: f32[1,384], index: 4, kind: input, shape index: {}]   ;;  %s12266_s5 = inlined_call_operand.hbm [shape: f32[256,384], index: 5, kind: output, shape index: {}]  }
   0x1   :  { %12 = vsyncpa [#allocation3 + $0x1], 0 }
   0x2   :  { %13 = vsyncpa [#allocation6], 0 }
   0x3   :  { %14 = vsyncpa [#allocation9], 0 }
   0x4   :  { %15 = vsyncpa [#allocation4], 0 }
   0x5   :  { %17 = vsyncpa [#allocation4 + $0x1], 0  ;;  %s9534_s18 = smov 0   ;;  %s9536_s19 = smov 0  }
   0x6   :  { %s9538_s20 = smov 0   ;;  %s9540_s21 = smov 0  }
   0x7 LB: > { %s9555_s22 = sadd.s32 4294967295, %s9489_s21   ;;  %s7268_s23 = sadd.s32 4294967294, %s9489_s21   ;;  %s9489_s21 = sphi %s9540_s21, %s12691_s21   ;;  %s9485_s20 = sphi %s9538_s20, %s12690_s20   ;;  %s9481_s19 = sphi %s9536_s19, %s12689_s19   ;;  %s9477_s18 = sphi %s9534_s18, %s12688_s18  }
   0x8   : > { %p43_p0 = scmp.ne.s32.totalorder %s9481_s19, %s9477_s18  ;;  %p12267_p1 = scmp.eq.s32.totalorder %s9555_s22, 0 }
   0x9   : > { %p157_p3 = scmp.eq.s32.totalorder %s7268_s23, 1  ;;  %p7269_p5 = scmp.ge.s32.totalorder %s9489_s21, 1 }
   0xa   : > { %p9564_p4 = por %p12267_p1, %p43_p0  ;;  %p164_p7 = scmp.lt.s32.totalorder %s9489_s21, 3 }
   0xb   : > { %p9569_p6 = por %p157_p3, %p43_p0  ;;  %s9491_s27 = smov [#allocation5]  }
   0xc   : > { %s12364_s24 = scalar_select %p9564_p4, 1, 0 }
   0xd   : > { %s12365_s25 = scalar_select %p9569_p6, 1, 0 }
   0xe   : > { %p9574_p8 = pnand %p7269_p5, %p164_p7  ;;  %s176_s28 = sshll.u32 %s9491_s27, 4  ;;  %s177_s28 = int_to_ptr.vmem [resolvable:$true] %s176_s28 }
   0xf   : > { %s9492_s30 = smov [#allocation8]   ;;  %s9296_s7 = scalar_lea.vmem %s177_s28, 36864 }
  0x10   : > { %s12366_s26 = scalar_select %p9574_p8, 1, 0 }
  0x11   : > { %p8313_p9 = pneg %p9574_p8  ;;  %s200_s6 = sshll.u32 %s9492_s30, 4  ;;  %s201_s6 = int_to_ptr.vmem [resolvable:$true] %s200_s6 }
  0x12   : > { %p9297_p13 = scmp.ne.s32.totalorder %s177_s28, %s9296_s7  ;;  %p9304_p5 = scmp.lt.s32.totalorder %s177_s28, %s177_s28 }
  0x13   : > { %p9583_p11 = pnand %p8313_p9, %p12267_p1  ;;  %p9305_p7 = scmp.lt.s32.totalorder %s9296_s7, %s9296_s7 }
  0x15   : > { %p9287_p12 = pneg %p9583_p11  ;;  %p9306_p10 = por %p9305_p7, %p9304_p5 }
  0x17   : > { %p9299_p0 = pnand %p9297_p13, %p9287_p12 }
  0x19   : > { %p9300_p3 = pneg %p9299_p0 }
  0x1b   : > { %p9307_p9 = pnand %p9306_p10, %p9300_p3 }
  0x1d   : > { %9310 = shalt.err (!%p9307_p9)
}
  0x1e   : > { %s9493_s8 = smov 768   ;;  %s9494_s9 = smov 48  }
  0x1f   : > { %8316 = dma.hbm_to_vmem [thread:$0]  (!%p9583_p11), %s12262_s1, 36864, %s177_s28, [#allocation6], %s9493_s8, %s9493_s8, %s9494_s9  }
  0x20   : > { %s9322_s12 = scalar_lea.vmem %s201_s6, 36864  ;;  %p9330_p2 = scmp.lt.s32.totalorder %s201_s6, %s201_s6 }
  0x21   : > { %p9323_p1 = scmp.ne.s32.totalorder %s201_s6, %s9322_s12  ;;  %p9331_p6 = scmp.lt.s32.totalorder %s9322_s12, %s9322_s12 }
  0x23   : > { %p9325_p13 = pnand %p9323_p1, %p9287_p12  ;;  %p9332_p5 = por %p9331_p6, %p9330_p2 }
  0x25   : > { %p9326_p0 = pneg %p9325_p13 }
  0x27   : > { %p9333_p10 = pnand %p9332_p5, %p9326_p0 }
  0x29   : > { %9336 = shalt.err (!%p9333_p10)
}
  0x2a   : > { %s12269_s13 = smov 192   ;;  %s9496_s14 = smov 12  }
  0x2b   : > { %8322 = dma.hbm_to_vmem [thread:$0]  (!%p9583_p11), %s12264_s3, 36864, %s201_s6, [#allocation9], %s12269_s13, %s12269_s13, %s9496_s14  }
  0x2c   : > { %s9497_s17 = smov [#allocation7]   ;;  %s9498_s27 = smov [#allocation10]  }
  0x2d   : > { %s190_s23 = sshll.u32 %s9497_s17, 4  ;;  %s214_s28 = sshll.u32 %s9498_s27, 4  ;;  %s191_s23 = int_to_ptr.vmem [resolvable:$true] %s190_s23  ;;  %s215_s28 = int_to_ptr.vmem [resolvable:$true] %s214_s28 }
  0x2e   : > { %s9348_s30 = scalar_lea.vmem %s191_s23, 192  ;;  %p9356_p3 = scmp.lt.s32.totalorder %s191_s23, %s191_s23 }
  0x2f   : > { %p9349_p1 = scmp.ne.s32.totalorder %s191_s23, %s9348_s30  ;;  %p9357_p7 = scmp.lt.s32.totalorder %s9348_s30, %s9348_s30 }
  0x31   : > { %p9351_p2 = pnand %p9349_p1, %p9287_p12  ;;  %p9358_p9 = por %p9357_p7, %p9356_p3 }
  0x33   : > { %p9352_p6 = pneg %p9351_p2 }
  0x35   : > { %p9359_p13 = pnand %p9358_p9, %p9352_p6 }
  0x37   : > { %9362 = shalt.err (!%p9359_p13)
}
  0x38   : > { %8319 = dma.hbm_to_vmem [thread:$0]  (!%p9583_p11), %s12263_s2, 192, %s191_s23, [#allocation6]  }
  0x39   : > { %s9374_s8 = scalar_lea.vmem %s215_s28, 48  ;;  %s9381_s9 = scalar_lea.vmem %s215_s28, 64 }
  0x3a   : > { %p9375_p0 = scmp.ne.s32.totalorder %s215_s28, %s9374_s8  ;;  %p9382_p1 = scmp.lt.s32.totalorder %s215_s28, %s215_s28 }
  0x3b   : > { %p9383_p2 = scmp.lt.s32.totalorder %s9381_s9, %s9374_s8 }
  0x3c   : > { %p9377_p5 = pnand %p9375_p0, %p9287_p12 }
  0x3d   : > { %p9384_p4 = por %p9383_p2, %p9382_p1 }
  0x3e   : > { %p9378_p10 = pneg %p9377_p5 }
  0x40   : > { %p9385_p3 = pnand %p9384_p4, %p9378_p10 }
  0x42   : > { %9388 = shalt.err (!%p9385_p3)
}
  0x43   : > { %8325 = dma.hbm_to_vmem [thread:$0]  (!%p9583_p11), %s12265_s4, 48, %s215_s28, [#allocation9]  }
  0x44   : > { %s9625_s12 = sadd.s32 1, %s9489_s21   ;;  %s30_s29 = sadd.s32 1, %s9485_s20 }
  0x45   : > { %s27_s15 = ssub.s32 %s9489_s21, %s9625_s12  ;;  %p37_p12 = scmp.ne.s32.totalorder %s9485_s20, %s9481_s19 }
  0x46   : > { %p28_p4 = scmp.eq.s32.totalorder %s27_s15, 0  ;;  %p38_p6 = scmp.eq.s32.totalorder %s9489_s21, 0 }
  0x47   : > { %p12368_p9 = scmp.eq.s32.totalorder %s9555_s22, 1  ;;  %p8338_p0 = scmp.lt.s32.totalorder %s9489_s21, 2 }
  0x48   : > { %s9634_s16 = scalar_select %p28_p4, %s9485_s20, %s30_s29  }
  0x49   : > { %p39_p7 = por %p38_p6, %p37_p12  ;;  %p9638_p13 = por %p12368_p9, %p37_p12 }
  0x4a   : > { %s225_s23 = sand.u32 1, %s9485_s20   ;;  %s8289_s28 = smul.u32 3072, %s9489_s21 }
  0x4b   : > { %s12369_s17 = scalar_select %p9638_p13, 1, 0 }
  0x4c   : > { %s8288_s27 = smul.u32 192, %s225_s23  ;;  %p9645_p11 = pnand %p8338_p0, %p39_p7 }
  0x4d   : > { %s9652_s8 = scalar_lea.hbm %s12261_s0, %s8289_s28  ;;  %s9656_s11 = scalar_lea.sflag [#allocation3], %s225_s23 }
  0x4e   : > { %s229_s9 = scalar_lea.vmem [#allocation2], %s8288_s27  ;;  %s9389_s15 = scalar_lea.hbm %s9652_s8, 3072 }
  0x4f   : > { %s237_s10 = sshll.u32 %s229_s9, 4  ;;  %p9390_p5 = scmp.ne.s32.totalorder %s9652_s8, %s9389_s15  ;;  %s9654_s10 = int_to_ptr.vmem [resolvable:$true] %s237_s10 }
  0x50   : > { %p9391_p10 = pneg %p9645_p11  ;;  %s9394_s28 = scalar_lea.hbm %s12261_s0, 6144 }
  0x51   : > { %p9395_p3 = scmp.lt.s32.totalorder %s9652_s8, %s12261_s0  ;;  %p9396_p4 = scmp.lt.s32.totalorder %s9394_s28, %s9389_s15 }
  0x52   : > { %p9392_p1 = pnand %p9391_p10, %p9390_p5 }
  0x53   : > { %p9397_p12 = por %p9396_p4, %p9395_p3 }
  0x54   : > { %p9393_p2 = pneg %p9392_p1 }
  0x56   : > { %p9398_p6 = pnand %p9397_p12, %p9393_p2 }
  0x58   : > { %9401 = shalt.err (!%p9398_p6)
}
  0x59   : > { %s9402_s23 = scalar_lea.vmem %s9654_s10, 3072  ;;  %s9499_s27 = smov [#allocation2]  }
  0x5a   : > { %p9403_p7 = scmp.ne.s32.totalorder %s9654_s10, %s9402_s23  ;;  %s9407_s9 = sshll.u32 %s9499_s27, 4  ;;  %s9408_s9 = int_to_ptr.vmem [resolvable:$false] %s9407_s9 }
  0x5b   : > { %s9409_s29 = scalar_lea.vmem %s9408_s9, 6144  ;;  %p9410_p5 = scmp.lt.s32.totalorder %s9654_s10, %s9408_s9 }
  0x5c   : > { %p9405_p9 = pnand %p9403_p7, %p9391_p10  ;;  %p9411_p1 = scmp.lt.s32.totalorder %s9409_s29, %s9402_s23 }
  0x5e   : > { %p9406_p0 = pneg %p9405_p9  ;;  %p9412_p13 = por %p9411_p1, %p9410_p5 }
  0x60   : > { %p9413_p8 = pnand %p9412_p13, %p9406_p0 }
  0x62   : > { %9416 = shalt.err (!%p9413_p8)
}
  0x63   : > { %s12371_s13 = smov 192   ;;  %p12372_p10 = scmp.ne.s32.totalorder %s12366_s26, 0 }
  0x64   : > { %8329 = dma.hbm_to_vmem [thread:$0]  (!%p9645_p11), %s9652_s8, 3072, %s9654_s10, %s9656_s11, %s12371_s13, %s12371_s13, %s9496_s14  }
  0x65   : > { %249 = sbr.rel (%p12372_p10) target bundleno = 1158 (0x486), region = 40 }
  0x6a   : > { %s9683_s15 = sand.u32 1, %s9481_s19   ;;  %p12373_p8 = scmp.ne.s32.totalorder %s12364_s24, 0 }
  0x6b   : > { %s8290_s6 = smul.u32 192, %s9683_s15  ;;  %s252_s28 = scalar_lea.sflag [#allocation3], %s9683_s15 }
  0x6d   : > { %s9687_s7 = scalar_lea.vmem [#allocation2], %s8290_s6 }
  0x6e   : > { %9460 = dma.done.wait (%p12373_p8), %s252_s28, 3072  }
  0x6f   : > { %9462 = vsyncadd (%p12373_p8), %s252_s28, 4294964224  ;;  %p12374_p13 = scmp.eq.s32.totalorder %s9555_s22, 0 }
  0x71   : > { %9464 = dma.done.wait (%p12374_p13), [#allocation6], 37056   ;;  %p12375_p11 = pmov %p12374_p13 }
  0x73   : > { %9466 = vsyncadd (%p12375_p11), [#allocation6], 4294930240  ;;  %p12376_p2 = pmov %p12375_p11 }
  0x75   : > { %9468 = dma.done.wait (%p12376_p2), [#allocation9], 36912   ;;  %p12377_p3 = pmov %p12376_p2 }
  0x76   : > { %v12272_v0 = vmov 0   ;;  %v8387_v1 = vld [vmem:[#allocation5 + $0x2a4] ss:$48 sps:$4 sm:$0xff]   ;;  %v8391_v3 = vld [vmem:[#allocation5 + $0x2a0] ss:$48 sps:$4 sm:$0xff]   ;;  %s8291_s24 = smul.u32 384, %s9683_s15 }
  0x77   : > { %9470 = vsyncadd (%p12377_p3), [#allocation9], 4294930384  ;;  %2398 = vmatprep.mubr.bf16.mxu1 %v12272_v0  ;;  %v8389_v2 = vld [vmem:[#allocation5 + $0x8a4] ss:$48 sps:$4 sm:$0xff]   ;;  %2253 = vmatprep.subr.bf16.mxu0 %v8387_v1  ;;  %v8392_v4 = vld [vmem:[#allocation5 + $0x8a0] ss:$48 sps:$4 sm:$0xff]  }
  0x78   : > { %2366 = vmatprep.subr.bf16.mxu1 %v8389_v2  ;;  %v8393_v5 = vld [vmem:[#allocation5 + $0x244] ss:$48 sps:$4 sm:$0xff]   ;;  %2254 = vmatpush1.bf16.msra.mxu0 %v8391_v3  ;;  %v8397_v7 = vld [vmem:[#allocation5 + $0x240] ss:$48 sps:$4 sm:$0xff]   ;;  %v8440_v34 = vld [vmem:[#allocation5 + $0x2ac] ss:$48 sps:$4 sm:$0xff]  }
  0x79   : > { %2367 = vmatpush1.bf16.msra.mxu1 %v8392_v4  ;;  %v8395_v6 = vld [vmem:[#allocation5 + $0x844] ss:$48 sps:$4 sm:$0xff]   ;;  %2255 = vmatprep.subr.bf16.mxu0 %v8393_v5  ;;  %v8398_v8 = vld [vmem:[#allocation5 + $0x840] ss:$48 sps:$4 sm:$0xff]   ;;  %v8438_v36 = vld [vmem:[#allocation5 + $0x2a8] ss:$48 sps:$4 sm:$0xff]  }
  0x7a   : > { %2368 = vmatprep.subr.bf16.mxu1 %v8395_v6  ;;  %v8399_v9 = vld [vmem:[#allocation5 + $0x1e4] ss:$48 sps:$4 sm:$0xff]   ;;  %v8403_v11 = vld [vmem:[#allocation5 + $0x1e0] ss:$48 sps:$4 sm:$0xff]   ;;  %v8446_v39 = vld [vmem:[#allocation5 + $0x24c] ss:$48 sps:$4 sm:$0xff]  }
  0x7b   : > { %v8401_v10 = vld [vmem:[#allocation5 + $0x7e4] ss:$48 sps:$4 sm:$0xff]   ;;  %v8404_v12 = vld [vmem:[#allocation5 + $0x7e0] ss:$48 sps:$4 sm:$0xff]   ;;  %v8444_v40 = vld [vmem:[#allocation5 + $0x248] ss:$48 sps:$4 sm:$0xff]  }
  0x7c   : > { %2256 = vmatpush1.bf16.msra.mxu0 %v8397_v7  ;;  %v8405_v13 = vld [vmem:[#allocation5 + $0x184] ss:$48 sps:$4 sm:$0xff]   ;;  %v8409_v15 = vld [vmem:[#allocation5 + $0x180] ss:$48 sps:$4 sm:$0xff]   ;;  %v8453_v43 = vld [vmem:[#allocation5 + $0x1ec] ss:$48 sps:$4 sm:$0xff]  }
  0x7d   : > { %2369 = vmatpush1.bf16.msra.mxu1 %v8398_v8  ;;  %2257 = vmatprep.subr.bf16.mxu0 %v8399_v9  ;;  %v8407_v14 = vld [vmem:[#allocation5 + $0x784] ss:$48 sps:$4 sm:$0xff]   ;;  %v8410_v16 = vld [vmem:[#allocation5 + $0x780] ss:$48 sps:$4 sm:$0xff]   ;;  %v8451_v45 = vld [vmem:[#allocation5 + $0x1e8] ss:$48 sps:$4 sm:$0xff]  }
  0x7e   : > { %2370 = vmatprep.subr.bf16.mxu1 %v8401_v10  ;;  %v8411_v17 = vld [vmem:[#allocation5 + $0x124] ss:$48 sps:$4 sm:$0xff]   ;;  %v8415_v19 = vld [vmem:[#allocation5 + $0x120] ss:$48 sps:$4 sm:$0xff]   ;;  %v8459_v48 = vld [vmem:[#allocation5 + $0x18c] ss:$48 sps:$4 sm:$0xff]  }
  0x7f   : > { %v8413_v18 = vld [vmem:[#allocation5 + $0x724] ss:$48 sps:$4 sm:$0xff]   ;;  %v8416_v20 = vld [vmem:[#allocation5 + $0x720] ss:$48 sps:$4 sm:$0xff]   ;;  %v8457_v49 = vld [vmem:[#allocation5 + $0x188] ss:$48 sps:$4 sm:$0xff]  }
  0x80   : > { %2258 = vmatpush1.bf16.msra.mxu0 %v8403_v11  ;;  %v8417_v21 = vld [vmem:[#allocation5 + $0xc4] ss:$48 sps:$4 sm:$0xff]   ;;  %v8421_v23 = vld [vmem:[#allocation5 + $0xc0] ss:$48 sps:$4 sm:$0xff]   ;;  %v8466_v52 = vld [vmem:[#allocation5 + $0x12c] ss:$48 sps:$4 sm:$0xff]  }
  0x81   : > { %2371 = vmatpush1.bf16.msra.mxu1 %v8404_v12  ;;  %2259 = vmatprep.subr.bf16.mxu0 %v8405_v13  ;;  %v8419_v22 = vld [vmem:[#allocation5 + $0x6c4] ss:$48 sps:$4 sm:$0xff]   ;;  %v8422_v24 = vld [vmem:[#allocation5 + $0x6c0] ss:$48 sps:$4 sm:$0xff]   ;;  %v8464_v54 = vld [vmem:[#allocation5 + $0x128] ss:$48 sps:$4 sm:$0xff]  }
  0x82   : > { %2372 = vmatprep.subr.bf16.mxu1 %v8407_v14  ;;  %v8423_v25 = vld [vmem:[#allocation5 + $0x64] ss:$48 sps:$4 sm:$0xff]   ;;  %v8427_v27 = vld [vmem:[#allocation5 + $0x60] ss:$48 sps:$4 sm:$0xff]   ;;  %v8472_v58 = vld [vmem:[#allocation5 + $0xcc] ss:$48 sps:$4 sm:$0xff]  }
  0x83   : > { %v8425_v26 = vld [vmem:[#allocation5 + $0x664] ss:$48 sps:$4 sm:$0xff]   ;;  %v8428_v28 = vld [vmem:[#allocation5 + $0x660] ss:$48 sps:$4 sm:$0xff]   ;;  %v8470_v59 = vld [vmem:[#allocation5 + $0xc8] ss:$48 sps:$4 sm:$0xff]  }
  0x84   : > { %2260 = vmatpush1.bf16.msra.mxu0 %v8409_v15  ;;  %v8429_v29 = vld [vmem:[#allocation5 + $0x4] ss:$48 sps:$4 sm:$0xff]   ;;  %v8433_v31 = vld [vmem:[#allocation5] ss:$48 sps:$4 sm:$0xff]   ;;  %v8479_v62 = vld [vmem:[#allocation5 + $0x6c] ss:$48 sps:$4 sm:$0xff]  }
  0x85   : > { %2373 = vmatpush1.bf16.msra.mxu1 %v8410_v16  ;;  %2261 = vmatprep.subr.bf16.mxu0 %v8411_v17  ;;  %v8431_v30 = vld [vmem:[#allocation5 + $0x604] ss:$48 sps:$4 sm:$0xff]   ;;  %v8434_v32 = vld [vmem:[#allocation5 + $0x600] ss:$48 sps:$4 sm:$0xff]   ;;  %v8477_v1 = vld [vmem:[#allocation5 + $0x68] ss:$48 sps:$4 sm:$0xff]  }
  0x86   : > { %2374 = vmatprep.subr.bf16.mxu1 %v8413_v18  ;;  %v8435_v33 = vld [vmem:[#allocation5 + $0x5a4] ss:$48 sps:$4 sm:$0xff]   ;;  %v8441_v37 = vld [vmem:[#allocation5 + $0x5a0] ss:$48 sps:$4 sm:$0xff]   ;;  %v8485_v4 = vld [vmem:[#allocation5 + $0xc] ss:$48 sps:$4 sm:$0xff]  }
  0x87   : > { %v9703_v35 = vld [vmem:[%s9687_s7 + $0x8] ss:$12 sps:$4 sm:$0xff]   ;;  %v8447_v41 = vld [vmem:[#allocation5 + $0x540] ss:$48 sps:$4 sm:$0xff]   ;;  %v9713_v53 = vld [vmem:[%s9687_s7 + $0x38] ss:$12 sps:$4 sm:$0xff]  }
  0x88   : > { %2262 = vmatpush1.bf16.msra.mxu0 %v8415_v19  ;;  %v8442_v38 = vld [vmem:[#allocation5 + $0x544] ss:$48 sps:$4 sm:$0xff]   ;;  %v9708_v44 = vld [vmem:[%s9687_s7 + $0x20] ss:$12 sps:$4 sm:$0xff]   ;;  %v9722_v63 = vld [vmem:[%s9687_s7 + $0x50] ss:$12 sps:$4 sm:$0xff]  }
  0x89   : > { %2375 = vmatpush1.bf16.msra.mxu1 %v8416_v20  ;;  %2263 = vmatprep.subr.bf16.mxu0 %v8417_v21  ;;  %v8448_v42 = vld [vmem:[#allocation5 + $0x4e4] ss:$48 sps:$4 sm:$0xff]   ;;  %v8454_v46 = vld [vmem:[#allocation5 + $0x4e0] ss:$48 sps:$4 sm:$0xff]   ;;  %v8483_v5 = vld [vmem:[#allocation5 + $0x8] ss:$48 sps:$4 sm:$0xff]  }
  0x8a   : > { %2376 = vmatprep.subr.bf16.mxu1 %v8419_v22  ;;  %v8455_v47 = vld [vmem:[#allocation5 + $0x484] ss:$48 sps:$4 sm:$0xff]   ;;  %v8460_v50 = vld [vmem:[#allocation5 + $0x480] ss:$48 sps:$4 sm:$0xff]   ;;  %v8493_v7 = vld [vmem:[#allocation5 + $0x5ac] ss:$48 sps:$4 sm:$0xff]  }
  0x8b   : > { %v8461_v51 = vld [vmem:[#allocation5 + $0x424] ss:$48 sps:$4 sm:$0xff]   ;;  %v8467_v55 = vld [vmem:[#allocation5 + $0x420] ss:$48 sps:$4 sm:$0xff]   ;;  %v8496_v8 = vld [vmem:[#allocation5 + $0x8ac] ss:$48 sps:$4 sm:$0xff]  }
  0x8c   : > { %2264 = vmatpush1.bf16.msra.mxu0 %v8421_v23  ;;  %v9716_v56 = vld [vmem:[%s9687_s7 + $0x4] ss:$12 sps:$4 sm:$0xff]   ;;  %v9727_v9 = vld [vmem:[%s9687_s7] ss:$12 sps:$4 sm:$0xff]   ;;  %v9730_v10 = vld [vmem:[%s9687_s7 + $0x68] ss:$12 sps:$4 sm:$0xff]  }
  0x8d   : > { %2377 = vmatpush1.bf16.msra.mxu1 %v8422_v24  ;;  %2265 = vmatprep.subr.bf16.mxu0 %v8423_v25  ;;  %v8468_v57 = vld [vmem:[#allocation5 + $0x3c4] ss:$48 sps:$4 sm:$0xff]   ;;  %v8473_v60 = vld [vmem:[#allocation5 + $0x3c0] ss:$48 sps:$4 sm:$0xff]   ;;  %v8491_v11 = vld [vmem:[#allocation5 + $0x5a8] ss:$48 sps:$4 sm:$0xff]  }
  0x8e   : > { %2378 = vmatprep.subr.bf16.mxu1 %v8425_v26  ;;  %2285 = vmatprep.mubr.bf16.mxu0 %v9716_v56  ;;  %v8474_v61 = vld [vmem:[#allocation5 + $0x364] ss:$48 sps:$4 sm:$0xff]   ;;  %v8480_v2 = vld [vmem:[#allocation5 + $0x360] ss:$48 sps:$4 sm:$0xff]   ;;  %v8494_v12 = vld [vmem:[#allocation5 + $0x8a8] ss:$48 sps:$4 sm:$0xff]  }
  0x8f   : > { %v8481_v3 = vld [vmem:[#allocation5 + $0x304] ss:$48 sps:$4 sm:$0xff]   ;;  %v8486_v6 = vld [vmem:[#allocation5 + $0x300] ss:$48 sps:$4 sm:$0xff]   ;;  %v8499_v13 = vld [vmem:[#allocation5 + $0x54c] ss:$48 sps:$4 sm:$0xff]  }
  0x90   : > { %2266 = vmatpush1.bf16.msra.mxu0 %v8427_v27  ;;  %v9733_v14 = vld [vmem:[%s9687_s7 + $0x1c] ss:$12 sps:$4 sm:$0xff]   ;;  %v9740_v20 = vld [vmem:[%s9687_s7 + $0x18] ss:$12 sps:$4 sm:$0xff]   ;;  %v9743_v21 = vld [vmem:[%s9687_s7 + $0x80] ss:$12 sps:$4 sm:$0xff]  }
  0x91   : > { %2379 = vmatpush1.bf16.msra.mxu1 %v8428_v28  ;;  %2267 = vmatprep.subr.bf16.mxu0 %v8429_v29  ;;  %v8497_v15 = vld [vmem:[#allocation5 + $0x548] ss:$48 sps:$4 sm:$0xff]   ;;  %v8509_v16 = vld [vmem:[#allocation5 + $0x84c] ss:$48 sps:$4 sm:$0xff]   ;;  %v9746_v23 = vld [vmem:[%s9687_s7 + $0x34] ss:$12 sps:$4 sm:$0xff]  }
  0x92   : > { %2380 = vmatprep.subr.bf16.mxu1 %v8431_v30  ;;  %v8506_v17 = vld [vmem:[#allocation5 + $0x4ec] ss:$48 sps:$4 sm:$0xff]   ;;  %v8507_v18 = vld [vmem:[#allocation5 + $0x848] ss:$48 sps:$4 sm:$0xff]   ;;  %s11788_s26 = scalar_lea.vmem [#allocation11], %s8291_s24  ;;  %s8292_s14 = smul.u32 6144, %s9555_s22 }
  0x93   : > { %v8522_v19 = vld [vmem:[#allocation5 + $0x7ec] ss:$48 sps:$4 sm:$0xff]   ;;  %v8504_v22 = vld [vmem:[#allocation5 + $0x4e8] ss:$48 sps:$4 sm:$0xff]   ;;  %s7157_s30 = sshll.u32 %s11788_s26, 4  ;;  %s7143_s22 = scalar_lea.sflag [#allocation4], %s9683_s15  ;;  %s12217_s30 = int_to_ptr.vmem [resolvable:$true] %s7157_s30 }
  0x94   : > { %2268 = vmatpush1.bf16.msra.mxu0 %v8433_v31  ;;  %v8512_v24 = vld [vmem:[#allocation5 + $0x48c] ss:$48 sps:$4 sm:$0xff]   ;;  %v8520_v25 = vld [vmem:[#allocation5 + $0x7e8] ss:$48 sps:$4 sm:$0xff]   ;;  %s12215_s11 = scalar_lea.hbm %s12266_s5, %s8292_s14  ;;  %s9417_s23 = scalar_lea.vmem %s12217_s30, 6144 }
  0x95   : > { %2381 = vmatpush1.bf16.msra.mxu1 %v8434_v32  ;;  %2269 = vmatprep.subr.bf16.mxu0 %v8435_v33  ;;  %v8535_v26 = vld [vmem:[#allocation5 + $0x78c] ss:$48 sps:$4 sm:$0xff]   ;;  %v8510_v27 = vld [vmem:[#allocation5 + $0x488] ss:$48 sps:$4 sm:$0xff]   ;;  %p9418_p4 = scmp.ne.s32.totalorder %s12217_s30, %s9417_s23  ;;  %p12685_p12 = scmp.ne.s32.totalorder %s12369_s17, 0 }
  0x96   : > { %2479 = vmatprep.subr.bf16.mxu1 %v8440_v34  ;;  %v8519_v28 = vld [vmem:[#allocation5 + $0x42c] ss:$48 sps:$4 sm:$0xff]   ;;  %v8533_v30 = vld [vmem:[#allocation5 + $0x788] ss:$48 sps:$4 sm:$0xff]   ;;  %s9501_s27 = smov [#allocation11]  }
  0x97   : > { %v9753_v29 = vld [vmem:[%s9687_s7 + $0x30] ss:$12 sps:$4 sm:$0xff]   ;;  %v9756_v31 = vld [vmem:[%s9687_s7 + $0x98] ss:$12 sps:$4 sm:$0xff]   ;;  %p9419_p6 = pnand %p9418_p4, %p12685_p12  ;;  %s9421_s9 = sshll.u32 %s9501_s27, 4  ;;  %s9422_s9 = int_to_ptr.vmem [resolvable:$false] %s9421_s9 }
  0x98   : > { %2399 = vmatmul.mubr.bf16.vlgmr.msra.gmra.mxu1 %v9703_v35  ;;  %2270 = vmatpush2.bf16.msra.mxu0 %v8441_v37  ;;  %v8517_v32 = vld [vmem:[#allocation5 + $0x428] ss:$48 sps:$4 sm:$0xff]   ;;  %v8525_v34 = vld [vmem:[#allocation5 + $0x3cc] ss:$48 sps:$4 sm:$0xff]   ;;  %s9423_s29 = scalar_lea.vmem %s9422_s9, 12288  ;;  %p9424_p9 = scmp.lt.s32.totalorder %s12217_s30, %s9422_s9 }
  0x99   : > { %2480 = vmatpush1.bf16.msra.mxu1 %v8438_v36  ;;  %2271 = vmatprep.subr.bf16.mxu0 %v8442_v38  ;;  %v9759_v33 = vld [vmem:[%s9687_s7 + $0x4c] ss:$12 sps:$4 sm:$0xff]   ;;  %p9420_p7 = pneg %p9419_p6  ;;  %p9425_p0 = scmp.lt.s32.totalorder %s9423_s29, %s9417_s23 }
  0x9a   : > { %2481 = vmatprep.subr.bf16.mxu1 %v8446_v39  ;;  %2408 = vmatprep.mubr.bf16.mxu1 %v12272_v0  ;;  %v8544_v36 = vld [vmem:[#allocation5 + $0x72c] ss:$48 sps:$4 sm:$0xff]   ;;  %v8523_v37 = vld [vmem:[#allocation5 + $0x3c8] ss:$48 sps:$4 sm:$0xff]  }
  0x9b   : > { %v8542_v38 = vld [vmem:[#allocation5 + $0x728] ss:$48 sps:$4 sm:$0xff]   ;;  %v8556_v39 = vld [vmem:[#allocation5 + $0x6cc] ss:$48 sps:$4 sm:$0xff]   ;;  %p9426_p5 = por %p9425_p0, %p9424_p9 }
  0x9c   : > { %2272 = vmatpush2.bf16.msra.mxu0 %v8447_v41  ;;  %v9766_v41 = vld [vmem:[%s9687_s7 + $0x48] ss:$12 sps:$4 sm:$0xff]  }
  0x9d   : > { %2482 = vmatpush1.bf16.msra.mxu1 %v8444_v40  ;;  %2273 = vmatprep.subr.bf16.mxu0 %v8448_v42  ;;  %v8532_v40 = vld [vmem:[#allocation5 + $0x36c] ss:$48 sps:$4 sm:$0xff]   ;;  %p9427_p1 = pnand %p9426_p5, %p9420_p7 }
  0x9e   : > { %2483 = vmatprep.subr.bf16.mxu1 %v8453_v43  ;;  %v9769_v42 = vld [vmem:[%s9687_s7 + $0xb0] ss:$12 sps:$4 sm:$0xff]   ;;  %v8530_v43 = vld [vmem:[#allocation5 + $0x368] ss:$48 sps:$4 sm:$0xff]  }
  0xa0   : > { %2409 = vmatmul.mubr.bf16.gmra.mxu1 %v9708_v44  ;;  %2274 = vmatpush2.bf16.msra.mxu0 %v8454_v46  ;;  %v8538_v46 = vld [vmem:[#allocation5 + $0x30c] ss:$48 sps:$4 sm:$0xff]  }
  0xa1   : > { %2484 = vmatpush1.bf16.msra.mxu1 %v8451_v45  ;;  %2275 = vmatprep.subr.bf16.mxu0 %v8455_v47  ;;  %v9772_v45 = vld [vmem:[%s9687_s7 + $0x64] ss:$12 sps:$4 sm:$0xff]   ;;  %v8554_v47 = vld [vmem:[#allocation5 + $0x6c8] ss:$48 sps:$4 sm:$0xff]  }
  0xa2   : > { %2485 = vmatprep.subr.bf16.mxu1 %v8459_v48  ;;  %2418 = vmatprep.mubr.bf16.mxu1 %v12272_v0  ;;  %v8568_v48 = vld [vmem:[#allocation5 + $0x66c] ss:$48 sps:$4 sm:$0xff]  }
  0xa4   : > { %2276 = vmatpush2.bf16.msra.mxu0 %v8460_v50  ;;  %v8547_v50 = vld [vmem:[#allocation5 + $0x2b4] ss:$48 sps:$4 sm:$0xff]  }
  0xa5   : > { %2486 = vmatpush1.bf16.msra.mxu1 %v8457_v49  ;;  %2277 = vmatprep.subr.bf16.mxu0 %v8461_v51  ;;  %v8536_v49 = vld [vmem:[#allocation5 + $0x308] ss:$48 sps:$4 sm:$0xff]  }
  0xa6   : > { %2487 = vmatprep.subr.bf16.mxu1 %v8466_v52  ;;  %v8566_v51 = vld [vmem:[#allocation5 + $0x668] ss:$48 sps:$4 sm:$0xff]   ;;  %v9779_v52 = vld [vmem:[%s9687_s7 + $0x60] ss:$12 sps:$4 sm:$0xff]  }
  0xa8   : > { %2419 = vmatmul.mubr.bf16.gmra.mxu1 %v9713_v53  ;;  %2278 = vmatpush2.bf16.msra.mxu0 %v8467_v55  ;;  %v9782_v55 = vld [vmem:[%s9687_s7 + $0x7c] ss:$12 sps:$4 sm:$0xff]  }
  0xa9   : > { %2488 = vmatpush1.bf16.msra.mxu1 %v8464_v54  ;;  %2279 = vmatprep.subr.bf16.mxu0 %v8468_v57  ;;  %v8545_v54 = vld [vmem:[#allocation5 + $0x2b0] ss:$48 sps:$4 sm:$0xff]   ;;  %v8550_v57 = vld [vmem:[#allocation5 + $0x254] ss:$48 sps:$4 sm:$0xff]  }
  0xaa   : > { %2489 = vmatprep.subr.bf16.mxu1 %v8472_v58  ;;  %2428 = vmatprep.mubr.bf16.mxu1 %v12272_v0  ;;  %v8580_v58 = vld [vmem:[#allocation5 + $0x60c] ss:$48 sps:$4 sm:$0xff]  }
  0xac   : > { %2280 = vmatpush2.bf16.msra.mxu0 %v8473_v60  ;;  %v8578_v60 = vld [vmem:[#allocation5 + $0x608] ss:$48 sps:$4 sm:$0xff]  }
  0xad   : > { %2490 = vmatpush1.bf16.msra.mxu1 %v8470_v59  ;;  %2281 = vmatprep.subr.bf16.mxu0 %v8474_v61  ;;  %v8548_v59 = vld [vmem:[#allocation5 + $0x250] ss:$48 sps:$4 sm:$0xff]   ;;  %v8592_v61 = vld [vmem:[#allocation5 + $0x8b4] ss:$48 sps:$4 sm:$0xff]  }
  0xae   : > { %2491 = vmatprep.subr.bf16.mxu1 %v8479_v62  ;;  %v8559_v62 = vld [vmem:[#allocation5 + $0x1f4] ss:$48 sps:$4 sm:$0xff]  }
  0xb0   : > { %2429 = vmatmul.mubr.bf16.gmra.mxu1 %v9722_v63  ;;  %2282 = vmatpush2.bf16.msra.mxu0 %v8480_v2  ;;  %v8557_v2 = vld [vmem:[#allocation5 + $0x1f0] ss:$48 sps:$4 sm:$0xff]  }
  0xb1   : > { %2492 = vmatpush1.bf16.msra.mxu1 %v8477_v1  ;;  %2283 = vmatprep.subr.bf16.mxu0 %v8481_v3  ;;  %v9789_v1 = vld [vmem:[%s9687_s7 + $0x78] ss:$12 sps:$4 sm:$0xff]   ;;  %v9792_v3 = vld [vmem:[%s9687_s7 + $0x94] ss:$12 sps:$4 sm:$0xff]  }
  0xb2   : > { %2493 = vmatprep.subr.bf16.mxu1 %v8485_v4  ;;  %2438 = vmatprep.mubr.bf16.mxu1 %v12272_v0  ;;  %v8562_v4 = vld [vmem:[#allocation5 + $0x194] ss:$48 sps:$4 sm:$0xff]  }
  0xb4   : > { %2284 = vmatpush2.bf16.msra.mxu0 %v8486_v6  ;;  %v8571_v6 = vld [vmem:[#allocation5 + $0x134] ss:$48 sps:$4 sm:$0xff]  }
  0xb5   : > { %2494 = vmatpush1.bf16.msra.mxu1 %v8483_v5  ;;  %2592 = vmatprep.subr.bf16.mxu0 %v8496_v8  ;;  %v8560_v5 = vld [vmem:[#allocation5 + $0x190] ss:$48 sps:$4 sm:$0xff]  }
  0xb6   : > { %2495 = vmatprep.subr.bf16.mxu1 %v8493_v7  ;;  %v9799_v7 = vld [vmem:[%s9687_s7 + $0x90] ss:$12 sps:$4 sm:$0xff]  }
  0xb7   : > { %2286 = vmatmul.mubr.bf16.vlgmr.msra.gmra.mxu0 %v9727_v9  ;;  %v8569_v8 = vld [vmem:[#allocation5 + $0x130] ss:$48 sps:$4 sm:$0xff]  }
  0xb8   : > { %2439 = vmatmul.mubr.bf16.gmra.mxu1 %v9730_v10  ;;  %2593 = vmatpush1.bf16.msra.mxu0 %v8494_v12  ;;  %v8574_v12 = vld [vmem:[#allocation5 + $0xd4] ss:$48 sps:$4 sm:$0xff]  }
  0xb9   : > { %2496 = vmatpush2.bf16.msra.mxu1 %v8491_v11  ;;  %2295 = vmatprep.mubr.bf16.mxu0 %v9733_v14  ;;  %v9802_v11 = vld [vmem:[%s9687_s7 + $0xac] ss:$12 sps:$4 sm:$0xff]  }
  0xba   : > { %2497 = vmatprep.subr.bf16.mxu1 %v8499_v13  ;;  %2448 = vmatprep.mubr.bf16.mxu1 %v12272_v0  ;;  %v8572_v13 = vld [vmem:[#allocation5 + $0xd0] ss:$48 sps:$4 sm:$0xff]  }
  0xbb   : > { %2594 = vmatprep.subr.bf16.mxu0 %v8509_v16  ;;  %v9809_v16 = vld [vmem:[%s9687_s7 + $0xa8] ss:$12 sps:$4 sm:$0xff]  }
  0xbc   : > { %2595 = vmatpush1.bf16.msra.mxu0 %v8507_v18  ;;  %v8586_v18 = vld [vmem:[#allocation5 + $0x14] ss:$48 sps:$4 sm:$0xff]  }
  0xbd   : > { %2498 = vmatpush2.bf16.msra.mxu1 %v8497_v15  ;;  %2596 = vmatprep.subr.bf16.mxu0 %v8522_v19  ;;  %v8583_v15 = vld [vmem:[#allocation5 + $0x74] ss:$48 sps:$4 sm:$0xff]   ;;  %v8584_v19 = vld [vmem:[#allocation5 + $0x10] ss:$48 sps:$4 sm:$0xff]  }
  0xbe   : > { %2499 = vmatprep.subr.bf16.mxu1 %v8506_v17  ;;  %v8581_v17 = vld [vmem:[#allocation5 + $0x70] ss:$48 sps:$4 sm:$0xff]  }
  0xbf   : > { %2296 = vmatmul.mubr.bf16.gmra.mxu0 %v9740_v20 }
  0xc0   : > { %2449 = vmatmul.mubr.bf16.gmra.mxu1 %v9743_v21  ;;  %2305 = vmatprep.mubr.bf16.mxu0 %v9746_v23 }
  0xc1   : > { %2500 = vmatpush2.bf16.msra.mxu1 %v8504_v22  ;;  %2458 = vmatprep.mubr.bf16.mxu1 %v12272_v0  ;;  %v8589_v22 = vld [vmem:[#allocation5 + $0x5b4] ss:$48 sps:$4 sm:$0xff]  }
  0xc2   : > { %2501 = vmatprep.subr.bf16.mxu1 %v8512_v24  ;;  %2597 = vmatpush1.bf16.msra.mxu0 %v8520_v25  ;;  %v8587_v24 = vld [vmem:[#allocation5 + $0x5b0] ss:$48 sps:$4 sm:$0xff]  }
  0xc3   : > { %2598 = vmatprep.subr.bf16.mxu0 %v8535_v26  ;;  %v8590_v25 = vld [vmem:[#allocation5 + $0x8b0] ss:$48 sps:$4 sm:$0xff]   ;;  %v8595_v26 = vld [vmem:[#allocation5 + $0x554] ss:$48 sps:$4 sm:$0xff]  }
  0xc5   : > { %2502 = vmatpush2.bf16.msra.mxu1 %v8510_v27  ;;  %v8601_v27 = vld [vmem:[#allocation5 + $0x854] ss:$48 sps:$4 sm:$0xff]  }
  0xc6   : > { %2503 = vmatprep.subr.bf16.mxu1 %v8519_v28  ;;  %2599 = vmatpush1.bf16.msra.mxu0 %v8533_v30  ;;  %v8593_v28 = vld [vmem:[#allocation5 + $0x550] ss:$48 sps:$4 sm:$0xff]   ;;  %v8598_v30 = vld [vmem:[#allocation5 + $0x4f4] ss:$48 sps:$4 sm:$0xff]  }
  0xc7   : > { %2306 = vmatmul.mubr.bf16.gmra.mxu0 %v9753_v29  ;;  %2600 = vmatprep.subr.bf16.mxu0 %v8544_v36  ;;  %v8596_v36 = vld [vmem:[#allocation5 + $0x4f0] ss:$48 sps:$4 sm:$0xff]  }
  0xc8   : > { %2459 = vmatmul.mubr.bf16.gmra.mxu1 %v9756_v31  ;;  %2315 = vmatprep.mubr.bf16.mxu0 %v9759_v33 }
  0xc9   : > { %2504 = vmatpush2.bf16.msra.mxu1 %v8517_v32  ;;  %2468 = vmatprep.mubr.bf16.mxu1 %v12272_v0  ;;  %v8599_v32 = vld [vmem:[#allocation5 + $0x850] ss:$48 sps:$4 sm:$0xff]  }
  0xca   : > { %2505 = vmatprep.subr.bf16.mxu1 %v8525_v34  ;;  %2601 = vmatpush1.bf16.msra.mxu0 %v8542_v38  ;;  %v8610_v34 = vld [vmem:[#allocation5 + $0x7f4] ss:$48 sps:$4 sm:$0xff]   ;;  %v8608_v38 = vld [vmem:[#allocation5 + $0x7f0] ss:$48 sps:$4 sm:$0xff]  }
  0xcb   : > { %2602 = vmatprep.subr.bf16.mxu0 %v8556_v39  ;;  %v8602_v39 = vld [vmem:[#allocation5 + $0x490] ss:$48 sps:$4 sm:$0xff]  }
  0xcd   : > { %2506 = vmatpush2.bf16.msra.mxu1 %v8523_v37  ;;  %v8604_v37 = vld [vmem:[#allocation5 + $0x494] ss:$48 sps:$4 sm:$0xff]  }
  0xce   : > { %2507 = vmatprep.subr.bf16.mxu1 %v8532_v40  ;;  %2603 = vmatpush1.bf16.msra.mxu0 %v8554_v47  ;;  %v8607_v40 = vld [vmem:[#allocation5 + $0x434] ss:$48 sps:$4 sm:$0xff]  }
  0xcf   : > { %2316 = vmatmul.mubr.bf16.gmra.mxu0 %v9766_v41  ;;  %2604 = vmatprep.subr.bf16.mxu0 %v8568_v48  ;;  %v8613_v47 = vld [vmem:[#allocation5 + $0x3d4] ss:$48 sps:$4 sm:$0xff]  }
  0xd0   : > { %2469 = vmatmul.mubr.bf16.gmra.mxu1 %v9769_v42  ;;  %2325 = vmatprep.mubr.bf16.mxu0 %v9772_v45  ;;  %v8625_v48 = vld [vmem:[#allocation5 + $0x734] ss:$48 sps:$4 sm:$0xff]  }
  0xd1   : > { %2508 = vmatpush2.bf16.msra.mxu1 %v8530_v43  ;;  %2511 = vmatprep.mubr.bf16.mxu1 %v9716_v56  ;;  %v8617_v43 = vld [vmem:[#allocation5 + $0x790] ss:$48 sps:$4 sm:$0xff]  }
  0xd2   : > { %2509 = vmatprep.subr.bf16.mxu1 %v8538_v46  ;;  %2605 = vmatpush1.bf16.msra.mxu0 %v8566_v51  ;;  %v8605_v46 = vld [vmem:[#allocation5 + $0x430] ss:$48 sps:$4 sm:$0xff]   ;;  %v8616_v51 = vld [vmem:[#allocation5 + $0x374] ss:$48 sps:$4 sm:$0xff]  }
  0xd3   : > { %2606 = vmatprep.subr.bf16.mxu0 %v8580_v58  ;;  %v8632_v58 = vld [vmem:[#allocation5 + $0x6d0] ss:$48 sps:$4 sm:$0xff]  }
  0xd5   : > { %2510 = vmatpush2.bf16.msra.mxu1 %v8536_v49  ;;  %v8623_v49 = vld [vmem:[#allocation5 + $0x730] ss:$48 sps:$4 sm:$0xff]  }
  0xd6   : > { %2705 = vmatprep.subr.bf16.mxu1 %v8547_v50  ;;  %2607 = vmatpush1.bf16.msra.mxu0 %v8578_v60  ;;  %v8634_v50 = vld [vmem:[#allocation5 + $0x6d4] ss:$48 sps:$4 sm:$0xff]   ;;  %v8628_v60 = vld [vmem:[#allocation5 + $0x2bc] ss:$48 sps:$4 sm:$0xff]  }
  0xd7   : > { %2326 = vmatmul.mubr.bf16.gmra.mxu0 %v9779_v52  ;;  %2818 = vmatprep.subr.bf16.mxu0 %v8592_v61  ;;  %v8641_v61 = vld [vmem:[#allocation5 + $0x670] ss:$48 sps:$4 sm:$0xff]  }
  0xd8   : > { %2512 = vmatmul.mubr.bf16.vlgmr.msra.gmra.mxu1 %v9727_v9  ;;  %2335 = vmatprep.mubr.bf16.mxu0 %v9782_v55 }
  0xd9   : > { %2706 = vmatpush1.bf16.msra.mxu1 %v8545_v54  ;;  %2521 = vmatprep.mubr.bf16.mxu1 %v9733_v14  ;;  %v8614_v54 = vld [vmem:[#allocation5 + $0x370] ss:$48 sps:$4 sm:$0xff]  }
  0xda   : > { %2707 = vmatprep.subr.bf16.mxu1 %v8550_v57  ;;  %v8622_v57 = vld [vmem:[#allocation5 + $0x314] ss:$48 sps:$4 sm:$0xff]  }
  0xdd   : > { %2708 = vmatpush1.bf16.msra.mxu1 %v8548_v59  ;;  %v8620_v59 = vld [vmem:[#allocation5 + $0x310] ss:$48 sps:$4 sm:$0xff]  }
  0xde   : > { %2709 = vmatprep.subr.bf16.mxu1 %v8559_v62  ;;  %v8626_v62 = vld [vmem:[#allocation5 + $0x2b8] ss:$48 sps:$4 sm:$0xff]  }
  0xdf   : > { %2336 = vmatmul.mubr.bf16.gmra.mxu0 %v9789_v1 }
  0xe0   : > { %2522 = vmatmul.mubr.bf16.gmra.mxu1 %v9740_v20  ;;  %2345 = vmatprep.mubr.bf16.mxu0 %v9792_v3 }
  0xe1   : > { %2710 = vmatpush1.bf16.msra.mxu1 %v8557_v2  ;;  %2531 = vmatprep.mubr.bf16.mxu1 %v9746_v23  ;;  %v8631_v2 = vld [vmem:[#allocation5 + $0x25c] ss:$48 sps:$4 sm:$0xff]  }
  0xe2   : > { %2711 = vmatprep.subr.bf16.mxu1 %v8562_v4  ;;  %v8629_v4 = vld [vmem:[#allocation5 + $0x258] ss:$48 sps:$4 sm:$0xff]  }
  0xe5   : > { %2712 = vmatpush1.bf16.msra.mxu1 %v8560_v5  ;;  %v8652_v5 = vld [vmem:[#allocation5 + $0x614] ss:$48 sps:$4 sm:$0xff]  }
  0xe6   : > { %2713 = vmatprep.subr.bf16.mxu1 %v8571_v6  ;;  %v8637_v6 = vld [vmem:[#allocation5 + $0x1fc] ss:$48 sps:$4 sm:$0xff]  }
  0xe7   : > { %2346 = vmatmul.mubr.bf16.gmra.mxu0 %v9799_v7 }
  0xe8   : > { %2532 = vmatmul.mubr.bf16.gmra.mxu1 %v9753_v29  ;;  %2355 = vmatprep.mubr.bf16.mxu0 %v9802_v11 }
  0xe9   : > { %2714 = vmatpush1.bf16.msra.mxu1 %v8569_v8  ;;  %2541 = vmatprep.mubr.bf16.mxu1 %v9759_v33  ;;  %v8635_v8 = vld [vmem:[#allocation5 + $0x1f8] ss:$48 sps:$4 sm:$0xff]  }
  0xea   : > { %2715 = vmatprep.subr.bf16.mxu1 %v8574_v12  ;;  %v8640_v12 = vld [vmem:[#allocation5 + $0x19c] ss:$48 sps:$4 sm:$0xff]  }
  0xed   : > { %2716 = vmatpush1.bf16.msra.mxu1 %v8572_v13  ;;  %v8649_v13 = vld [vmem:[#allocation5 + $0xdc] ss:$48 sps:$4 sm:$0xff]  }
  0xee   : > { %2717 = vmatprep.subr.bf16.mxu1 %v8583_v15  ;;  %v8653_v15 = vld [vmem:[#allocation5 + $0x78] ss:$48 sps:$4 sm:$0xff]  }
  0xef   : > { %2356 = vmatmul.mubr.bf16.gmra.mxu0 %v9809_v16 }
  0xf0   : > { %2542 = vmatmul.mubr.bf16.gmra.mxu1 %v9766_v41  ;;  %2624 = vmatprep.mubr.bf16.mxu0 %v12272_v0 }
  0xf1   : > { %2718 = vmatpush1.bf16.msra.mxu1 %v8581_v17  ;;  %2551 = vmatprep.mubr.bf16.mxu1 %v9772_v45  ;;  %v8659_v17 = vld [vmem:[#allocation5 + $0x5b8] ss:$48 sps:$4 sm:$0xff]  }
  0xf2   : > { %2719 = vmatprep.subr.bf16.mxu1 %v8586_v18  ;;  %v8667_v18 = vld [vmem:[#allocation5 + $0x55c] ss:$48 sps:$4 sm:$0xff]  }
  0xf5   : > { %2720 = vmatpush1.bf16.msra.mxu1 %v8584_v19  ;;  %v8665_v19 = vld [vmem:[#allocation5 + $0x558] ss:$48 sps:$4 sm:$0xff]  }
  0xf6   : > { %2721 = vmatprep.subr.bf16.mxu1 %v8589_v22  ;;  %v8671_v22 = vld [vmem:[#allocation5 + $0x858] ss:$48 sps:$4 sm:$0xff]  }
  0xf7   : > { %2625 = vmatmul.mubr.bf16.vlgmr.msra.gmra.mxu0 %v9703_v35  ;;  %v8619_v35 = vld [vmem:[#allocation5 + $0x794] ss:$48 sps:$4 sm:$0xff]  }
  0xf8   : > { %2552 = vmatmul.mubr.bf16.gmra.mxu1 %v9779_v52  ;;  %2819 = vmatpush1.bf16.msra.mxu0 %v8590_v25  ;;  %v8668_v25 = vld [vmem:[#allocation5 + $0x4f8] ss:$48 sps:$4 sm:$0xff]  }
  0xf9   : > { %2722 = vmatpush2.bf16.msra.mxu1 %v8587_v24  ;;  %2561 = vmatprep.mubr.bf16.mxu1 %v9782_v55  ;;  %v8673_v24 = vld [vmem:[#allocation5 + $0x85c] ss:$48 sps:$4 sm:$0xff]  }
  0xfa   : > { %2723 = vmatprep.subr.bf16.mxu1 %v8595_v26  ;;  %2634 = vmatprep.mubr.bf16.mxu0 %v12272_v0  ;;  %v8676_v26 = vld [vmem:[#allocation5 + $0x49c] ss:$48 sps:$4 sm:$0xff]  }
  0xfb   : > { %2820 = vmatprep.subr.bf16.mxu0 %v8601_v27  ;;  %v8680_v27 = vld [vmem:[#allocation5 + $0x7f8] ss:$48 sps:$4 sm:$0xff]  }
  0xfc   : > { %2821 = vmatpush1.bf16.msra.mxu0 %v8599_v32  ;;  %v8691_v32 = vld [vmem:[#allocation5 + $0x79c] ss:$48 sps:$4 sm:$0xff]  }
  0xfd   : > { %2724 = vmatpush2.bf16.msra.mxu1 %v8593_v28  ;;  %2822 = vmatprep.subr.bf16.mxu0 %v8610_v34  ;;  %v9856_v28 = vld [vmem:[%s9687_s7 + $0x20] ss:$12 sps:$4 sm:$0xff]   ;;  %v8689_v34 = vld [vmem:[#allocation5 + $0x798] ss:$48 sps:$4 sm:$0xff]  }
  0xfe   : > { %2725 = vmatprep.subr.bf16.mxu1 %v8598_v30  ;;  %v8679_v30 = vld [vmem:[#allocation5 + $0x43c] ss:$48 sps:$4 sm:$0xff]  }
  0xff   : > { %2635 = vmatmul.mubr.bf16.gmra.mxu0 %v9708_v44  ;;  %v8611_v44 = vld [vmem:[#allocation5 + $0x3d0] ss:$48 sps:$4 sm:$0xff]  }
 0x100   : > { %2562 = vmatmul.mubr.bf16.gmra.mxu1 %v9789_v1  ;;  %2644 = vmatprep.mubr.bf16.mxu0 %v12272_v0 }
 0x101   : > { %2726 = vmatpush2.bf16.msra.mxu1 %v8596_v36  ;;  %2571 = vmatprep.mubr.bf16.mxu1 %v9792_v3  ;;  %v8685_v36 = vld [vmem:[#allocation5 + $0x3dc] ss:$48 sps:$4 sm:$0xff]  }
 0x102   : > { %2727 = vmatprep.subr.bf16.mxu1 %v8604_v37  ;;  %2823 = vmatpush1.bf16.msra.mxu0 %v8608_v38  ;;  %v8683_v37 = vld [vmem:[#allocation5 + $0x3d8] ss:$48 sps:$4 sm:$0xff]   ;;  %v8697_v38 = vld [vmem:[#allocation5 + $0x73c] ss:$48 sps:$4 sm:$0xff]  }
 0x103   : > { %2824 = vmatprep.subr.bf16.mxu0 %v8619_v35  ;;  %v9863_v35 = vld [vmem:[%s9687_s7 + $0x38] ss:$12 sps:$4 sm:$0xff]  }
 0x105   : > { %2728 = vmatpush2.bf16.msra.mxu1 %v8602_v39  ;;  %v8706_v39 = vld [vmem:[#allocation5 + $0x6dc] ss:$48 sps:$4 sm:$0xff]  }
 0x106   : > { %2729 = vmatprep.subr.bf16.mxu1 %v8607_v40  ;;  %2825 = vmatpush1.bf16.msra.mxu0 %v8617_v43  ;;  %v8686_v40 = vld [vmem:[#allocation5 + $0x378] ss:$48 sps:$4 sm:$0xff]   ;;  %v8694_v43 = vld [vmem:[#allocation5 + $0x31c] ss:$48 sps:$4 sm:$0xff]  }
 0x107   : > { %2645 = vmatmul.mubr.bf16.gmra.mxu0 %v9713_v53  ;;  %2826 = vmatprep.subr.bf16.mxu0 %v8625_v48  ;;  %v8643_v53 = vld [vmem:[#allocation5 + $0x674] ss:$48 sps:$4 sm:$0xff]   ;;  %v8715_v48 = vld [vmem:[#allocation5 + $0x67c] ss:$48 sps:$4 sm:$0xff]  }
 0x108   : > { %2572 = vmatmul.mubr.bf16.gmra.mxu1 %v9799_v7  ;;  %2654 = vmatprep.mubr.bf16.mxu0 %v12272_v0 }
 0x109   : > { %2730 = vmatpush2.bf16.msra.mxu1 %v8605_v46  ;;  %2581 = vmatprep.mubr.bf16.mxu1 %v9802_v11  ;;  %v8704_v46 = vld [vmem:[#allocation5 + $0x6d8] ss:$48 sps:$4 sm:$0xff]  }
 0x10a   : > { %2731 = vmatprep.subr.bf16.mxu1 %v8613_v47  ;;  %2827 = vmatpush1.bf16.msra.mxu0 %v8623_v49  ;;  %v9870_v47 = vld [vmem:[%s9687_s7 + $0x50] ss:$12 sps:$4 sm:$0xff]  }
 0x10b   : > { %2828 = vmatprep.subr.bf16.mxu0 %v8634_v50  ;;  %v8698_v49 = vld [vmem:[#allocation5 + $0x2c0] ss:$48 sps:$4 sm:$0xff]   ;;  %v8713_v50 = vld [vmem:[#allocation5 + $0x678] ss:$48 sps:$4 sm:$0xff]  }
 0x10d   : > { %2732 = vmatpush2.bf16.msra.mxu1 %v8611_v44  ;;  %v9875_v44 = vld [vmem:[%s9687_s7 + $0x4] ss:$12 sps:$4 sm:$0xff]  }
 0x10e   : > { %2733 = vmatprep.subr.bf16.mxu1 %v8616_v51  ;;  %2829 = vmatpush1.bf16.msra.mxu0 %v8632_v58  ;;  %v8722_v51 = vld [vmem:[#allocation5 + $0x618] ss:$48 sps:$4 sm:$0xff]  }
 0x10f   : > { %2655 = vmatmul.mubr.bf16.gmra.mxu0 %v9722_v63  ;;  %2830 = vmatprep.subr.bf16.mxu0 %v8643_v53  ;;  %v8650_v63 = vld [vmem:[#allocation5 + $0x610] ss:$48 sps:$4 sm:$0xff]   ;;  %v9881_v53 = vld [vmem:[%s9687_s7 + $0x68] ss:$12 sps:$4 sm:$0xff]  }
 0x110   : > { %2582 = vmatmul.mubr.bf16.gmra.mxu1 %v9809_v16  ;;  %2664 = vmatprep.mubr.bf16.mxu0 %v12272_v0 }
 0x111   : > { %2734 = vmatpush2.bf16.msra.mxu1 %v8614_v54  ;;  %2737 = vmatprep.mubr.bf16.mxu1 %v9716_v56  ;;  %v8664_v56 = vld [vmem:[#allocation5 + $0x8bc] ss:$48 sps:$4 sm:$0xff]   ;;  %v8701_v54 = vld [vmem:[#allocation5 + $0x260] ss:$48 sps:$4 sm:$0xff]  }
 0x112   : > { %2735 = vmatprep.subr.bf16.mxu1 %v8622_v57  ;;  %2831 = vmatpush1.bf16.msra.mxu0 %v8641_v61  ;;  %v8724_v57 = vld [vmem:[#allocation5 + $0x61c] ss:$48 sps:$4 sm:$0xff]   ;;  %v8736_v61 = vld [vmem:[#allocation5 + $0x8c4] ss:$48 sps:$4 sm:$0xff]  }
 0x113   : > { %2832 = vmatprep.subr.bf16.mxu0 %v8652_v5  ;;  %v8707_v5 = vld [vmem:[#allocation5 + $0x200] ss:$48 sps:$4 sm:$0xff]  }
 0x115   : > { %2736 = vmatpush2.bf16.msra.mxu1 %v8620_v59  ;;  %v9885_v59 = vld [vmem:[%s9687_s7] ss:$12 sps:$4 sm:$0xff]  }
 0x116   : > { %2931 = vmatprep.subr.bf16.mxu1 %v8628_v60  ;;  %2833 = vmatpush1.bf16.msra.mxu0 %v8650_v63  ;;  %v8709_v60 = vld [vmem:[#allocation5 + $0x204] ss:$48 sps:$4 sm:$0xff]  }
 0x117   : > { %2665 = vmatmul.mubr.bf16.gmra.mxu0 %v9730_v10  ;;  %3044 = vmatprep.subr.bf16.mxu0 %v8664_v56  ;;  %v8646_v10 = vld [vmem:[#allocation5 + $0x13c] ss:$48 sps:$4 sm:$0xff]   ;;  %v8712_v63 = vld [vmem:[#allocation5 + $0x1a4] ss:$48 sps:$4 sm:$0xff]  }
 0x118   : > { %2738 = vmatmul.mubr.bf16.vlgmr.msra.gmra.mxu1 %v9727_v9  ;;  %2674 = vmatprep.mubr.bf16.mxu0 %v12272_v0  ;;  %v8638_v9 = vld [vmem:[#allocation5 + $0x198] ss:$48 sps:$4 sm:$0xff]  }
 0x119   : > { %2932 = vmatpush1.bf16.msra.mxu1 %v8626_v62  ;;  %2747 = vmatprep.mubr.bf16.mxu1 %v9733_v14  ;;  %v8644_v14 = vld [vmem:[#allocation5 + $0x138] ss:$48 sps:$4 sm:$0xff]  }
 0x11a   : > { %2933 = vmatprep.subr.bf16.mxu1 %v8631_v2  ;;  %v9892_v2 = vld [vmem:[%s9687_s7 + $0x1c] ss:$12 sps:$4 sm:$0xff]  }
 0x11d   : > { %2934 = vmatpush1.bf16.msra.mxu1 %v8629_v4 }
 0x11e   : > { %2935 = vmatprep.subr.bf16.mxu1 %v8637_v6  ;;  %v8710_v6 = vld [vmem:[#allocation5 + $0x1a0] ss:$48 sps:$4 sm:$0xff]  }
 0x11f   : > { %2675 = vmatmul.mubr.bf16.gmra.mxu0 %v9743_v21  ;;  %v8647_v21 = vld [vmem:[#allocation5 + $0xd8] ss:$48 sps:$4 sm:$0xff]  }
 0x120   : > { %2748 = vmatmul.mubr.bf16.gmra.mxu1 %v9740_v20  ;;  %2684 = vmatprep.mubr.bf16.mxu0 %v12272_v0  ;;  %v8655_v20 = vld [vmem:[#allocation5 + $0x7c] ss:$48 sps:$4 sm:$0xff]  }
 0x121   : > { %2936 = vmatpush1.bf16.msra.mxu1 %v8635_v8  ;;  %2757 = vmatprep.mubr.bf16.mxu1 %v9746_v23  ;;  %v8658_v23 = vld [vmem:[#allocation5 + $0x1c] ss:$48 sps:$4 sm:$0xff]  }
 0x122   : > { %2937 = vmatprep.subr.bf16.mxu1 %v8640_v12  ;;  %v9902_v12 = vld [vmem:[%s9687_s7 + $0x80] ss:$12 sps:$4 sm:$0xff]  }
 0x125   : > { %2938 = vmatpush1.bf16.msra.mxu1 %v8638_v9  ;;  %v9906_v9 = vld [vmem:[%s9687_s7 + $0x18] ss:$12 sps:$4 sm:$0xff]  }
 0x126   : > { %2939 = vmatprep.subr.bf16.mxu1 %v8646_v10  ;;  %v8718_v10 = vld [vmem:[#allocation5 + $0x144] ss:$48 sps:$4 sm:$0xff]  }
 0x127   : > { %2685 = vmatmul.mubr.bf16.gmra.mxu0 %v9756_v31  ;;  %v8656_v31 = vld [vmem:[#allocation5 + $0x18] ss:$48 sps:$4 sm:$0xff]  }
 0x128   : > { %2758 = vmatmul.mubr.bf16.gmra.mxu1 %v9753_v29  ;;  %2694 = vmatprep.mubr.bf16.mxu0 %v12272_v0  ;;  %v8661_v29 = vld [vmem:[#allocation5 + $0x5bc] ss:$48 sps:$4 sm:$0xff]  }
 0x129   : > { %2940 = vmatpush1.bf16.msra.mxu1 %v8644_v14  ;;  %2767 = vmatprep.mubr.bf16.mxu1 %v9759_v33  ;;  %v8662_v33 = vld [vmem:[#allocation5 + $0x8b8] ss:$48 sps:$4 sm:$0xff]  }
 0x12a   : > { %2941 = vmatprep.subr.bf16.mxu1 %v8649_v13  ;;  %v9913_v13 = vld [vmem:[%s9687_s7 + $0x34] ss:$12 sps:$4 sm:$0xff]  }
 0x12d   : > { %2942 = vmatpush1.bf16.msra.mxu1 %v8647_v21  ;;  %v8716_v21 = vld [vmem:[#allocation5 + $0x140] ss:$48 sps:$4 sm:$0xff]  }
 0x12e   : > { %2943 = vmatprep.subr.bf16.mxu1 %v8655_v20 }
 0x12f   : > { %2695 = vmatmul.mubr.bf16.gmra.mxu0 %v9769_v42  ;;  %v8670_v42 = vld [vmem:[#allocation5 + $0x4fc] ss:$48 sps:$4 sm:$0xff]  }
 0x130   : > { %2768 = vmatmul.mubr.bf16.gmra.mxu1 %v9766_v41  ;;  %2850 = vmatprep.mubr.bf16.mxu0 %v12272_v0  ;;  %v9849_v41 = vld [vmem:[%s9687_s7 + $0x8] ss:$12 sps:$4 sm:$0xff]  }
 0x131   : > { %2944 = vmatpush1.bf16.msra.mxu1 %v8653_v15  ;;  %2777 = vmatprep.mubr.bf16.mxu1 %v9772_v45  ;;  %v8682_v45 = vld [vmem:[#allocation5 + $0x7fc] ss:$48 sps:$4 sm:$0xff]   ;;  %v8721_v15 = vld [vmem:[#allocation5 + $0xe4] ss:$48 sps:$4 sm:$0xff]  }
 0x132   : > { %2945 = vmatprep.subr.bf16.mxu1 %v8658_v23 }
 0x135   : > { %2946 = vmatpush1.bf16.msra.mxu1 %v8656_v31  ;;  %v8719_v31 = vld [vmem:[#allocation5 + $0xe0] ss:$48 sps:$4 sm:$0xff]  }
 0x136   : > { %2947 = vmatprep.subr.bf16.mxu1 %v8661_v29 }
 0x137   : > { %2851 = vmatmul.mubr.bf16.vlgmr.msra.gmra.mxu0 %v9849_v41 }
 0x138   : > { %2778 = vmatmul.mubr.bf16.gmra.mxu1 %v9779_v52  ;;  %3045 = vmatpush1.bf16.msra.mxu0 %v8662_v33  ;;  %v8674_v52 = vld [vmem:[#allocation5 + $0x498] ss:$48 sps:$4 sm:$0xff]   ;;  %v9927_v33 = vld [vmem:[%s9687_s7 + $0x30] ss:$12 sps:$4 sm:$0xff]  }
 0x139   : > { %2948 = vmatpush2.bf16.msra.mxu1 %v8659_v17  ;;  %2787 = vmatprep.mubr.bf16.mxu1 %v9782_v55  ;;  %v8677_v55 = vld [vmem:[#allocation5 + $0x438] ss:$48 sps:$4 sm:$0xff]  }
 0x13a   : > { %2949 = vmatprep.subr.bf16.mxu1 %v8667_v18  ;;  %2860 = vmatprep.mubr.bf16.mxu0 %v12272_v0  ;;  %v9923_v17 = vld [vmem:[%s9687_s7 + $0x98] ss:$12 sps:$4 sm:$0xff]  }
 0x13b   : > { %3046 = vmatprep.subr.bf16.mxu0 %v8673_v24  ;;  %v8727_v18 = vld [vmem:[#allocation5 + $0x84] ss:$48 sps:$4 sm:$0xff]   ;;  %v9934_v24 = vld [vmem:[%s9687_s7 + $0x4c] ss:$12 sps:$4 sm:$0xff]  }
 0x13c   : > { %3047 = vmatpush1.bf16.msra.mxu0 %v8671_v22 }
 0x13d   : > { %2950 = vmatpush2.bf16.msra.mxu1 %v8665_v19  ;;  %3048 = vmatprep.subr.bf16.mxu0 %v8682_v45  ;;  %v625_v19 = vlaneseq }
 0x13e   : > { %2951 = vmatprep.subr.bf16.mxu1 %v8670_v42  ;;  %v8725_v42 = vld [vmem:[#allocation5 + $0x80] ss:$48 sps:$4 sm:$0xff]  }
 0x13f   : > { %2861 = vmatmul.mubr.bf16.gmra.mxu0 %v9856_v28 }
 0x140   : > { %2788 = vmatmul.mubr.bf16.gmra.mxu1 %v9789_v1  ;;  %2870 = vmatprep.mubr.bf16.mxu0 %v12272_v0  ;;  %v8695_v1 = vld [vmem:[#allocation5 + $0x738] ss:$48 sps:$4 sm:$0xff]  }
 0x141   : > { %2952 = vmatpush2.bf16.msra.mxu1 %v8668_v25  ;;  %2797 = vmatprep.mubr.bf16.mxu1 %v9792_v3  ;;  %v8688_v3 = vld [vmem:[#allocation5 + $0x37c] ss:$48 sps:$4 sm:$0xff]   ;;  %v8730_v25 = vld [vmem:[#allocation5 + $0x24] ss:$48 sps:$4 sm:$0xff]  }
 0x142   : > { %2953 = vmatprep.subr.bf16.mxu1 %v8676_v26  ;;  %3049 = vmatpush1.bf16.msra.mxu0 %v8680_v27  ;;  %v9939_v26 = vshrl.u32 %v625_v19, 7  ;;  %v8728_v27 = vld [vmem:[#allocation5 + $0x20] ss:$48 sps:$4 sm:$0xff]   ;;  %v8748_v19 = vld [vmem:[#allocation5 + $0x4a4] ss:$48 sps:$4 sm:$0xff]  }
 0x143   : > { %3050 = vmatprep.subr.bf16.mxu0 %v8691_v32  ;;  %v9946_v32 = vld [vmem:[%s9687_s7 + $0xb0] ss:$12 sps:$4 sm:$0xff]  }
 0x145   : > { %2954 = vmatpush2.bf16.msra.mxu1 %v8674_v52 }
 0x146   : > { %2955 = vmatprep.subr.bf16.mxu1 %v8679_v30  ;;  %3051 = vmatpush1.bf16.msra.mxu0 %v8689_v34  ;;  %v9953_v34 = vld [vmem:[#allocation7] sm:$0xff] }
 0x147   : > { %2871 = vmatmul.mubr.bf16.gmra.mxu0 %v9863_v35  ;;  %3052 = vmatprep.subr.bf16.mxu0 %v8697_v38 }
 0x148   : > { %2798 = vmatmul.mubr.bf16.gmra.mxu1 %v9799_v7  ;;  %2880 = vmatprep.mubr.bf16.mxu0 %v12272_v0  ;;  %v8692_v7 = vld [vmem:[#allocation5 + $0x318] ss:$48 sps:$4 sm:$0xff]  }
 0x149   : > { %2956 = vmatpush2.bf16.msra.mxu1 %v8677_v55  ;;  %2807 = vmatprep.mubr.bf16.mxu1 %v9802_v11  ;;  %v8700_v11 = vld [vmem:[#allocation5 + $0x2c4] ss:$48 sps:$4 sm:$0xff]  }
 0x14a   : > { %2957 = vmatprep.subr.bf16.mxu1 %v8685_v36  ;;  %3053 = vmatpush1.bf16.msra.mxu0 %v8695_v1  ;;  %v9950_v55 = vld [vmem:[%s9687_s7 + $0x48] ss:$12 sps:$4 sm:$0xff]   ;;  %v9956_v1 = vld [vmem:[%s9687_s7 + $0x64] ss:$12 sps:$4 sm:$0xff]  }
 0x14b   : > { %3054 = vmatprep.subr.bf16.mxu0 %v8706_v39  ;;  %v8733_v36 = vld [vmem:[#allocation5 + $0x5c4] ss:$48 sps:$4 sm:$0xff]   ;;  %v8734_v39 = vld [vmem:[#allocation5 + $0x8c0] ss:$48 sps:$4 sm:$0xff]  }
 0x14d   : > { %2958 = vmatpush2.bf16.msra.mxu1 %v8683_v37  ;;  %v9960_v37 = vsub.s32 0, %v9939_v26 }
 0x14e   : > { %2959 = vmatprep.subr.bf16.mxu1 %v8688_v3  ;;  %3055 = vmatpush1.bf16.msra.mxu0 %v8704_v46  ;;  %v8731_v3 = vld [vmem:[#allocation5 + $0x5c0] ss:$48 sps:$4 sm:$0xff]  }
 0x14f   : > { %2881 = vmatmul.mubr.bf16.gmra.mxu0 %v9870_v47  ;;  %3056 = vmatprep.subr.bf16.mxu0 %v8715_v48  ;;  %12378 = vst [vmem:[#allocation16_spill] sm:$0xff] %v9960_v37  ;;  %v9972_v46 = vrot.slane %v9953_v34, %v9960_v37 }
 0x150   : > { %2808 = vmatmul.mubr.bf16.gmra.mxu1 %v9809_v16  ;;  %2890 = vmatprep.mubr.bf16.mxu0 %v12272_v0  ;;  %v8703_v16 = vld [vmem:[#allocation5 + $0x264] ss:$48 sps:$4 sm:$0xff]  }
 0x151   : > { %2960 = vmatpush2.bf16.msra.mxu1 %v8686_v40  ;;  %2963 = vmatprep.mubr.bf16.mxu1 %v9875_v44  ;;  %v9966_v40 = vsub.s32 1, %v9939_v26 }
 0x152   : > { %2961 = vmatprep.subr.bf16.mxu1 %v8694_v43  ;;  %3057 = vmatpush1.bf16.msra.mxu0 %v8713_v50  ;;  %v8745_v50 = vld [vmem:[#allocation5 + $0x864] ss:$48 sps:$4 sm:$0xff]  }
 0x153   : > { %3058 = vmatprep.subr.bf16.mxu0 %v8724_v57  ;;  %12379 = vst [vmem:[#allocation17_spill] sm:$0xff] %v9966_v40  ;;  %v9978_v48 = vrot.slane %v9953_v34, %v9966_v40  ;;  %v8742_v57 = vld [vmem:[#allocation5 + $0x504] ss:$48 sps:$4 sm:$0xff]  }
 0x155   : > { %2962 = vmatpush2.bf16.msra.mxu1 %v8692_v7  ;;  %v8739_v7 = vld [vmem:[#allocation5 + $0x564] ss:$48 sps:$4 sm:$0xff]  }
 0x156   : > { %3157 = vmatprep.subr.bf16.mxu1 %v8700_v11  ;;  %3059 = vmatpush1.bf16.msra.mxu0 %v8722_v51 }
 0x157   : > { %2891 = vmatmul.mubr.bf16.gmra.mxu0 %v9881_v53  ;;  %3270 = vmatprep.subr.bf16.mxu0 %v8736_v61  ;;  %v8754_v61 = vld [vmem:[#allocation5 + $0x804] ss:$48 sps:$4 sm:$0xff]  }
 0x158   : > { %v9878_v58 = vpop.f32.mrf.mxu1  ;;  %2964 = vmatmul.mubr.bf16.vlgmr.msra.gmra.mxu1 %v9885_v59  ;;  %2900 = vmatprep.mubr.bf16.mxu0 %v12272_v0 }
 0x159   : > { %3158 = vmatpush1.bf16.msra.mxu1 %v8698_v49  ;;  %2973 = vmatprep.mubr.bf16.mxu1 %v9892_v2  ;;  %v8737_v49 = vld [vmem:[#allocation5 + $0x560] ss:$48 sps:$4 sm:$0xff]  }
 0x15a   : > { %v9889_v62 = vpop.f32.mrf.mxu1  ;;  %3159 = vmatprep.subr.bf16.mxu1 %v8703_v16 }
 0x15c   : > { %v9895_v4 = vpop.f32.mrf.mxu1 }
 0x15d   : > { %3160 = vmatpush1.bf16.msra.mxu1 %v8701_v54  ;;  %v9983_v54 = vld [vmem:[%s9687_s7 + $0x60] ss:$12 sps:$4 sm:$0xff]  }
 0x15e   : > { %v9897_v56 = vpop.f32.mrf.mxu1  ;;  %3161 = vmatprep.subr.bf16.mxu1 %v8709_v60  ;;  %v8743_v60 = vld [vmem:[#allocation5 + $0x860] ss:$48 sps:$4 sm:$0xff]  }
 0x15f   : > { %2901 = vmatmul.mubr.bf16.gmra.mxu0 %v9902_v12 }
 0x160   : > { %v9899_v8 = vpop.f32.mrf.mxu1  ;;  %2974 = vmatmul.mubr.bf16.gmra.mxu1 %v9906_v9  ;;  %2910 = vmatprep.mubr.bf16.mxu0 %v12272_v0 }
 0x161   : > { %3162 = vmatpush1.bf16.msra.mxu1 %v8707_v5  ;;  %2983 = vmatprep.mubr.bf16.mxu1 %v9913_v13 }
 0x162   : > { %v9910_v14 = vpop.f32.mrf.mxu1  ;;  %3163 = vmatprep.subr.bf16.mxu1 %v8712_v63 }
 0x164   : > { %v9916_v20 = vpop.f32.mrf.mxu1 }
 0x165   : > { %3164 = vmatpush1.bf16.msra.mxu1 %v8710_v6 }
 0x166   : > { %v9918_v23 = vpop.f32.mrf.mxu1  ;;  %3165 = vmatprep.subr.bf16.mxu1 %v8718_v10  ;;  %v9991_v10 = vld [vmem:[%s9687_s7 + $0x7c] ss:$12 sps:$4 sm:$0xff]  }
 0x167   : > { %2911 = vmatmul.mubr.bf16.gmra.mxu0 %v9923_v17 }
 0x168   : > { %v9920_v29 = vpop.f32.mrf.mxu1  ;;  %2984 = vmatmul.mubr.bf16.gmra.mxu1 %v9927_v33  ;;  %2920 = vmatprep.mubr.bf16.mxu0 %v12272_v0 }
 0x169   : > { %3166 = vmatpush1.bf16.msra.mxu1 %v8716_v21  ;;  %2993 = vmatprep.mubr.bf16.mxu1 %v9934_v24 }
 0x16a   : > { %v9931_v22 = vpop.f32.mrf.mxu1  ;;  %3167 = vmatprep.subr.bf16.mxu1 %v8721_v15 }
 0x16c   : > { %v9937_v45 = vpop.f32.mrf.mxu1 }
 0x16d   : > { %3168 = vmatpush1.bf16.msra.mxu1 %v8719_v31 }
 0x16e   : > { %v9941_v52 = vpop.f32.mrf.mxu1  ;;  %3169 = vmatprep.subr.bf16.mxu1 %v8727_v18  ;;  %v8740_v18 = vld [vmem:[#allocation5 + $0x500] ss:$48 sps:$4 sm:$0xff]  }
 0x16f   : > { %2921 = vmatmul.mubr.bf16.gmra.mxu0 %v9946_v32 }
 0x170   : > { %v9943_v30 = vpop.f32.mrf.mxu1  ;;  %2994 = vmatmul.mubr.bf16.gmra.mxu1 %v9950_v55  ;;  %3076 = vmatprep.mubr.bf16.mxu0 %v12272_v0 }
 0x171   : > { %3170 = vmatpush1.bf16.msra.mxu1 %v8725_v42  ;;  %3003 = vmatprep.mubr.bf16.mxu1 %v9956_v1 }
 0x172   : > { %v9962_v38 = vpop.f32.mrf.mxu1  ;;  %3171 = vmatprep.subr.bf16.mxu1 %v8730_v25 }
 0x174   : > { %v9968_v43 = vpop.f32.mrf.mxu1 }
 0x175   : > { %3172 = vmatpush1.bf16.msra.mxu1 %v8728_v27 }
 0x176   : > { %v9974_v11 = vpop.f32.mrf.mxu1  ;;  %3173 = vmatprep.subr.bf16.mxu1 %v8733_v36 }
 0x177   : > { %v2287_v16 = vpop.f32.mrf.mxu0  ;;  %3077 = vmatmul.mubr.bf16.vlgmr.msra.gmra.mxu0 %v9849_v41 }
 0x178   : > { %v9980_v51 = vpop.f32.mrf.mxu1  ;;  %3004 = vmatmul.mubr.bf16.gmra.mxu1 %v9983_v54  ;;  %v2288_v5 = vadd.f32 %v2287_v16, %v9972_v46  ;;  %3271 = vmatpush1.bf16.msra.mxu0 %v8734_v39  ;;  %v8746_v39 = vld [vmem:[#allocation5 + $0x4a0] ss:$48 sps:$4 sm:$0xff]  }
 0x179   : > { %3174 = vmatpush2.bf16.msra.mxu1 %v8731_v3  ;;  %v2289_v63 = vpop.f32.mrf.mxu0  ;;  %3013 = vmatprep.mubr.bf16.mxu1 %v9991_v10 }
 0x17a   : > { %v9988_v6 = vpop.f32.mrf.mxu1  ;;  %3175 = vmatprep.subr.bf16.mxu1 %v8739_v7  ;;  %v2401_v21 = vadd.f32 %v9878_v58, %v2288_v5  ;;  %v2290_v15 = vadd.f32 %v2289_v63, %v9978_v48  ;;  %3086 = vmatprep.mubr.bf16.mxu0 %v12272_v0  ;;  %v8752_v7 = vld [vmem:[#allocation5 + $0x800] ss:$48 sps:$4 sm:$0xff]  }
 0x17b   : > { %3272 = vmatprep.subr.bf16.mxu0 %v8745_v50  ;;  %v2291_v41 = vpop.f32.mrf.mxu0  ;;  %v10015_v63 = vld [vmem:[%s9687_s7 + $0x94] ss:$12 sps:$4 sm:$0xff]  }
 0x17c   : > { %v9997_v31 = vpop.f32.mrf.mxu1  ;;  %v2403_v42 = vadd.f32 %v9889_v62, %v2290_v15  ;;  %v2292_v25 = vadd.f32 %v2291_v41, %v9972_v46  ;;  %3273 = vmatpush1.bf16.msra.mxu0 %v8743_v60  ;;  %v10008_v62 = vld [vmem:[%s9687_s7 + $0x78] ss:$12 sps:$4 sm:$0xff]  }
 0x17d   : > { %3176 = vmatpush2.bf16.msra.mxu1 %v8737_v49  ;;  %v2293_v27 = vpop.f32.mrf.mxu0  ;;  %3274 = vmatprep.subr.bf16.mxu0 %v8754_v61  ;;  %v8751_v49 = vld [vmem:[#allocation5 + $0x444] ss:$48 sps:$4 sm:$0xff]  }
 0x17e   : > { %v10001_v36 = vpop.f32.mrf.mxu1  ;;  %3177 = vmatprep.subr.bf16.mxu1 %v8742_v57  ;;  %v2405_v58 = vadd.f32 %v9895_v4, %v2292_v25  ;;  %v2294_v3 = vadd.f32 %v2293_v27, %v9978_v48  ;;  %v8763_v60 = vld [vmem:[#allocation5 + $0x7a4] ss:$48 sps:$4 sm:$0xff]   ;;  %v3609_v57 = vmax.f32 %v2401_v21, 0.0  ;;  %v3610_v15 = vmax.f32 %v2403_v42, 0.0 }
 0x17f   : > { %v2297_v50 = vpop.f32.mrf.mxu0  ;;  %3087 = vmatmul.mubr.bf16.gmra.mxu0 %v9856_v28  ;;  %v8757_v42 = vld [vmem:[#allocation5 + $0x3e4] ss:$48 sps:$4 sm:$0xff]  }
 0x180   : > { %v10005_v16 = vpop.f32.mrf.mxu1  ;;  %3014 = vmatmul.mubr.bf16.gmra.mxu1 %v10008_v62  ;;  %v3621_v61 = vmax.f32 %v2405_v58, 0.0  ;;  %v2407_v4 = vadd.f32 %v9897_v56, %v2294_v3  ;;  %v2298_v5 = vadd.f32 %v2297_v50, %v9972_v46  ;;  %3096 = vmatprep.mubr.bf16.mxu0 %v12272_v0  ;;  %v8749_v50 = vld [vmem:[#allocation5 + $0x440] ss:$48 sps:$4 sm:$0xff]  }
 0x181   : > { %3178 = vmatpush2.bf16.msra.mxu1 %v8740_v18  ;;  %3023 = vmatprep.mubr.bf16.mxu1 %v10015_v63  ;;  %v2299_v41 = vpop.f32.mrf.mxu0  ;;  %v8761_v18 = vld [vmem:[#allocation5 + $0x7a0] ss:$48 sps:$4 sm:$0xff]  }
 0x182   : > { %v10018_v25 = vpop.f32.mrf.mxu1  ;;  %3179 = vmatprep.subr.bf16.mxu1 %v8748_v19  ;;  %v10021_v28 = vpack.c.bf16 %v3621_v61, %v3609_v57  ;;  %v3622_v21 = vmax.f32 %v2407_v4, 0.0  ;;  %v2411_v27 = vadd.f32 %v9899_v8, %v2298_v5  ;;  %v2300_v56 = vadd.f32 %v2299_v41, %v9978_v48  ;;  %3275 = vmatpush1.bf16.msra.mxu0 %v8752_v7  ;;  %v8755_v5 = vld [vmem:[#allocation5 + $0x3e0] ss:$48 sps:$4 sm:$0xff]   ;;  %v8769_v41 = vld [vmem:[#allocation5 + $0x744] ss:$48 sps:$4 sm:$0xff]  }
 0x183   : > { %v2301_v58 = vpop.f32.mrf.mxu0  ;;  %3276 = vmatprep.subr.bf16.mxu0 %v8763_v60 }
 0x184   : > { %12380 = vst [vmem:[#allocation18_spill] sm:$0xff] %v10021_v28  ;;  %v10025_v3 = vpop.f32.mrf.mxu1  ;;  %v2413_v19 = vadd.f32 %v9910_v14, %v2300_v56  ;;  %v2302_v0 = vadd.f32 %v2301_v58, %v9972_v46  ;;  %v10029_v57 = vpack.c.bf16 %v3622_v21, %v3610_v15  ;;  %v10038_v14 = vld [vmem:[%s9687_s7 + $0x90] ss:$12 sps:$4 sm:$0xff]   ;;  %v3633_v21 = vmax.f32 %v2411_v27, 0.0 }
 0x185   : > { %3180 = vmatpush2.bf16.msra.mxu1 %v8746_v39  ;;  %v2303_v61 = vpop.f32.mrf.mxu0  ;;  %v8760_v39 = vld [vmem:[#allocation5 + $0x384] ss:$48 sps:$4 sm:$0xff]   ;;  %v8767_v15 = vld [vmem:[#allocation5 + $0x740] ss:$48 sps:$4 sm:$0xff]  }
 0x186   : > { %12381 = vst [vmem:[#allocation19_spill] sm:$0xff] %v10029_v57  ;;  %v10031_v8 = vpop.f32.mrf.mxu1  ;;  %3181 = vmatprep.subr.bf16.mxu1 %v8751_v49  ;;  %v2415_v7 = vadd.f32 %v9916_v20, %v2302_v0  ;;  %v2304_v4 = vadd.f32 %v2303_v61, %v9978_v48  ;;  %3277 = vmatpush1.bf16.msra.mxu0 %v8761_v18  ;;  %v8778_v49 = vld [vmem:[#allocation5 + $0x6e4] ss:$48 sps:$4 sm:$0xff]   ;;  %v10045_v18 = vld [vmem:[%s9687_s7 + $0xac] ss:$12 sps:$4 sm:$0xff]   ;;  %v3634_v58 = vmax.f32 %v2413_v19, 0.0 }
 0x187   : > { %v2307_v60 = vpop.f32.mrf.mxu0  ;;  %3097 = vmatmul.mubr.bf16.gmra.mxu0 %v9863_v35  ;;  %12382 = vst [vmem:[#allocation20_spill] sm:$0xff] %v10045_v18  ;;  %v12383_v35 = vmov 0   ;;  %3278 = vmatprep.subr.bf16.mxu0 %v8769_v41  ;;  %v8766_v57 = vld [vmem:[#allocation5 + $0x324] ss:$48 sps:$4 sm:$0xff]  }
 0x188   : > { %v10035_v37 = vpop.f32.mrf.mxu1  ;;  %3024 = vmatmul.mubr.bf16.gmra.mxu1 %v10038_v14  ;;  %v3645_v0 = vmax.f32 %v2415_v7, 0.0  ;;  %v2417_v20 = vadd.f32 %v9918_v23, %v2304_v4  ;;  %v2308_v56 = vadd.f32 %v2307_v60, %v9972_v46  ;;  %3106 = vmatprep.mubr.bf16.mxu0 %v12383_v35  ;;  %v8758_v60 = vld [vmem:[#allocation5 + $0x380] ss:$48 sps:$4 sm:$0xff]  }
 0x189   : > { %3182 = vmatpush2.bf16.msra.mxu1 %v8749_v50  ;;  %3033 = vmatprep.mubr.bf16.mxu1 %v10045_v18  ;;  %v2309_v61 = vpop.f32.mrf.mxu0 }
 0x18a   : > { %v10048_v40 = vpop.f32.mrf.mxu1  ;;  %3183 = vmatprep.subr.bf16.mxu1 %v8757_v42  ;;  %v10051_v28 = vpack.c.bf16 %v3645_v0, %v3633_v21  ;;  %v3646_v27 = vmax.f32 %v2417_v20, 0.0  ;;  %v2421_v7 = vadd.f32 %v9920_v29, %v2308_v56  ;;  %v2310_v23 = vadd.f32 %v2309_v61, %v9978_v48  ;;  %3279 = vmatpush1.bf16.msra.mxu0 %v8767_v15  ;;  %v8764_v56 = vld [vmem:[#allocation5 + $0x320] ss:$48 sps:$4 sm:$0xff]  }
 0x18b   : > { %v2311_v50 = vpop.f32.mrf.mxu0  ;;  %3280 = vmatprep.subr.bf16.mxu0 %v8778_v49  ;;  %v8776_v61 = vld [vmem:[#allocation5 + $0x6e0] ss:$48 sps:$4 sm:$0xff]   ;;  %v8787_v49 = vld [vmem:[#allocation5 + $0x684] ss:$48 sps:$4 sm:$0xff]  }
 0x18c   : > { %12384 = vst [vmem:[#allocation21_spill] sm:$0xff] %v10051_v28  ;;  %v10055_v4 = vpop.f32.mrf.mxu1  ;;  %v2423_v19 = vadd.f32 %v9931_v22, %v2310_v23  ;;  %v2312_v42 = vadd.f32 %v2311_v50, %v9972_v46  ;;  %v10059_v21 = vpack.c.bf16 %v3646_v27, %v3634_v58  ;;  %v3657_v15 = vmax.f32 %v2421_v7, 0.0  ;;  %v10068_v22 = vld [vmem:[%s9687_s7 + $0xa8] ss:$12 sps:$4 sm:$0xff]  }
 0x18d   : > { %3184 = vmatpush2.bf16.msra.mxu1 %v8755_v5  ;;  %v2313_v0 = vpop.f32.mrf.mxu0  ;;  %v8772_v5 = vld [vmem:[#allocation5 + $0x2cc] ss:$48 sps:$4 sm:$0xff]  }
 0x18e   : > { %12385 = vst [vmem:[#allocation22_spill] sm:$0xff] %v10059_v21  ;;  %v10061_v29 = vpop.f32.mrf.mxu1  ;;  %3185 = vmatprep.subr.bf16.mxu1 %v8760_v39  ;;  %v2425_v41 = vadd.f32 %v9937_v45, %v2312_v42  ;;  %v2314_v20 = vadd.f32 %v2313_v0, %v9978_v48  ;;  %v3658_v58 = vmax.f32 %v2423_v19, 0.0  ;;  %3281 = vmatpush1.bf16.msra.mxu0 %v8776_v61 }
 0x18f   : > { %v2317_v28 = vpop.f32.mrf.mxu0  ;;  %3107 = vmatmul.mubr.bf16.gmra.mxu0 %v9870_v47  ;;  %3282 = vmatprep.subr.bf16.mxu0 %v8787_v49 }
 0x190   : > { %v10065_v18 = vpop.f32.mrf.mxu1  ;;  %3034 = vmatmul.mubr.bf16.gmra.mxu1 %v10068_v22  ;;  %v3669_v39 = vmax.f32 %v2425_v41, 0.0  ;;  %v2427_v45 = vadd.f32 %v9941_v52, %v2314_v20  ;;  %v2318_v27 = vadd.f32 %v2317_v28, %v9972_v46  ;;  %3116 = vmatprep.mubr.bf16.mxu0 %v12383_v35  ;;  %v8785_v52 = vld [vmem:[#allocation5 + $0x680] ss:$48 sps:$4 sm:$0xff]   ;;  %v8775_v41 = vld [vmem:[#allocation5 + $0x26c] ss:$48 sps:$4 sm:$0xff]  }
 0x191   : > { %3186 = vmatpush2.bf16.msra.mxu1 %v8758_v60  ;;  %v2319_v7 = vpop.f32.mrf.mxu0  ;;  %3189 = vmatprep.mubr.bf16.mxu1 %v9875_v44  ;;  %v8770_v60 = vld [vmem:[#allocation5 + $0x2c8] ss:$48 sps:$4 sm:$0xff]  }
 0x192   : > { %v10075_v23 = vpop.f32.mrf.mxu1  ;;  %3187 = vmatprep.subr.bf16.mxu1 %v8766_v57  ;;  %v10078_v50 = vpack.c.bf16 %v3669_v39, %v3657_v15  ;;  %v3670_v47 = vmax.f32 %v2427_v45, 0.0  ;;  %v2431_v42 = vadd.f32 %v9943_v30, %v2318_v27  ;;  %v2320_v19 = vadd.f32 %v2319_v7, %v9978_v48  ;;  %v8773_v45 = vld [vmem:[#allocation5 + $0x268] ss:$48 sps:$4 sm:$0xff]   ;;  %3283 = vmatpush1.bf16.msra.mxu0 %v8785_v52  ;;  %v8796_v27 = vld [vmem:[#allocation5 + $0x624] ss:$48 sps:$4 sm:$0xff]  }
 0x193   : > { %v2321_v0 = vpop.f32.mrf.mxu0  ;;  %3284 = vmatprep.subr.bf16.mxu0 %v8796_v27 }
 0x194   : > { %12386 = vst [vmem:[#allocation23_spill] sm:$0xff] %v10078_v50  ;;  %v10082_v28 = vpop.f32.mrf.mxu1  ;;  %v2433_v20 = vadd.f32 %v9962_v38, %v2320_v19  ;;  %v2322_v57 = vadd.f32 %v2321_v0, %v9972_v46  ;;  %v10086_v44 = vpack.c.bf16 %v3670_v47, %v3658_v58  ;;  %v8781_v38 = vld [vmem:[#allocation5 + $0x20c] ss:$48 sps:$4 sm:$0xff]   ;;  %v3681_v47 = vmax.f32 %v2431_v42, 0.0 }
 0x195   : > { %3188 = vmatpush2.bf16.msra.mxu1 %v8764_v56  ;;  %v2323_v15 = vpop.f32.mrf.mxu0  ;;  %v8794_v56 = vld [vmem:[#allocation5 + $0x620] ss:$48 sps:$4 sm:$0xff]   ;;  %v8808_v58 = vld [vmem:[#allocation5 + $0x8cc] ss:$48 sps:$4 sm:$0xff]  }
 0x196   : > { %12387 = vst [vmem:[#allocation24_spill] sm:$0xff] %v10086_v44  ;;  %v10088_v39 = vpop.f32.mrf.mxu1  ;;  %3383 = vmatprep.subr.bf16.mxu1 %v8772_v5  ;;  %v2435_v30 = vadd.f32 %v9968_v43, %v2322_v57  ;;  %v2324_v61 = vadd.f32 %v2323_v15, %v9978_v48  ;;  %3285 = vmatpush1.bf16.msra.mxu0 %v8794_v56 }
 0x197   : > { %v2327_v7 = vpop.f32.mrf.mxu0  ;;  %3117 = vmatmul.mubr.bf16.gmra.mxu0 %v9881_v53  ;;  %3496 = vmatprep.subr.bf16.mxu0 %v8808_v58 }
 0x198   : > { %v10092_v49 = vpop.f32.mrf.mxu1  ;;  %3190 = vmatmul.mubr.bf16.vlgmr.msra.gmra.mxu1 %v9885_v59  ;;  %v3693_v19 = vmax.f32 %v2435_v30, 0.0  ;;  %v2437_v5 = vadd.f32 %v9974_v11, %v2324_v61  ;;  %v2328_v43 = vadd.f32 %v2327_v7, %v9972_v46  ;;  %3126 = vmatprep.mubr.bf16.mxu0 %v12383_v35  ;;  %v3682_v11 = vmax.f32 %v2433_v20, 0.0  ;;  %v8784_v61 = vld [vmem:[#allocation5 + $0x1ac] ss:$48 sps:$4 sm:$0xff]  }
 0x199   : > { %3384 = vmatpush1.bf16.msra.mxu1 %v8770_v60  ;;  %v2329_v52 = vpop.f32.mrf.mxu0  ;;  %3199 = vmatprep.mubr.bf16.mxu1 %v9892_v2  ;;  %v8779_v60 = vld [vmem:[#allocation5 + $0x208] ss:$48 sps:$4 sm:$0xff]  }
 0x19a   : > { %v10099_v0 = vpop.f32.mrf.mxu1  ;;  %3385 = vmatprep.subr.bf16.mxu1 %v8775_v41  ;;  %v10102_v53 = vpack.c.bf16 %v3693_v19, %v3681_v47  ;;  %v3694_v59 = vmax.f32 %v2437_v5, 0.0  ;;  %v2441_v57 = vadd.f32 %v9980_v51, %v2328_v43  ;;  %v2330_v42 = vadd.f32 %v2329_v52, %v9978_v48 }
 0x19b   : > { %v2331_v15 = vpop.f32.mrf.mxu0 }
 0x19c   : > { %12388 = vst [vmem:[#allocation25_spill] sm:$0xff] %v10102_v53  ;;  %v10106_v30 = vpop.f32.mrf.mxu1  ;;  %v2443_v7 = vadd.f32 %v9988_v6, %v2330_v42  ;;  %v2332_v41 = vadd.f32 %v2331_v15, %v9972_v46  ;;  %v10112_v51 = vpack.c.bf16 %v3694_v59, %v3682_v11  ;;  %v8782_v6 = vld [vmem:[#allocation5 + $0x1a8] ss:$48 sps:$4 sm:$0xff]   ;;  %v3705_v56 = vmax.f32 %v2441_v57, 0.0 }
 0x19d   : > { %3386 = vmatpush1.bf16.msra.mxu1 %v8773_v45  ;;  %v2333_v2 = vpop.f32.mrf.mxu0  ;;  %v8790_v45 = vld [vmem:[#allocation5 + $0x14c] ss:$48 sps:$4 sm:$0xff]   ;;  %v8788_v15 = vld [vmem:[#allocation5 + $0x148] ss:$48 sps:$4 sm:$0xff]  }
 0x19e   : > { %v10110_v47 = vpop.f32.mrf.mxu1  ;;  %3387 = vmatprep.subr.bf16.mxu1 %v8781_v38  ;;  %12389 = vst [vmem:[#allocation26_spill] sm:$0xff] %v10112_v51  ;;  %v2445_v20 = vadd.f32 %v9997_v31, %v2332_v41  ;;  %v2334_v27 = vadd.f32 %v2333_v2, %v9978_v48  ;;  %v3706_v42 = vmax.f32 %v2443_v7, 0.0 }
 0x19f   : > { %v2337_v19 = vpop.f32.mrf.mxu0  ;;  %3127 = vmatmul.mubr.bf16.gmra.mxu0 %v9902_v12 }
 0x1a0   : > { %v10116_v5 = vpop.f32.mrf.mxu1  ;;  %3200 = vmatmul.mubr.bf16.gmra.mxu1 %v9906_v9  ;;  %v3717_v58 = vmax.f32 %v2445_v20, 0.0  ;;  %v2447_v43 = vadd.f32 %v10001_v36, %v2334_v27  ;;  %v2338_v38 = vadd.f32 %v2337_v19, %v9972_v46  ;;  %3136 = vmatprep.mubr.bf16.mxu0 %v12383_v35 }
 0x1a1   : > { %3388 = vmatpush1.bf16.msra.mxu1 %v8779_v60  ;;  %v2339_v31 = vpop.f32.mrf.mxu0  ;;  %3209 = vmatprep.mubr.bf16.mxu1 %v9913_v13 }
 0x1a2   : > { %v10123_v52 = vpop.f32.mrf.mxu1  ;;  %3389 = vmatprep.subr.bf16.mxu1 %v8784_v61  ;;  %v10126_v12 = vpack.c.bf16 %v3717_v58, %v3705_v56  ;;  %v3718_v9 = vmax.f32 %v2447_v43, 0.0  ;;  %v2451_v59 = vadd.f32 %v10005_v16, %v2338_v38  ;;  %v2340_v57 = vadd.f32 %v2339_v31, %v9978_v48  ;;  %v8793_v61 = vld [vmem:[#allocation5 + $0xec] ss:$48 sps:$4 sm:$0xff]  }
 0x1a3   : > { %v2341_v36 = vpop.f32.mrf.mxu0 }
 0x1a4   : > { %12390 = vst [vmem:[#allocation27_spill] sm:$0xff] %v10126_v12  ;;  %v10130_v11 = vpop.f32.mrf.mxu1  ;;  %v2453_v60 = vadd.f32 %v10018_v25, %v2340_v57  ;;  %v2342_v41 = vadd.f32 %v2341_v36, %v9972_v46  ;;  %v10136_v20 = vpack.c.bf16 %v3718_v9, %v3706_v42  ;;  %v8791_v25 = vld [vmem:[#allocation5 + $0xe8] ss:$48 sps:$4 sm:$0xff]   ;;  %v3729_v56 = vmax.f32 %v2451_v59, 0.0 }
 0x1a5   : > { %3390 = vmatpush1.bf16.msra.mxu1 %v8782_v6  ;;  %v2343_v2 = vpop.f32.mrf.mxu0  ;;  %v8799_v6 = vld [vmem:[#allocation5 + $0x8c] ss:$48 sps:$4 sm:$0xff]   ;;  %v8797_v36 = vld [vmem:[#allocation5 + $0x88] ss:$48 sps:$4 sm:$0xff]  }
 0x1a6   : > { %v10134_v13 = vpop.f32.mrf.mxu1  ;;  %3391 = vmatprep.subr.bf16.mxu1 %v8790_v45  ;;  %12391 = vst [vmem:[#allocation28_spill] sm:$0xff] %v10136_v20  ;;  %v2455_v16 = vadd.f32 %v10025_v3, %v2342_v41  ;;  %v2344_v7 = vadd.f32 %v2343_v2, %v9978_v48  ;;  %v3730_v59 = vmax.f32 %v2453_v60, 0.0 }
 0x1a7   : > { %v2347_v27 = vpop.f32.mrf.mxu0  ;;  %3137 = vmatmul.mubr.bf16.gmra.mxu0 %v9923_v17 }
 0x1a8   : > { %v10140_v19 = vpop.f32.mrf.mxu1  ;;  %3210 = vmatmul.mubr.bf16.gmra.mxu1 %v9927_v33  ;;  %v3741_v58 = vmax.f32 %v2455_v16, 0.0  ;;  %v2457_v43 = vadd.f32 %v10031_v8, %v2344_v7  ;;  %v2348_v45 = vadd.f32 %v2347_v27, %v9972_v46  ;;  %3146 = vmatprep.mubr.bf16.mxu0 %v12383_v35  ;;  %v10155_v8 = vsub.s32 2, %v9939_v26 }
 0x1a9   : > { %3392 = vmatpush1.bf16.msra.mxu1 %v8788_v15  ;;  %v2349_v3 = vpop.f32.mrf.mxu0  ;;  %3219 = vmatprep.mubr.bf16.mxu1 %v9934_v24  ;;  %v8802_v24 = vld [vmem:[#allocation5 + $0x2c] ss:$48 sps:$4 sm:$0xff]   ;;  %v12282_v16 = vsub.s32 3, %v9939_v26 }
 0x1aa   : > { %v10147_v38 = vpop.f32.mrf.mxu1  ;;  %3393 = vmatprep.subr.bf16.mxu1 %v8793_v61  ;;  %v10150_v17 = vpack.c.bf16 %v3741_v58, %v3729_v56  ;;  %v3742_v33 = vmax.f32 %v2457_v43, 0.0  ;;  %v2461_v31 = vadd.f32 %v10035_v37, %v2348_v45  ;;  %v2350_v9 = vadd.f32 %v2349_v3, %v9978_v48  ;;  %12393 = vst [vmem:[#allocation30_spill] sm:$0xff] %v10155_v8 }
 0x1ab   : > { %v2351_v57 = vpop.f32.mrf.mxu0 }
 0x1ac   : > { %12392 = vst [vmem:[#allocation29_spill] sm:$0xff] %v10150_v17  ;;  %v10157_v42 = vpop.f32.mrf.mxu1  ;;  %v2463_v15 = vadd.f32 %v10048_v40, %v2350_v9  ;;  %v2352_v41 = vadd.f32 %v2351_v57, %v9972_v46  ;;  %v10163_v37 = vpack.c.bf16 %v3742_v33, %v3730_v59  ;;  %v8800_v40 = vld [vmem:[#allocation5 + $0x28] ss:$48 sps:$4 sm:$0xff]   ;;  %v3753_v58 = vmax.f32 %v2461_v31, 0.0 }
 0x1ad   : > { %3394 = vmatpush1.bf16.msra.mxu1 %v8791_v25  ;;  %v2353_v61 = vpop.f32.mrf.mxu0  ;;  %v8805_v25 = vld [vmem:[#allocation5 + $0x5cc] ss:$48 sps:$4 sm:$0xff]   ;;  %v8803_v9 = vld [vmem:[#allocation5 + $0x5c8] ss:$48 sps:$4 sm:$0xff]  }
 0x1ae   : > { %v10161_v2 = vpop.f32.mrf.mxu1  ;;  %3395 = vmatprep.subr.bf16.mxu1 %v8799_v6  ;;  %12394 = vst [vmem:[#allocation31_spill] sm:$0xff] %v10163_v37  ;;  %v2465_v60 = vadd.f32 %v10055_v4, %v2352_v41  ;;  %v2354_v7 = vadd.f32 %v2353_v61, %v9978_v48  ;;  %v10177_v4 = vrot.slane %v9953_v34, %v10155_v8  ;;  %v3754_v59 = vmax.f32 %v2463_v15, 0.0 }
 0x1af   : > { %v2357_v27 = vpop.f32.mrf.mxu0  ;;  %3147 = vmatmul.mubr.bf16.gmra.mxu0 %v9946_v32 }
 0x1b0   : > { %v10168_v56 = vpop.f32.mrf.mxu1  ;;  %3220 = vmatmul.mubr.bf16.gmra.mxu1 %v9950_v55  ;;  %v3765_v43 = vmax.f32 %v2465_v60, 0.0  ;;  %v2467_v6 = vadd.f32 %v10061_v29, %v2354_v7  ;;  %v2358_v45 = vadd.f32 %v2357_v27, %v9972_v46  ;;  %3302 = vmatprep.mubr.bf16.mxu0 %v12383_v35  ;;  %v10193_v60 = vrot.slane %v9953_v34, %v12282_v16  ;;  %v10207_v34 = vld [vmem:[%s9687_s7 + $0x8] ss:$12 sps:$4 sm:$0xff]  }
 0x1b1   : > { %3396 = vmatpush1.bf16.msra.mxu1 %v8797_v36  ;;  %3229 = vmatprep.mubr.bf16.mxu1 %v9956_v1  ;;  %v2359_v3 = vpop.f32.mrf.mxu0  ;;  %v8806_v36 = vld [vmem:[#allocation5 + $0x8c8] ss:$48 sps:$4 sm:$0xff]   ;;  %v2514_v27 = vadd.f32 %v10092_v49, %v10177_v4 }
 0x1b2   : > { %v10179_v33 = vpop.f32.mrf.mxu1  ;;  %3397 = vmatprep.subr.bf16.mxu1 %v8802_v24  ;;  %v10182_v32 = vpack.c.bf16 %v3765_v43, %v3753_v58  ;;  %v3766_v55 = vmax.f32 %v2467_v6, 0.0  ;;  %v2471_v29 = vadd.f32 %v10065_v18, %v2358_v45  ;;  %v2360_v31 = vadd.f32 %v2359_v3, %v9978_v48  ;;  %v8811_v24 = vld [vmem:[#allocation5 + $0x56c] ss:$48 sps:$4 sm:$0xff]   ;;  %v8815_v45 = vld [vmem:[#allocation5 + $0x868] ss:$48 sps:$4 sm:$0xff]  }
 0x1b3   : > { %v2361_v1 = vpop.f32.mrf.mxu0  ;;  %v8817_v58 = vld [vmem:[#allocation5 + $0x86c] ss:$48 sps:$4 sm:$0xff]   ;;  %v8866_v16 = vld [vmem:[#allocation5 + $0x628] ss:$48 sps:$4 sm:$0xff]  }
 0x1b4   : > { %12395 = vst [vmem:[#allocation32_spill] sm:$0xff] %v10182_v32  ;;  %v10186_v57 = vpop.f32.mrf.mxu1  ;;  %v2473_v41 = vadd.f32 %v10075_v23, %v2360_v31  ;;  %v2362_v61 = vadd.f32 %v2361_v1, %v9972_v46  ;;  %v10197_v15 = vpack.c.bf16 %v3766_v55, %v3754_v59  ;;  %v8826_v3 = vld [vmem:[#allocation5 + $0x80c] ss:$48 sps:$4 sm:$0xff]   ;;  %v3777_v55 = vmax.f32 %v2471_v29, 0.0 }
 0x1b5   : > { %3398 = vmatpush1.bf16.msra.mxu1 %v8800_v40  ;;  %v2363_v18 = vpop.f32.mrf.mxu0  ;;  %v8809_v40 = vld [vmem:[#allocation5 + $0x568] ss:$48 sps:$4 sm:$0xff]   ;;  %v2518_v1 = vadd.f32 %v10106_v30, %v10177_v4  ;;  %v8820_v30 = vld [vmem:[#allocation5 + $0x4ac] ss:$48 sps:$4 sm:$0xff]  }
 0x1b6   : > { %v10195_v7 = vpop.f32.mrf.mxu1  ;;  %3399 = vmatprep.subr.bf16.mxu1 %v8805_v25  ;;  %12396 = vst [vmem:[#allocation33_spill] sm:$0xff] %v10197_v15  ;;  %v2475_v23 = vadd.f32 %v10082_v28, %v2362_v61  ;;  %v2364_v46 = vadd.f32 %v2363_v18, %v9978_v48  ;;  %v8814_v25 = vld [vmem:[#allocation5 + $0x50c] ss:$48 sps:$4 sm:$0xff]   ;;  %v2516_v48 = vadd.f32 %v10099_v0, %v10193_v60  ;;  %v3778_v61 = vmax.f32 %v2473_v41, 0.0 }
 0x1b7   : > { %v2626_v6 = vpop.f32.mrf.mxu0  ;;  %3303 = vmatmul.mubr.bf16.vlgmr.msra.gmra.mxu0 %v10207_v34 }
 0x1b8   : > { %v10203_v43 = vpop.f32.mrf.mxu1  ;;  %3230 = vmatmul.mubr.bf16.gmra.mxu1 %v9983_v54  ;;  %v3789_v49 = vmax.f32 %v2475_v23, 0.0  ;;  %v2477_v28 = vadd.f32 %v10088_v39, %v2364_v46  ;;  %v2627_v31 = vadd.f32 %v2626_v6, %v2514_v27  ;;  %3497 = vmatpush1.bf16.msra.mxu0 %v8806_v36  ;;  %v2520_v36 = vadd.f32 %v10110_v47, %v10193_v60  ;;  %v8824_v46 = vld [vmem:[#allocation5 + $0x808] ss:$48 sps:$4 sm:$0xff]  }
 0x1b9   : > { %3400 = vmatpush2.bf16.msra.mxu1 %v8803_v9  ;;  %v2628_v54 = vpop.f32.mrf.mxu0  ;;  %3239 = vmatprep.mubr.bf16.mxu1 %v9991_v10  ;;  %v8812_v10 = vld [vmem:[#allocation5 + $0x508] ss:$48 sps:$4 sm:$0xff]  }
 0x1ba   : > { %v10213_v59 = vpop.f32.mrf.mxu1  ;;  %3401 = vmatprep.subr.bf16.mxu1 %v8811_v24  ;;  %v10218_v29 = vpack.c.bf16 %v3789_v49, %v3777_v55  ;;  %v3790_v18 = vmax.f32 %v2477_v28, 0.0  ;;  %3312 = vmatprep.mubr.bf16.mxu0 %v12383_v35  ;;  %v2629_v39 = vadd.f32 %v2628_v54, %v2516_v48  ;;  %v3611_v6 = vmax.f32 %v2627_v31, 0.0  ;;  %v10237_v28 = vld [vmem:[%s9687_s7 + $0x20] ss:$12 sps:$4 sm:$0xff]   ;;  %v8818_v54 = vld [vmem:[#allocation5 + $0x4a8] ss:$48 sps:$4 sm:$0xff]  }
 0x1bb   : > { %3498 = vmatprep.subr.bf16.mxu0 %v8817_v58  ;;  %v2630_v0 = vpop.f32.mrf.mxu0  ;;  %v2524_v58 = vadd.f32 %v10116_v5, %v10177_v4 }
 0x1bc   : > { %12397 = vst [vmem:[#allocation34_spill] sm:$0xff] %v10218_v29  ;;  %v10221_v9 = vpop.f32.mrf.mxu1  ;;  %v2631_v24 = vadd.f32 %v2630_v0, %v2518_v1  ;;  %3499 = vmatpush1.bf16.msra.mxu0 %v8815_v45  ;;  %v10225_v41 = vpack.c.bf16 %v3790_v18, %v3778_v61  ;;  %v9266_v29 = vld [vmem:[%s9687_s7 + $0x1c] ss:$12 sps:$4 sm:$0xff]  }
 0x1bd   : > { %3402 = vmatpush2.bf16.msra.mxu1 %v8809_v40  ;;  %v2632_v23 = vpop.f32.mrf.mxu0  ;;  %3500 = vmatprep.subr.bf16.mxu0 %v8826_v3  ;;  %v2526_v40 = vadd.f32 %v10123_v52, %v10193_v60  ;;  %v3612_v3 = vmax.f32 %v2629_v39, 0.0  ;;  %v8823_v52 = vld [vmem:[#allocation5 + $0x44c] ss:$48 sps:$4 sm:$0xff]   ;;  %v8833_v39 = vld [vmem:[#allocation5 + $0x7a8] ss:$48 sps:$4 sm:$0xff]  }
 0x1be   : > { %12398 = vst [vmem:[#allocation35_spill] sm:$0xff] %v10225_v41  ;;  %v10227_v27 = vpop.f32.mrf.mxu1  ;;  %3403 = vmatprep.subr.bf16.mxu1 %v8814_v25  ;;  %v3623_v55 = vmax.f32 %v2631_v24, 0.0  ;;  %v2633_v47 = vadd.f32 %v2632_v23, %v2520_v36  ;;  %v8835_v25 = vld [vmem:[#allocation5 + $0x7ac] ss:$48 sps:$4 sm:$0xff]  }
 0x1bf   : > { %v2636_v49 = vpop.f32.mrf.mxu0  ;;  %3313 = vmatmul.mubr.bf16.gmra.mxu0 %v10237_v28  ;;  %v8829_v23 = vld [vmem:[#allocation5 + $0x3ec] ss:$48 sps:$4 sm:$0xff]  }
 0x1c0   : > { %v10233_v45 = vpop.f32.mrf.mxu1  ;;  %3240 = vmatmul.mubr.bf16.gmra.mxu1 %v10008_v62  ;;  %v10240_v48 = vpack.c.bf16 %v3623_v55, %v3611_v6  ;;  %v3624_v5 = vmax.f32 %v2633_v47, 0.0  ;;  %v2637_v31 = vadd.f32 %v2636_v49, %v2524_v58  ;;  %3322 = vmatprep.mubr.bf16.mxu0 %v12383_v35  ;;  %v2528_v62 = vadd.f32 %v10130_v11, %v10177_v4  ;;  %v8841_v58 = vld [vmem:[#allocation5 + $0x74c] ss:$48 sps:$4 sm:$0xff]  }
 0x1c1   : > { %3404 = vmatpush2.bf16.msra.mxu1 %v8812_v10  ;;  %3249 = vmatprep.mubr.bf16.mxu1 %v10015_v63  ;;  %v2638_v61 = vpop.f32.mrf.mxu0  ;;  %v2530_v63 = vadd.f32 %v10134_v13, %v10193_v60  ;;  %v2536_v13 = vadd.f32 %v10147_v38, %v10193_v60  ;;  %v8832_v38 = vld [vmem:[#allocation5 + $0x38c] ss:$48 sps:$4 sm:$0xff]  }
 0x1c2   : > { %12399 = vst [vmem:[#allocation36_spill] sm:$0xff] %v10240_v48  ;;  %v10243_v1 = vpop.f32.mrf.mxu1  ;;  %3405 = vmatprep.subr.bf16.mxu1 %v8820_v30  ;;  %v2639_v18 = vadd.f32 %v2638_v61, %v2526_v40  ;;  %3501 = vmatpush1.bf16.msra.mxu0 %v8824_v46  ;;  %v10248_v0 = vpack.c.bf16 %v3624_v5, %v3612_v3  ;;  %v8821_v30 = vld [vmem:[#allocation5 + $0x448] ss:$48 sps:$4 sm:$0xff]   ;;  %v3635_v55 = vmax.f32 %v2637_v31, 0.0 }
 0x1c3   : > { %v2640_v24 = vpop.f32.mrf.mxu0  ;;  %3502 = vmatprep.subr.bf16.mxu0 %v8835_v25  ;;  %v2534_v46 = vadd.f32 %v10140_v19, %v10177_v4  ;;  %v10264_v3 = vld [vmem:[%s9687_s7 + $0x38] ss:$12 sps:$4 sm:$0xff]  }
 0x1c4   : > { %12400 = vst [vmem:[#allocation37_spill] sm:$0xff] %v10248_v0  ;;  %v10250_v36 = vpop.f32.mrf.mxu1  ;;  %v2641_v10 = vadd.f32 %v2640_v24, %v2528_v62  ;;  %v8827_v5 = vld [vmem:[#allocation5 + $0x3e8] ss:$48 sps:$4 sm:$0xff]   ;;  %v12402_v62 = vld [vmem:[#allocation20_spill] sm:$0xff] }
 0x1c5   : > { %3406 = vmatpush2.bf16.msra.mxu1 %v8818_v54  ;;  %v2642_v11 = vpop.f32.mrf.mxu0  ;;  %v8839_v54 = vld [vmem:[#allocation5 + $0x748] ss:$48 sps:$4 sm:$0xff]  }
 0x1c6   : > { %v10254_v6 = vpop.f32.mrf.mxu1  ;;  %3407 = vmatprep.subr.bf16.mxu1 %v8823_v52  ;;  %v3647_v47 = vmax.f32 %v2641_v10, 0.0  ;;  %v2643_v40 = vadd.f32 %v2642_v11, %v2530_v63  ;;  %3503 = vmatpush1.bf16.msra.mxu0 %v8833_v39  ;;  %v3636_v52 = vmax.f32 %v2639_v18, 0.0  ;;  %v8850_v39 = vld [vmem:[#allocation5 + $0x6ec] ss:$48 sps:$4 sm:$0xff]  }
 0x1c7   : > { %v2646_v25 = vpop.f32.mrf.mxu0  ;;  %3323 = vmatmul.mubr.bf16.gmra.mxu0 %v10264_v3  ;;  %3504 = vmatprep.subr.bf16.mxu0 %v8841_v58  ;;  %v2544_v58 = vadd.f32 %v10168_v56, %v10177_v4 }
 0x1c8   : > { %v10260_v49 = vpop.f32.mrf.mxu1  ;;  %3250 = vmatmul.mubr.bf16.gmra.mxu1 %v10038_v14  ;;  %v10267_v19 = vpack.c.bf16 %v3647_v47, %v3635_v55  ;;  %v3648_v31 = vmax.f32 %v2643_v40, 0.0  ;;  %v2647_v61 = vadd.f32 %v2646_v25, %v2534_v46  ;;  %3332 = vmatprep.mubr.bf16.mxu0 %v12383_v35  ;;  %v2538_v14 = vadd.f32 %v10157_v42, %v10177_v4  ;;  %v8838_v47 = vld [vmem:[#allocation5 + $0x32c] ss:$48 sps:$4 sm:$0xff]   ;;  %v8848_v40 = vld [vmem:[#allocation5 + $0x6e8] ss:$48 sps:$4 sm:$0xff]  }
 0x1c9   : > { %3408 = vmatpush2.bf16.msra.mxu1 %v8821_v30  ;;  %3259 = vmatprep.mubr.bf16.mxu1 %v12402_v62  ;;  %v2648_v63 = vpop.f32.mrf.mxu0  ;;  %v2540_v46 = vadd.f32 %v10161_v2, %v10193_v60  ;;  %v2546_v2 = vadd.f32 %v10179_v33, %v10193_v60  ;;  %v10291_v62 = vld [vmem:[%s9687_s7 + $0x50] ss:$12 sps:$4 sm:$0xff]   ;;  %v8844_v33 = vld [vmem:[#allocation8 + $0xac] ss:$12 sps:$4 sm:$0xff]  }
 0x1ca   : > { %12401 = vst [vmem:[#allocation38_spill] sm:$0xff] %v10267_v19  ;;  %v10270_v24 = vpop.f32.mrf.mxu1  ;;  %3409 = vmatprep.subr.bf16.mxu1 %v8829_v23  ;;  %v2649_v10 = vadd.f32 %v2648_v63, %v2536_v13  ;;  %v10275_v18 = vpack.c.bf16 %v3648_v31, %v3636_v52  ;;  %3505 = vmatpush1.bf16.msra.mxu0 %v8839_v54  ;;  %v8830_v23 = vld [vmem:[#allocation5 + $0x388] ss:$48 sps:$4 sm:$0xff]   ;;  %v3659_v13 = vmax.f32 %v2647_v61, 0.0 }
 0x1cb   : > { %v2650_v30 = vpop.f32.mrf.mxu0  ;;  %3506 = vmatprep.subr.bf16.mxu0 %v8850_v39  ;;  %v9278_v19 = vld [vmem:[%s9687_s7 + $0x7c] ss:$12 sps:$4 sm:$0xff]  }
 0x1cc   : > { %12403 = vst [vmem:[#allocation20_spill] sm:$0xff] %v10275_v18  ;;  %v10277_v11 = vpop.f32.mrf.mxu1  ;;  %v2651_v55 = vadd.f32 %v2650_v30, %v2538_v14  ;;  %v3660_v39 = vmax.f32 %v2649_v10, 0.0  ;;  %v8836_v14 = vld [vmem:[#allocation5 + $0x328] ss:$48 sps:$4 sm:$0xff]  }
 0x1cd   : > { %3410 = vmatpush2.bf16.msra.mxu1 %v8827_v5  ;;  %v2652_v42 = vpop.f32.mrf.mxu0  ;;  %v8857_v10 = vld [vmem:[#allocation5 + $0x688] ss:$48 sps:$4 sm:$0xff]  }
 0x1ce   : > { %v10281_v25 = vpop.f32.mrf.mxu1  ;;  %3411 = vmatprep.subr.bf16.mxu1 %v8832_v38  ;;  %v3671_v52 = vmax.f32 %v2651_v55, 0.0  ;;  %v2653_v54 = vadd.f32 %v2652_v42, %v2540_v46  ;;  %v8859_v38 = vld [vmem:[#allocation5 + $0x68c] ss:$48 sps:$4 sm:$0xff]   ;;  %v2548_v55 = vadd.f32 %v10186_v57, %v10177_v4  ;;  %3507 = vmatpush1.bf16.msra.mxu0 %v8848_v40 }
 0x1cf   : > { %v2656_v5 = vpop.f32.mrf.mxu0  ;;  %3333 = vmatmul.mubr.bf16.gmra.mxu0 %v10291_v62  ;;  %3508 = vmatprep.subr.bf16.mxu0 %v8859_v38 }
 0x1d0   : > { %v10287_v31 = vpop.f32.mrf.mxu1  ;;  %3260 = vmatmul.mubr.bf16.gmra.mxu1 %v10068_v22  ;;  %v10294_v63 = vpack.c.bf16 %v3671_v52, %v3659_v13  ;;  %v3672_v56 = vmax.f32 %v2653_v54, 0.0  ;;  %v2657_v61 = vadd.f32 %v2656_v5, %v2544_v58  ;;  %3342 = vmatprep.mubr.bf16.mxu0 %v12383_v35  ;;  %v9263_v22 = vld [vmem:[%s9687_s7 + $0x4] ss:$12 sps:$4 sm:$0xff]   ;;  %v2550_v52 = vadd.f32 %v10195_v7, %v10193_v60  ;;  %v8847_v5 = vld [vmem:[#allocation8 + $0x94] ss:$12 sps:$4 sm:$0xff]  }
 0x1d1   : > { %3412 = vmatpush2.bf16.msra.mxu1 %v8830_v23  ;;  %v2658_v46 = vpop.f32.mrf.mxu0  ;;  %3415 = vmatprep.mubr.bf16.mxu1 %v9263_v22  ;;  %v8868_v22 = vld [vmem:[#allocation5 + $0x62c] ss:$48 sps:$4 sm:$0xff]   ;;  %v2556_v7 = vadd.f32 %v10213_v59, %v10193_v60  ;;  %v8853_v59 = vld [vmem:[#allocation8 + $0x7c] ss:$12 sps:$4 sm:$0xff]  }
 0x1d2   : > { %12404 = vst [vmem:[#allocation39_spill] sm:$0xff] %v10294_v63  ;;  %v10297_v30 = vpop.f32.mrf.mxu1  ;;  %3413 = vmatprep.subr.bf16.mxu1 %v8838_v47  ;;  %v2659_v42 = vadd.f32 %v2658_v46, %v2546_v2  ;;  %v10302_v13 = vpack.c.bf16 %v3672_v56, %v3660_v39  ;;  %v8842_v47 = vld [vmem:[#allocation8 + $0xa8] ss:$12 sps:$4 sm:$0xff]   ;;  %v2554_v2 = vadd.f32 %v10203_v43, %v10177_v4  ;;  %v3683_v39 = vmax.f32 %v2657_v61, 0.0 }
 0x1d3   : > { %v2660_v23 = vpop.f32.mrf.mxu0  ;;  %3509 = vmatpush1.bf16.msra.mxu0 %v8857_v10 }
 0x1d4   : > { %12405 = vst [vmem:[#allocation40_spill] sm:$0xff] %v10302_v13  ;;  %v10304_v58 = vpop.f32.mrf.mxu1  ;;  %v2661_v54 = vadd.f32 %v2660_v23, %v2548_v55  ;;  %v10317_v55 = vld [vmem:[%s9687_s7 + $0x68] ss:$12 sps:$4 sm:$0xff]   ;;  %v9265_v23 = vld [vmem:[%s9687_s7] ss:$12 sps:$4 sm:$0xff]   ;;  %v3684_v43 = vmax.f32 %v2659_v42, 0.0  ;;  %3510 = vmatprep.subr.bf16.mxu0 %v8868_v22  ;;  %v2564_v22 = vadd.f32 %v10233_v45, %v10177_v4 }
 0x1d5   : > { %3414 = vmatpush2.bf16.msra.mxu1 %v8836_v14  ;;  %v2662_v40 = vpop.f32.mrf.mxu0  ;;  %v2588_v32 = vadd.f32 %v10304_v58, %v10177_v4  ;;  %v8883_v58 = vld [vmem:[#allocation8 + $0x154] ss:$12 sps:$4 sm:$0xff]   ;;  %v8884_v13 = vld [vmem:[#allocation8 + $0x210] ss:$12 sps:$4 sm:$0xff]  }
 0x1d6   : > { %v10308_v57 = vpop.f32.mrf.mxu1  ;;  %5834 = vmatprep.subr.bf16.mxu1 %v8844_v33  ;;  %v3695_v56 = vmax.f32 %v2661_v54, 0.0  ;;  %v2663_v38 = vadd.f32 %v2662_v40, %v2550_v52  ;;  %v8845_v33 = vld [vmem:[#allocation8 + $0x90] ss:$12 sps:$4 sm:$0xff]   ;;  %v8880_v54 = vld [vmem:[#allocation8 + $0x22c] ss:$12 sps:$4 sm:$0xff]  }
 0x1d7   : > { %v2666_v46 = vpop.f32.mrf.mxu0  ;;  %3343 = vmatmul.mubr.bf16.gmra.mxu0 %v10317_v55 }
 0x1d8   : > { %v10314_v14 = vpop.f32.mrf.mxu1  ;;  %3416 = vmatmul.mubr.bf16.vlgmr.msra.gmra.mxu1 %v9265_v23  ;;  %v10321_v61 = vpack.c.bf16 %v3695_v56, %v3683_v39  ;;  %v3696_v52 = vmax.f32 %v2663_v38, 0.0  ;;  %v2667_v10 = vadd.f32 %v2666_v46, %v2554_v2  ;;  %3352 = vmatprep.mubr.bf16.mxu0 %v12383_v35  ;;  %v2558_v23 = vadd.f32 %v10221_v9, %v10177_v4 }
 0x1d9   : > { %5835 = vmatpush1.bf16.msra.mxu1 %v8842_v47  ;;  %v2668_v40 = vpop.f32.mrf.mxu0  ;;  %3425 = vmatprep.mubr.bf16.mxu1 %v9266_v29  ;;  %v2560_v47 = vadd.f32 %v10227_v27, %v10193_v60  ;;  %v8856_v29 = vld [vmem:[#allocation8 + $0x64] ss:$12 sps:$4 sm:$0xff]   ;;  %v2566_v27 = vadd.f32 %v10243_v1, %v10193_v60  ;;  %v8862_v1 = vld [vmem:[#allocation8 + $0x4c] ss:$12 sps:$4 sm:$0xff]  }
 0x1da   : > { %12406 = vst [vmem:[#allocation41_spill] sm:$0xff] %v10321_v61  ;;  %v10324_v8 = vpop.f32.mrf.mxu1  ;;  %5836 = vmatprep.subr.bf16.mxu1 %v8847_v5  ;;  %v2669_v41 = vadd.f32 %v2668_v40, %v2556_v7  ;;  %v10329_v42 = vpack.c.bf16 %v3696_v52, %v3684_v43  ;;  %3511 = vmatpush1.bf16.msra.mxu0 %v8866_v16  ;;  %v8851_v5 = vld [vmem:[#allocation8 + $0x78] ss:$12 sps:$4 sm:$0xff]   ;;  %v3707_v7 = vmax.f32 %v2667_v10, 0.0 }
 0x1db   : > { %v2670_v39 = vpop.f32.mrf.mxu0  ;;  %5947 = vmatprep.subr.bf16.mxu0 %v8880_v54  ;;  %v9268_v54 = vld [vmem:[%s9687_s7 + $0x18] ss:$12 sps:$4 sm:$0xff]   ;;  %v2578_v61 = vadd.f32 %v10277_v11, %v10177_v4  ;;  %v2584_v11 = vadd.f32 %v10287_v31, %v10177_v4 }
 0x1dc   : > { %12407 = vst [vmem:[#allocation42_spill] sm:$0xff] %v10329_v42  ;;  %v10331_v2 = vpop.f32.mrf.mxu1  ;;  %v2671_v56 = vadd.f32 %v2670_v39, %v2558_v23  ;;  %v8854_v23 = vld [vmem:[#allocation8 + $0x60] ss:$12 sps:$4 sm:$0xff]  }
 0x1dd   : > { %5837 = vmatpush1.bf16.msra.mxu1 %v8845_v33  ;;  %v2672_v38 = vpop.f32.mrf.mxu0  ;;  %v10344_v33 = vld [vmem:[%s9687_s7 + $0x80] ss:$12 sps:$4 sm:$0xff]  }
 0x1de   : > { %v10335_v9 = vpop.f32.mrf.mxu1  ;;  %5838 = vmatprep.subr.bf16.mxu1 %v8853_v59  ;;  %v3719_v46 = vmax.f32 %v2671_v56, 0.0  ;;  %v2673_v16 = vadd.f32 %v2672_v38, %v2560_v47  ;;  %v3708_v59 = vmax.f32 %v2669_v41, 0.0  ;;  %v9269_v56 = vld [vmem:[%s9687_s7 + $0x34] ss:$12 sps:$4 sm:$0xff]   ;;  %v2568_v38 = vadd.f32 %v10250_v36, %v10177_v4 }
 0x1df   : > { %v2676_v43 = vpop.f32.mrf.mxu0  ;;  %3353 = vmatmul.mubr.bf16.gmra.mxu0 %v10344_v33  ;;  %v2574_v36 = vadd.f32 %v10260_v49, %v10177_v4  ;;  %v8878_v4 = vld [vmem:[#allocation8 + $0x228] ss:$12 sps:$4 sm:$0xff]  }
 0x1e0   : > { %v10341_v52 = vpop.f32.mrf.mxu1  ;;  %3426 = vmatmul.mubr.bf16.gmra.mxu1 %v9268_v54  ;;  %v10348_v40 = vpack.c.bf16 %v3719_v46, %v3707_v7  ;;  %v3720_v45 = vmax.f32 %v2673_v16, 0.0  ;;  %v2677_v10 = vadd.f32 %v2676_v43, %v2564_v22  ;;  %3362 = vmatprep.mubr.bf16.mxu0 %v12383_v35  ;;  %v8860_v16 = vld [vmem:[#allocation8 + $0x48] ss:$12 sps:$4 sm:$0xff]  }
 0x1e1   : > { %5839 = vmatpush1.bf16.msra.mxu1 %v8851_v5  ;;  %v2678_v39 = vpop.f32.mrf.mxu0  ;;  %3435 = vmatprep.mubr.bf16.mxu1 %v9269_v56  ;;  %v2570_v5 = vadd.f32 %v10254_v6, %v10193_v60 }
 0x1e2   : > { %12408 = vst [vmem:[#allocation43_spill] sm:$0xff] %v10348_v40  ;;  %v10351_v47 = vpop.f32.mrf.mxu1  ;;  %5840 = vmatprep.subr.bf16.mxu1 %v8856_v29  ;;  %v2679_v54 = vadd.f32 %v2678_v39, %v2566_v27  ;;  %v10356_v41 = vpack.c.bf16 %v3720_v45, %v3708_v59  ;;  %v8865_v29 = vld [vmem:[#allocation8 + $0x34] ss:$12 sps:$4 sm:$0xff]   ;;  %v3731_v27 = vmax.f32 %v2677_v10, 0.0  ;;  %v2576_v39 = vadd.f32 %v10270_v24, %v10193_v60  ;;  %v8871_v24 = vld [vmem:[#allocation8 + $0x1c] ss:$12 sps:$4 sm:$0xff]  }
 0x1e3   : > { %v2680_v7 = vpop.f32.mrf.mxu0 }
 0x1e4   : > { %12409 = vst [vmem:[#allocation44_spill] sm:$0xff] %v10356_v41  ;;  %v10358_v46 = vpop.f32.mrf.mxu1  ;;  %v2681_v22 = vadd.f32 %v2680_v7, %v2568_v38  ;;  %v9271_v38 = vld [vmem:[%s9687_s7 + $0x30] ss:$12 sps:$4 sm:$0xff]   ;;  %v9272_v41 = vld [vmem:[%s9687_s7 + $0x4c] ss:$12 sps:$4 sm:$0xff]  }
 0x1e5   : > { %5841 = vmatpush1.bf16.msra.mxu1 %v8854_v23  ;;  %v2682_v43 = vpop.f32.mrf.mxu0  ;;  %v10371_v23 = vld [vmem:[%s9687_s7 + $0x98] ss:$12 sps:$4 sm:$0xff]  }
 0x1e6   : > { %v10362_v56 = vpop.f32.mrf.mxu1  ;;  %5842 = vmatprep.subr.bf16.mxu1 %v8862_v1  ;;  %v3743_v59 = vmax.f32 %v2681_v22, 0.0  ;;  %v2683_v45 = vadd.f32 %v2682_v43, %v2570_v5  ;;  %v3732_v1 = vmax.f32 %v2679_v54, 0.0  ;;  %v8863_v5 = vld [vmem:[#allocation8 + $0x30] ss:$12 sps:$4 sm:$0xff]  }
 0x1e7   : > { %v2686_v40 = vpop.f32.mrf.mxu0  ;;  %3363 = vmatmul.mubr.bf16.gmra.mxu0 %v10371_v23 }
 0x1e8   : > { %v10368_v6 = vpop.f32.mrf.mxu1  ;;  %3436 = vmatmul.mubr.bf16.gmra.mxu1 %v9271_v38  ;;  %v10375_v7 = vpack.c.bf16 %v3743_v59, %v3731_v27  ;;  %v3744_v49 = vmax.f32 %v2683_v45, 0.0  ;;  %v2687_v10 = vadd.f32 %v2686_v40, %v2574_v36  ;;  %3372 = vmatprep.mubr.bf16.mxu0 %v12383_v35  ;;  %v2580_v40 = vadd.f32 %v10281_v25, %v10193_v60 }
 0x1e9   : > { %5843 = vmatpush1.bf16.msra.mxu1 %v8860_v16  ;;  %v2688_v22 = vpop.f32.mrf.mxu0  ;;  %3445 = vmatprep.mubr.bf16.mxu1 %v9272_v41  ;;  %v643_v16 = vsub.s32 4, %v9939_v26  ;;  %v8874_v41 = vld [vmem:[#allocation8 + $0x4] ss:$12 sps:$4 sm:$0xff]   ;;  %v2586_v25 = vadd.f32 %v10297_v30, %v10193_v60  ;;  %v8877_v30 = vld [vmem:[#allocation8 + $0x16c] ss:$12 sps:$4 sm:$0xff]  }
 0x1ea   : > { %12410 = vst [vmem:[#allocation45_spill] sm:$0xff] %v10375_v7  ;;  %v10378_v43 = vpop.f32.mrf.mxu1  ;;  %5844 = vmatprep.subr.bf16.mxu1 %v8865_v29  ;;  %v2689_v38 = vadd.f32 %v2688_v22, %v2576_v39  ;;  %v10383_v54 = vpack.c.bf16 %v3744_v49, %v3732_v1  ;;  %v8869_v29 = vld [vmem:[#allocation8 + $0x18] ss:$12 sps:$4 sm:$0xff]   ;;  %v3755_v39 = vmax.f32 %v2687_v10, 0.0 }
 0x1eb   : > { %v2690_v27 = vpop.f32.mrf.mxu0 }
 0x1ec   : > { %12411 = vst [vmem:[#allocation46_spill] sm:$0xff] %v10383_v54  ;;  %v10385_v59 = vpop.f32.mrf.mxu1  ;;  %v2691_v36 = vadd.f32 %v2690_v27, %v2578_v61  ;;  %v647_v61 = vsub.s32 5, %v9939_v26  ;;  %v10400_v27 = vld [vmem:[%s9687_s7 + $0xb0] ss:$12 sps:$4 sm:$0xff]   ;;  %v3756_v54 = vmax.f32 %v2689_v38, 0.0 }
 0x1ed   : > { %5845 = vmatpush1.bf16.msra.mxu1 %v8863_v5  ;;  %v2692_v45 = vpop.f32.mrf.mxu0 }
 0x1ee   : > { %v10390_v7 = vpop.f32.mrf.mxu1  ;;  %5846 = vmatprep.subr.bf16.mxu1 %v8871_v24  ;;  %v3767_v1 = vmax.f32 %v2691_v36, 0.0  ;;  %v2693_v49 = vadd.f32 %v2692_v45, %v2580_v40  ;;  %v9274_v24 = vld [vmem:[%s9687_s7 + $0x48] ss:$12 sps:$4 sm:$0xff]   ;;  %v8872_v40 = vld [vmem:[#allocation8] ss:$12 sps:$4 sm:$0xff]  }
 0x1ef   : > { %v2696_v5 = vpop.f32.mrf.mxu0  ;;  %3373 = vmatmul.mubr.bf16.gmra.mxu0 %v10400_v27  ;;  %v9275_v45 = vld [vmem:[%s9687_s7 + $0x64] ss:$12 sps:$4 sm:$0xff]  }
 0x1f0   : > { %v10397_v22 = vpop.f32.mrf.mxu1  ;;  %3446 = vmatmul.mubr.bf16.gmra.mxu1 %v9274_v24  ;;  %v10404_v31 = vpack.c.bf16 %v3767_v1, %v3755_v39  ;;  %v3768_v10 = vmax.f32 %v2693_v49, 0.0  ;;  %v2697_v36 = vadd.f32 %v2696_v5, %v2584_v11  ;;  %3528 = vmatprep.mubr.bf16.mxu0 %v12383_v35  ;;  %v10412_v24 = vld [vmem:[#allocation7] sm:$0xff]  ;;  %v2590_v5 = vadd.f32 %v10308_v57, %v10193_v60 }
 0x1f1   : > { %5847 = vmatpush1.bf16.msra.mxu1 %v8869_v29  ;;  %3455 = vmatprep.mubr.bf16.mxu1 %v9275_v45  ;;  %v2698_v42 = vpop.f32.mrf.mxu0  ;;  %v10415_v38 = vrot.slane %v10412_v24, %v643_v16  ;;  %v10420_v39 = vrot.slane %v10412_v24, %v647_v61  ;;  %v8886_v16 = vld [vmem:[#allocation8 + $0x214] ss:$12 sps:$4 sm:$0xff]  }
 0x1f2   : > { %12412 = vst [vmem:[#allocation47_spill] sm:$0xff] %v10404_v31  ;;  %v10407_v63 = vpop.f32.mrf.mxu1  ;;  %5848 = vmatprep.subr.bf16.mxu1 %v8874_v41  ;;  %v2699_v11 = vadd.f32 %v2698_v42, %v2586_v25  ;;  %v10417_v29 = vpack.c.bf16 %v3768_v10, %v3756_v54  ;;  %v8875_v41 = vld [vmem:[#allocation8 + $0x168] ss:$12 sps:$4 sm:$0xff]   ;;  %v3779_v25 = vmax.f32 %v2697_v36, 0.0 }
 0x1f3   : > { %v2700_v1 = vpop.f32.mrf.mxu0  ;;  %v2740_v54 = vadd.f32 %v10314_v14, %v10415_v38 }
 0x1f4   : > { %12413 = vst [vmem:[#allocation48_spill] sm:$0xff] %v10417_v29  ;;  %v10422_v49 = vpop.f32.mrf.mxu1  ;;  %v2701_v45 = vadd.f32 %v2700_v1, %v2588_v32  ;;  %v8881_v29 = vld [vmem:[#allocation8 + $0x150] ss:$12 sps:$4 sm:$0xff]   ;;  %v2742_v32 = vadd.f32 %v10324_v8, %v10420_v39  ;;  %v3780_v1 = vmax.f32 %v2699_v11, 0.0 }
 0x1f5   : > { %5849 = vmatpush1.bf16.msra.mxu1 %v8872_v40  ;;  %v2702_v31 = vpop.f32.mrf.mxu0  ;;  %v9277_v40 = vld [vmem:[%s9687_s7 + $0x60] ss:$12 sps:$4 sm:$0xff]  }
 0x1f6   : > { %v10426_v42 = vpop.f32.mrf.mxu1  ;;  %5850 = vmatprep.subr.bf16.mxu1 %v8877_v30  ;;  %v3791_v61 = vmax.f32 %v2701_v45, 0.0  ;;  %v2703_v10 = vadd.f32 %v2702_v31, %v2590_v5  ;;  %v8889_v30 = vld [vmem:[#allocation8 + $0x13c] ss:$12 sps:$4 sm:$0xff]   ;;  %v2744_v45 = vadd.f32 %v10331_v2, %v10415_v38  ;;  %v8895_v2 = vld [vmem:[#allocation8 + $0x124] ss:$12 sps:$4 sm:$0xff]  }
 0x1f7   : > { %v2852_v57 = vpop.f32.mrf.mxu0  ;;  %3529 = vmatmul.mubr.bf16.vlgmr.msra.gmra.mxu0 %v10207_v34  ;;  %v8892_v31 = vld [vmem:[#allocation8 + $0x1fc] ss:$12 sps:$4 sm:$0xff]   ;;  %v8887_v34 = vld [vmem:[#allocation8 + $0x138] ss:$12 sps:$4 sm:$0xff]  }
 0x1f8   : > { %v10432_v60 = vpop.f32.mrf.mxu1  ;;  %3456 = vmatmul.mubr.bf16.gmra.mxu1 %v9277_v40  ;;  %v10436_v15 = vpack.c.bf16 %v3791_v61, %v3779_v25  ;;  %v3792_v14 = vmax.f32 %v2703_v10, 0.0  ;;  %v2853_v36 = vadd.f32 %v2852_v57, %v2740_v54  ;;  %5948 = vmatpush1.bf16.msra.mxu0 %v8878_v4  ;;  %v8890_v4 = vld [vmem:[#allocation8 + $0x1f8] ss:$12 sps:$4 sm:$0xff]   ;;  %v2746_v25 = vadd.f32 %v10335_v9, %v10420_v39 }
 0x1f9   : > { %5851 = vmatpush2.bf16.msra.mxu1 %v8875_v41  ;;  %v2854_v8 = vpop.f32.mrf.mxu0  ;;  %5949 = vmatprep.subr.bf16.mxu0 %v8886_v16  ;;  %v8898_v16 = vld [vmem:[#allocation8 + $0x1e4] ss:$12 sps:$4 sm:$0xff]   ;;  %v2750_v10 = vadd.f32 %v10341_v52, %v10415_v38  ;;  %v2752_v9 = vadd.f32 %v10351_v47, %v10420_v39 }
 0x1fa   : > { %12414 = vst [vmem:[#allocation49_spill] sm:$0xff] %v10436_v15  ;;  %v10438_v5 = vpop.f32.mrf.mxu1  ;;  %5852 = vmatprep.subr.bf16.mxu1 %v8883_v58  ;;  %v2855_v40 = vadd.f32 %v2854_v8, %v2742_v32  ;;  %3465 = vmatprep.mubr.bf16.mxu1 %v9278_v19  ;;  %v10444_v11 = vpack.c.bf16 %v3792_v14, %v3780_v1  ;;  %v3613_v32 = vmax.f32 %v2853_v36, 0.0  ;;  %v8893_v14 = vld [vmem:[#allocation8 + $0x120] ss:$12 sps:$4 sm:$0xff]   ;;  %v9280_v15 = vld [vmem:[%s9687_s7 + $0x94] ss:$12 sps:$4 sm:$0xff]  }
 0x1fb   : > { %3538 = vmatprep.mubr.bf16.mxu0 %v12383_v35  ;;  %v2856_v41 = vpop.f32.mrf.mxu0  ;;  %v8896_v8 = vld [vmem:[#allocation8 + $0x1e0] ss:$12 sps:$4 sm:$0xff]  }
 0x1fc   : > { %12415 = vst [vmem:[#allocation50_spill] sm:$0xff] %v10444_v11  ;;  %v10446_v54 = vpop.f32.mrf.mxu1  ;;  %v2857_v58 = vadd.f32 %v2856_v41, %v2744_v45  ;;  %5950 = vmatpush1.bf16.msra.mxu0 %v8884_v13  ;;  %v9279_v45 = vld [vmem:[%s9687_s7 + $0x78] ss:$12 sps:$4 sm:$0xff]  }
 0x1fd   : > { %5853 = vmatpush2.bf16.msra.mxu1 %v8881_v29  ;;  %v2858_v19 = vpop.f32.mrf.mxu0  ;;  %5951 = vmatprep.subr.bf16.mxu0 %v8892_v31  ;;  %v3614_v31 = vmax.f32 %v2855_v40, 0.0 }
 0x1fe   : > { %v10450_v61 = vpop.f32.mrf.mxu1  ;;  %5854 = vmatprep.subr.bf16.mxu1 %v8889_v30  ;;  %v3625_v57 = vmax.f32 %v2857_v58, 0.0  ;;  %v2859_v1 = vadd.f32 %v2858_v19, %v2746_v25  ;;  %v8901_v30 = vld [vmem:[#allocation8 + $0x10c] ss:$12 sps:$4 sm:$0xff]   ;;  %v2754_v19 = vadd.f32 %v10358_v46, %v10415_v38  ;;  %v8907_v46 = vld [vmem:[#allocation8 + $0xf4] ss:$12 sps:$4 sm:$0xff]  }
 0x1ff   : > { %v2862_v29 = vpop.f32.mrf.mxu0  ;;  %3539 = vmatmul.mubr.bf16.gmra.mxu0 %v10237_v28  ;;  %v8904_v25 = vld [vmem:[#allocation8 + $0x1cc] ss:$12 sps:$4 sm:$0xff]  }
 0x200   : > { %v10456_v13 = vpop.f32.mrf.mxu1  ;;  %3466 = vmatmul.mubr.bf16.gmra.mxu1 %v9279_v45  ;;  %v10460_v41 = vpack.c.bf16 %v3625_v57, %v3613_v32  ;;  %v3626_v52 = vmax.f32 %v2859_v1, 0.0  ;;  %v2863_v36 = vadd.f32 %v2862_v29, %v2750_v10  ;;  %5952 = vmatpush1.bf16.msra.mxu0 %v8890_v4  ;;  %v8899_v4 = vld [vmem:[#allocation8 + $0x108] ss:$12 sps:$4 sm:$0xff]   ;;  %v2756_v10 = vadd.f32 %v10362_v56, %v10420_v39 }
 0x201   : > { %5855 = vmatpush2.bf16.msra.mxu1 %v8887_v34  ;;  %v2864_v47 = vpop.f32.mrf.mxu0  ;;  %5953 = vmatprep.subr.bf16.mxu0 %v8898_v16  ;;  %v8910_v57 = vld [vmem:[#allocation8 + $0x1b4] ss:$12 sps:$4 sm:$0xff]   ;;  %v2760_v1 = vadd.f32 %v10368_v6, %v10415_v38  ;;  %v2762_v56 = vadd.f32 %v10378_v43, %v10420_v39 }
 0x202   : > { %12416 = vst [vmem:[#allocation51_spill] sm:$0xff] %v10460_v41  ;;  %v10462_v58 = vpop.f32.mrf.mxu1  ;;  %5856 = vmatprep.subr.bf16.mxu1 %v8895_v2  ;;  %v2865_v45 = vadd.f32 %v2864_v47, %v2752_v9  ;;  %3475 = vmatprep.mubr.bf16.mxu1 %v9280_v15  ;;  %v10468_v28 = vpack.c.bf16 %v3626_v52, %v3614_v31  ;;  %v8902_v2 = vld [vmem:[#allocation8 + $0x1c8] ss:$12 sps:$4 sm:$0xff]   ;;  %v3637_v9 = vmax.f32 %v2863_v36, 0.0  ;;  %v8905_v52 = vld [vmem:[#allocation8 + $0xf0] ss:$12 sps:$4 sm:$0xff]  }
 0x203   : > { %3548 = vmatprep.mubr.bf16.mxu0 %v12383_v35  ;;  %v2866_v34 = vpop.f32.mrf.mxu0  ;;  %v9281_v47 = vld [vmem:[%s9687_s7 + $0x90] ss:$12 sps:$4 sm:$0xff]  }
 0x204   : > { %12417 = vst [vmem:[#allocation52_spill] sm:$0xff] %v10468_v28  ;;  %v10470_v40 = vpop.f32.mrf.mxu1  ;;  %v2867_v32 = vadd.f32 %v2866_v34, %v2754_v19  ;;  %5954 = vmatpush1.bf16.msra.mxu0 %v8896_v8  ;;  %v8913_v34 = vld [vmem:[#allocation8 + $0xdc] ss:$12 sps:$4 sm:$0xff]  }
 0x205   : > { %5857 = vmatpush2.bf16.msra.mxu1 %v8893_v14  ;;  %v2868_v15 = vpop.f32.mrf.mxu0  ;;  %5955 = vmatprep.subr.bf16.mxu0 %v8904_v25  ;;  %v3638_v25 = vmax.f32 %v2865_v45, 0.0 }
 0x206   : > { %v10474_v16 = vpop.f32.mrf.mxu1  ;;  %5858 = vmatprep.subr.bf16.mxu1 %v8901_v30  ;;  %v3649_v29 = vmax.f32 %v2867_v32, 0.0  ;;  %v2869_v31 = vadd.f32 %v2868_v15, %v2756_v10  ;;  %v8908_v30 = vld [vmem:[#allocation8 + $0x1b0] ss:$12 sps:$4 sm:$0xff]   ;;  %v2764_v15 = vadd.f32 %v10385_v59, %v10415_v38 }
 0x207   : > { %v2872_v8 = vpop.f32.mrf.mxu0  ;;  %3549 = vmatmul.mubr.bf16.gmra.mxu0 %v10264_v3  ;;  %v8916_v32 = vld [vmem:[#allocation8 + $0x19c] ss:$12 sps:$4 sm:$0xff]  }
 0x208   : > { %v10480_v14 = vpop.f32.mrf.mxu1  ;;  %3476 = vmatmul.mubr.bf16.gmra.mxu1 %v9281_v47  ;;  %v10484_v19 = vpack.c.bf16 %v3649_v29, %v3637_v9  ;;  %v3650_v6 = vmax.f32 %v2869_v31, 0.0  ;;  %v2873_v36 = vadd.f32 %v2872_v8, %v2760_v1  ;;  %5956 = vmatpush1.bf16.msra.mxu0 %v8902_v2  ;;  %v9282_v47 = vld [vmem:[%s9687_s7 + $0xac] ss:$12 sps:$4 sm:$0xff]   ;;  %v2766_v2 = vadd.f32 %v10390_v7, %v10420_v39  ;;  %v8919_v31 = vld [vmem:[#allocation8 + $0xc4] ss:$12 sps:$4 sm:$0xff]  }
 0x209   : > { %5859 = vmatpush2.bf16.msra.mxu1 %v8899_v4  ;;  %v2874_v43 = vpop.f32.mrf.mxu0  ;;  %5957 = vmatprep.subr.bf16.mxu0 %v8910_v57  ;;  %v8914_v57 = vld [vmem:[#allocation8 + $0x198] ss:$12 sps:$4 sm:$0xff]   ;;  %v2772_v7 = vadd.f32 %v10407_v63, %v10420_v39 }
 0x20a   : > { %12418 = vst [vmem:[#allocation53_spill] sm:$0xff] %v10484_v19  ;;  %v10486_v10 = vpop.f32.mrf.mxu1  ;;  %5860 = vmatprep.subr.bf16.mxu1 %v8907_v46  ;;  %v2875_v3 = vadd.f32 %v2874_v43, %v2762_v56  ;;  %3485 = vmatprep.mubr.bf16.mxu1 %v9282_v47  ;;  %v10492_v45 = vpack.c.bf16 %v3650_v6, %v3638_v25  ;;  %v8911_v46 = vld [vmem:[#allocation8 + $0xd8] ss:$12 sps:$4 sm:$0xff]   ;;  %v3661_v8 = vmax.f32 %v2873_v36, 0.0  ;;  %v8917_v36 = vld [vmem:[#allocation8 + $0xc0] ss:$12 sps:$4 sm:$0xff]  }
 0x20b   : > { %3558 = vmatprep.mubr.bf16.mxu0 %v12383_v35  ;;  %v2876_v4 = vpop.f32.mrf.mxu0  ;;  %v2770_v56 = vadd.f32 %v10397_v22, %v10415_v38  ;;  %v8922_v43 = vld [vmem:[#allocation8 + $0x184] ss:$12 sps:$4 sm:$0xff]   ;;  %v12421_v22 = vld [vmem:[#allocation19_spill] sm:$0xff] }
 0x20c   : > { %12419 = vst [vmem:[#allocation54_spill] sm:$0xff] %v10492_v45  ;;  %v10494_v1 = vpop.f32.mrf.mxu1  ;;  %v2877_v9 = vadd.f32 %v2876_v4, %v2764_v15  ;;  %5958 = vmatpush1.bf16.msra.mxu0 %v8908_v30  ;;  %v9283_v15 = vld [vmem:[%s9687_s7 + $0xa8] ss:$12 sps:$4 sm:$0xff]  }
 0x20d   : > { %5861 = vmatpush2.bf16.msra.mxu1 %v8905_v52  ;;  %v2878_v29 = vpop.f32.mrf.mxu0  ;;  %5959 = vmatprep.subr.bf16.mxu0 %v8916_v32 }
 0x20e   : > { %v10498_v59 = vpop.f32.mrf.mxu1  ;;  %5862 = vmatprep.subr.bf16.mxu1 %v8913_v34  ;;  %v3673_v25 = vmax.f32 %v2877_v9, 0.0  ;;  %v2879_v6 = vadd.f32 %v2878_v29, %v2766_v2  ;;  %v3662_v34 = vmax.f32 %v2875_v3, 0.0  ;;  %v8920_v9 = vld [vmem:[#allocation8 + $0x180] ss:$12 sps:$4 sm:$0xff]  }
 0x20f   : > { %v2882_v30 = vpop.f32.mrf.mxu0  ;;  %3559 = vmatmul.mubr.bf16.gmra.mxu0 %v10291_v62  ;;  %v8928_v29 = vld [vmem:[#allocation8 + $0x3ac] ss:$12 sps:$4 sm:$0xff]  }
 0x210   : > { %v10504_v52 = vpop.f32.mrf.mxu1  ;;  %3486 = vmatmul.mubr.bf16.gmra.mxu1 %v9283_v15  ;;  %v10508_v32 = vpack.c.bf16 %v3673_v25, %v3661_v8  ;;  %v3674_v47 = vmax.f32 %v2879_v6, 0.0  ;;  %v2883_v4 = vadd.f32 %v2882_v30, %v2770_v56  ;;  %5960 = vmatpush1.bf16.msra.mxu0 %v8914_v57  ;;  %v2774_v15 = vadd.f32 %v10422_v49, %v10415_v38  ;;  %v8925_v3 = vld [vmem:[#allocation8 + $0x2ec] ss:$12 sps:$4 sm:$0xff]  }
 0x211   : > { %5863 = vmatpush2.bf16.msra.mxu1 %v8911_v46  ;;  %5866 = vmatprep.mubr.bf16.mxu1 %v12421_v22  ;;  %v2884_v63 = vpop.f32.mrf.mxu0  ;;  %v2776_v57 = vadd.f32 %v10426_v42, %v10420_v39  ;;  %v2780_v30 = vadd.f32 %v10432_v60, %v10415_v38  ;;  %v8931_v22 = vld [vmem:[#allocation8 + $0x2d4] ss:$12 sps:$4 sm:$0xff]   ;;  %v2782_v42 = vadd.f32 %v10438_v5, %v10420_v39  ;;  %v8929_v5 = vld [vmem:[#allocation8 + $0x2d0] ss:$12 sps:$4 sm:$0xff]  }
 0x212   : > { %12420 = vst [vmem:[#allocation55_spill] sm:$0xff] %v10508_v32  ;;  %v10511_v2 = vpop.f32.mrf.mxu1  ;;  %5864 = vmatprep.subr.bf16.mxu1 %v8919_v31  ;;  %v2885_v62 = vadd.f32 %v2884_v63, %v2772_v7  ;;  %5961 = vmatprep.subr.bf16.mxu0 %v8922_v43  ;;  %v10516_v56 = vpack.c.bf16 %v3674_v47, %v3662_v34  ;;  %v8926_v31 = vld [vmem:[#allocation8 + $0x3a8] ss:$12 sps:$4 sm:$0xff]   ;;  %v3685_v34 = vmax.f32 %v2883_v4, 0.0  ;;  %v8932_v4 = vld [vmem:[#allocation8 + $0x390] ss:$12 sps:$4 sm:$0xff]  }
 0x213   : > { %3568 = vmatprep.mubr.bf16.mxu0 %v12383_v35  ;;  %v2886_v8 = vpop.f32.mrf.mxu0  ;;  %v8923_v7 = vld [vmem:[#allocation8 + $0x2e8] ss:$12 sps:$4 sm:$0xff]  }
 0x214   : > { %12422 = vst [vmem:[#allocation56_spill] sm:$0xff] %v10516_v56  ;;  %v10518_v46 = vpop.f32.mrf.mxu1  ;;  %v2887_v25 = vadd.f32 %v2886_v8, %v2774_v15  ;;  %5962 = vmatpush1.bf16.msra.mxu0 %v8920_v9  ;;  %v8934_v43 = vld [vmem:[#allocation8 + $0x394] ss:$12 sps:$4 sm:$0xff]  }
 0x215   : > { %5865 = vmatpush2.bf16.msra.mxu1 %v8917_v36  ;;  %v2888_v49 = vpop.f32.mrf.mxu0  ;;  %5963 = vmatprep.subr.bf16.mxu0 %v8925_v3  ;;  %v12423_v9 = vld [vmem:[#allocation18_spill] sm:$0xff] }
 0x216   : > { %v10522_v6 = vpop.f32.mrf.mxu1  ;;  %6060 = vmatprep.subr.bf16.mxu1 %v8928_v29  ;;  %v3697_v47 = vmax.f32 %v2887_v25, 0.0  ;;  %v2889_v63 = vadd.f32 %v2888_v49, %v2776_v57  ;;  %v3686_v29 = vmax.f32 %v2885_v62, 0.0  ;;  %v8940_v25 = vld [vmem:[#allocation8 + $0x37c] ss:$12 sps:$4 sm:$0xff]  }
 0x217   : > { %v2892_v36 = vpop.f32.mrf.mxu0  ;;  %3569 = vmatmul.mubr.bf16.gmra.mxu0 %v10317_v55  ;;  %v2784_v55 = vadd.f32 %v10446_v54, %v10415_v38  ;;  %v8937_v62 = vld [vmem:[#allocation8 + $0x2bc] ss:$12 sps:$4 sm:$0xff]   ;;  %v8935_v54 = vld [vmem:[#allocation8 + $0x2b8] ss:$12 sps:$4 sm:$0xff]  }
 0x218   : > { %v10528_v15 = vpop.f32.mrf.mxu1  ;;  %5867 = vmatmul.mubr.bf16.vlgmr.msra.gmra.mxu1 %v12423_v9  ;;  %v10532_v8 = vpack.c.bf16 %v3697_v47, %v3685_v34  ;;  %v3698_v11 = vmax.f32 %v2889_v63, 0.0  ;;  %v2893_v60 = vadd.f32 %v2892_v36, %v2780_v30  ;;  %5964 = vmatpush2.bf16.msra.mxu0 %v8923_v7  ;;  %v2786_v7 = vadd.f32 %v10450_v61, %v10420_v39 }
 0x219   : > { %5876 = vmatprep.mubr.bf16.mxu1 %v10059_v21  ;;  %6061 = vmatpush1.bf16.msra.mxu1 %v8926_v31  ;;  %v2894_v3 = vpop.f32.mrf.mxu0  ;;  %v8943_v21 = vld [vmem:[#allocation8 + $0x2a4] ss:$12 sps:$4 sm:$0xff]   ;;  %v2792_v61 = vadd.f32 %v10462_v58, %v10420_v39  ;;  %v8941_v58 = vld [vmem:[#allocation8 + $0x2a0] ss:$12 sps:$4 sm:$0xff]  }
 0x21a   : > { %12424 = vst [vmem:[#allocation57_spill] sm:$0xff] %v10532_v8  ;;  %v10535_v57 = vpop.f32.mrf.mxu1  ;;  %6062 = vmatprep.subr.bf16.mxu1 %v8934_v43  ;;  %v2895_v49 = vadd.f32 %v2894_v3, %v2782_v42  ;;  %5965 = vmatprep.subr.bf16.mxu0 %v8931_v22  ;;  %v10540_v30 = vpack.c.bf16 %v3698_v11, %v3686_v29  ;;  %v8938_v43 = vld [vmem:[#allocation8 + $0x378] ss:$12 sps:$4 sm:$0xff]   ;;  %v3709_v42 = vmax.f32 %v2893_v60, 0.0  ;;  %v8944_v60 = vld [vmem:[#allocation8 + $0x360] ss:$12 sps:$4 sm:$0xff]  }
 0x21b   : > { %3578 = vmatprep.mubr.bf16.mxu0 %v12383_v35  ;;  %v2896_v34 = vpop.f32.mrf.mxu0  ;;  %v8946_v22 = vld [vmem:[#allocation8 + $0x364] ss:$12 sps:$4 sm:$0xff]   ;;  %v2790_v11 = vadd.f32 %v10456_v13, %v10415_v38 }
 0x21c   : > { %12425 = vst [vmem:[#allocation58_spill] sm:$0xff] %v10540_v30  ;;  %v10542_v31 = vpop.f32.mrf.mxu1  ;;  %v2897_v47 = vadd.f32 %v2896_v34, %v2784_v55  ;;  %5966 = vmatpush2.bf16.msra.mxu0 %v8929_v5  ;;  %v12426_v5 = vld [vmem:[#allocation21_spill] sm:$0xff] }
 0x21d   : > { %6063 = vmatpush1.bf16.msra.mxu1 %v8932_v4  ;;  %v2898_v63 = vpop.f32.mrf.mxu0  ;;  %5967 = vmatprep.subr.bf16.mxu0 %v8937_v62 }
 0x21e   : > { %v10546_v36 = vpop.f32.mrf.mxu1  ;;  %6064 = vmatprep.subr.bf16.mxu1 %v8940_v25  ;;  %v3721_v29 = vmax.f32 %v2897_v47, 0.0  ;;  %v2899_v3 = vadd.f32 %v2898_v63, %v2786_v7  ;;  %v3710_v25 = vmax.f32 %v2895_v49, 0.0  ;;  %v8952_v47 = vld [vmem:[#allocation8 + $0x34c] ss:$12 sps:$4 sm:$0xff]  }
 0x21f   : > { %v2902_v4 = vpop.f32.mrf.mxu0  ;;  %3579 = vmatmul.mubr.bf16.gmra.mxu0 %v10344_v33  ;;  %v2794_v33 = vadd.f32 %v10470_v40, %v10415_v38  ;;  %v8949_v49 = vld [vmem:[#allocation8 + $0x28c] ss:$12 sps:$4 sm:$0xff]   ;;  %v8947_v40 = vld [vmem:[#allocation8 + $0x288] ss:$12 sps:$4 sm:$0xff]  }
 0x220   : > { %v10552_v55 = vpop.f32.mrf.mxu1  ;;  %5877 = vmatmul.mubr.bf16.gmra.mxu1 %v12426_v5  ;;  %v10556_v34 = vpack.c.bf16 %v3721_v29, %v3709_v42  ;;  %v3722_v9 = vmax.f32 %v2899_v3, 0.0  ;;  %v2903_v13 = vadd.f32 %v2902_v4, %v2790_v11  ;;  %5968 = vmatpush2.bf16.msra.mxu0 %v8935_v54  ;;  %v2796_v54 = vadd.f32 %v10474_v16, %v10420_v39 }
 0x221   : > { %5886 = vmatprep.mubr.bf16.mxu1 %v10086_v44  ;;  %6065 = vmatpush1.bf16.msra.mxu1 %v8938_v43  ;;  %v2904_v62 = vpop.f32.mrf.mxu0  ;;  %v8955_v44 = vld [vmem:[#allocation8 + $0x274] ss:$12 sps:$4 sm:$0xff]   ;;  %v2802_v16 = vadd.f32 %v10486_v10, %v10420_v39  ;;  %v8953_v10 = vld [vmem:[#allocation8 + $0x270] ss:$12 sps:$4 sm:$0xff]  }
 0x222   : > { %12427 = vst [vmem:[#allocation59_spill] sm:$0xff] %v10556_v34  ;;  %v10559_v7 = vpop.f32.mrf.mxu1  ;;  %6066 = vmatprep.subr.bf16.mxu1 %v8946_v22  ;;  %v2905_v63 = vadd.f32 %v2904_v62, %v2792_v61  ;;  %5969 = vmatprep.subr.bf16.mxu0 %v8943_v21  ;;  %v10564_v11 = vpack.c.bf16 %v3722_v9, %v3710_v25  ;;  %v8950_v22 = vld [vmem:[#allocation8 + $0x348] ss:$12 sps:$4 sm:$0xff]   ;;  %v3733_v61 = vmax.f32 %v2903_v13, 0.0  ;;  %v8956_v13 = vld [vmem:[#allocation8 + $0x330] ss:$12 sps:$4 sm:$0xff]  }
 0x223   : > { %3588 = vmatprep.mubr.bf16.mxu0 %v12383_v35  ;;  %v2906_v42 = vpop.f32.mrf.mxu0  ;;  %v8958_v21 = vld [vmem:[#allocation8 + $0x334] ss:$12 sps:$4 sm:$0xff]   ;;  %v2800_v9 = vadd.f32 %v10480_v14, %v10415_v38 }
 0x224   : > { %12428 = vst [vmem:[#allocation60_spill] sm:$0xff] %v10564_v11  ;;  %v10566_v43 = vpop.f32.mrf.mxu1  ;;  %v2907_v29 = vadd.f32 %v2906_v42, %v2794_v33  ;;  %5970 = vmatpush2.bf16.msra.mxu0 %v8941_v58  ;;  %v3734_v58 = vmax.f32 %v2905_v63, 0.0  ;;  %v8961_v63 = vld [vmem:[#allocation8 + $0x25c] ss:$12 sps:$4 sm:$0xff]  }
 0x225   : > { %6067 = vmatpush1.bf16.msra.mxu1 %v8944_v60  ;;  %v2908_v3 = vpop.f32.mrf.mxu0  ;;  %5971 = vmatprep.subr.bf16.mxu0 %v8949_v49 }
 0x226   : > { %v10570_v4 = vpop.f32.mrf.mxu1  ;;  %6068 = vmatprep.subr.bf16.mxu1 %v8952_v47  ;;  %v3745_v25 = vmax.f32 %v2907_v29, 0.0  ;;  %v2909_v62 = vadd.f32 %v2908_v3, %v2796_v54  ;;  %v8964_v29 = vld [vmem:[#allocation8 + $0x31c] ss:$12 sps:$4 sm:$0xff]  }
 0x227   : > { %v2912_v60 = vpop.f32.mrf.mxu0  ;;  %3589 = vmatmul.mubr.bf16.gmra.mxu0 %v10371_v23  ;;  %v2804_v23 = vadd.f32 %v10494_v1, %v10415_v38  ;;  %v8959_v1 = vld [vmem:[#allocation8 + $0x258] ss:$12 sps:$4 sm:$0xff]  }
 0x228   : > { %v10576_v33 = vpop.f32.mrf.mxu1  ;;  %5887 = vmatmul.mubr.bf16.gmra.mxu1 %v10078_v50  ;;  %v10580_v47 = vpack.c.bf16 %v3745_v25, %v3733_v61  ;;  %v3746_v42 = vmax.f32 %v2909_v62, 0.0  ;;  %v2913_v14 = vadd.f32 %v2912_v60, %v2800_v9  ;;  %5972 = vmatpush2.bf16.msra.mxu0 %v8947_v40  ;;  %v2806_v40 = vadd.f32 %v10498_v59, %v10420_v39  ;;  %v9030_v50 = vld [vmem:[#allocation8 + $0x694] ss:$12 sps:$4 sm:$0xff]  }
 0x229   : > { %5896 = vmatprep.mubr.bf16.mxu1 %v10112_v51  ;;  %6069 = vmatpush1.bf16.msra.mxu1 %v8950_v22  ;;  %v2914_v49 = vpop.f32.mrf.mxu0  ;;  %v2812_v59 = vadd.f32 %v10511_v2, %v10420_v39  ;;  %v655_v2 = vsub.s32 7, %v9939_v26  ;;  %v12445_v51 = vld [vmem:[#allocation34_spill] sm:$0xff] }
 0x22a   : > { %12429 = vst [vmem:[#allocation61_spill] sm:$0xff] %v10580_v47  ;;  %v10583_v54 = vpop.f32.mrf.mxu1  ;;  %6070 = vmatprep.subr.bf16.mxu1 %v8958_v21  ;;  %v2915_v3 = vadd.f32 %v2914_v49, %v2802_v16  ;;  %5973 = vmatprep.subr.bf16.mxu0 %v8955_v44  ;;  %v10588_v9 = vpack.c.bf16 %v3746_v42, %v3734_v58  ;;  %v8962_v16 = vld [vmem:[#allocation8 + $0x318] ss:$12 sps:$4 sm:$0xff]   ;;  %v3757_v44 = vmax.f32 %v2913_v14, 0.0 }
 0x22b   : > { %3598 = vmatprep.mubr.bf16.mxu0 %v12383_v35  ;;  %v2916_v61 = vpop.f32.mrf.mxu0  ;;  %v2810_v35 = vadd.f32 %v10504_v52, %v10415_v38  ;;  %v8967_v42 = vld [vmem:[#allocation8 + $0x244] ss:$12 sps:$4 sm:$0xff]  }
 0x22c   : > { %12430 = vst [vmem:[#allocation62_spill] sm:$0xff] %v10588_v9  ;;  %v10590_v22 = vpop.f32.mrf.mxu1  ;;  %v2917_v25 = vadd.f32 %v2916_v61, %v2804_v23  ;;  %5974 = vmatpush2.bf16.msra.mxu0 %v8953_v10  ;;  %v8970_v49 = vld [vmem:[#allocation8 + $0x304] ss:$12 sps:$4 sm:$0xff]  }
 0x22d   : > { %6071 = vmatpush1.bf16.msra.mxu1 %v8956_v13  ;;  %v2918_v21 = vpop.f32.mrf.mxu0  ;;  %5975 = vmatprep.subr.bf16.mxu0 %v8961_v63  ;;  %v651_v13 = vsub.s32 6, %v9939_v26 }
 0x22e   : > { %v10594_v62 = vpop.f32.mrf.mxu1  ;;  %6072 = vmatprep.subr.bf16.mxu1 %v8964_v29  ;;  %v3769_v60 = vmax.f32 %v2917_v25, 0.0  ;;  %v2919_v58 = vadd.f32 %v2918_v21, %v2806_v40  ;;  %v3758_v29 = vmax.f32 %v2915_v3, 0.0  ;;  %v8965_v25 = vld [vmem:[#allocation8 + $0x240] ss:$12 sps:$4 sm:$0xff]   ;;  %v2814_v3 = vadd.f32 %v10518_v46, %v10415_v38 }
 0x22f   : > { %v2922_v10 = vpop.f32.mrf.mxu0  ;;  %3599 = vmatmul.mubr.bf16.gmra.mxu0 %v10400_v27  ;;  %v8968_v27 = vld [vmem:[#allocation8 + $0x300] ss:$12 sps:$4 sm:$0xff]  }
 0x230   : > { %v10601_v23 = vpop.f32.mrf.mxu1  ;;  %5897 = vmatmul.mubr.bf16.gmra.mxu1 %v10102_v53  ;;  %v10605_v52 = vpack.c.bf16 %v3769_v60, %v3757_v44  ;;  %v3770_v14 = vmax.f32 %v2919_v58, 0.0  ;;  %v2923_v61 = vadd.f32 %v2922_v10, %v2810_v35  ;;  %5979 = vmatprep.mubr.bf16.mxu0 %v10248_v0  ;;  %v8973_v35 = vld [vmem:[#allocation8 + $0x46c] ss:$12 sps:$4 sm:$0xff]  }
 0x231   : > { %5906 = vmatprep.mubr.bf16.mxu1 %v10136_v20  ;;  %5976 = vmatpush2.bf16.msra.mxu0 %v8959_v1  ;;  %v2924_v63 = vpop.f32.mrf.mxu0  ;;  %v8976_v44 = vld [vmem:[#allocation8 + $0x52c] ss:$12 sps:$4 sm:$0xff]   ;;  %v2816_v1 = vadd.f32 %v10522_v6, %v10420_v39  ;;  %v10624_v20 = vrot.slane %v10412_v24, %v655_v2  ;;  %v8979_v39 = vld [vmem:[#allocation8 + $0x454] ss:$12 sps:$4 sm:$0xff]  }
 0x232   : > { %12431 = vst [vmem:[#allocation63_spill] sm:$0xff] %v10605_v52  ;;  %6073 = vmatpush1.bf16.msra.mxu1 %v8962_v16  ;;  %v10610_v40 = vpop.f32.mrf.mxu1  ;;  %v2925_v21 = vadd.f32 %v2924_v63, %v2812_v59  ;;  %5977 = vmatprep.subr.bf16.mxu0 %v8967_v42  ;;  %v10614_v60 = vpack.c.bf16 %v3770_v14, %v3758_v29  ;;  %v8971_v42 = vld [vmem:[#allocation8 + $0x468] ss:$12 sps:$4 sm:$0xff]  }
 0x233   : > { %6074 = vmatprep.subr.bf16.mxu1 %v8970_v49  ;;  %v2926_v58 = vpop.f32.mrf.mxu0  ;;  %v10621_v16 = vrot.slane %v10412_v24, %v651_v13  ;;  %v3781_v49 = vmax.f32 %v2923_v61, 0.0  ;;  %v8974_v14 = vld [vmem:[#allocation8 + $0x528] ss:$12 sps:$4 sm:$0xff]  }
 0x234   : > { %12432 = vst [vmem:[#allocation64_spill] sm:$0xff] %v10614_v60  ;;  %v10616_v10 = vpop.f32.mrf.mxu1  ;;  %v2927_v0 = vadd.f32 %v2926_v58, %v2814_v3  ;;  %v8982_v24 = vld [vmem:[#allocation8 + $0x514] ss:$12 sps:$4 sm:$0xff]   ;;  %v3782_v63 = vmax.f32 %v2925_v21, 0.0  ;;  %v8985_v58 = vld [vmem:[#allocation8 + $0x43c] ss:$12 sps:$4 sm:$0xff]  }
 0x235   : > { %5978 = vmatpush2.bf16.msra.mxu0 %v8965_v25  ;;  %v2928_v38 = vpop.f32.mrf.mxu0  ;;  %v2966_v2 = vadd.f32 %v10528_v15, %v10621_v16  ;;  %v2970_v15 = vadd.f32 %v10542_v31, %v10621_v16 }
 0x236   : > { %6075 = vmatpush1.bf16.msra.mxu1 %v8968_v27  ;;  %v10626_v46 = vpop.f32.mrf.mxu1  ;;  %v3793_v59 = vmax.f32 %v2927_v0, 0.0  ;;  %v2929_v29 = vadd.f32 %v2928_v38, %v2816_v1  ;;  %6173 = vmatprep.subr.bf16.mxu0 %v8976_v44  ;;  %v2968_v0 = vadd.f32 %v10535_v57, %v10624_v20  ;;  %v8980_v44 = vld [vmem:[#allocation8 + $0x510] ss:$12 sps:$4 sm:$0xff]  }
 0x237   : > { %6076 = vmatprep.subr.bf16.mxu1 %v8973_v35  ;;  %v3078_v13 = vpop.f32.mrf.mxu0  ;;  %v8977_v35 = vld [vmem:[#allocation8 + $0x450] ss:$12 sps:$4 sm:$0xff]  }
 0x238   : > { %v10628_v6 = vpop.f32.mrf.mxu1  ;;  %5907 = vmatmul.mubr.bf16.gmra.mxu1 %v10126_v12  ;;  %v10633_v25 = vpack.c.bf16 %v3793_v59, %v3781_v49  ;;  %v3794_v27 = vmax.f32 %v2929_v29, 0.0  ;;  %5980 = vmatmul.mubr.bf16.vlgmr.msra.gmra.mxu0 %v10240_v48  ;;  %v3079_v21 = vadd.f32 %v3078_v13, %v2966_v2  ;;  %v8988_v49 = vld [vmem:[#allocation8 + $0x4fc] ss:$12 sps:$4 sm:$0xff]  }
 0x239   : > { %5916 = vmatprep.mubr.bf16.mxu1 %v10163_v37  ;;  %5989 = vmatprep.mubr.bf16.mxu0 %v10275_v18  ;;  %v3080_v3 = vpop.f32.mrf.mxu0  ;;  %v12439_v12 = vld [vmem:[#allocation32_spill] sm:$0xff] }
 0x23a   : > { %6077 = vmatpush2.bf16.msra.mxu1 %v8971_v42  ;;  %v10640_v61 = vpop.f32.mrf.mxu1  ;;  %6174 = vmatpush1.bf16.msra.mxu0 %v8974_v14  ;;  %v10644_v1 = vpack.c.bf16 %v3794_v27, %v3782_v63  ;;  %v2972_v42 = vadd.f32 %v10546_v36, %v10624_v20  ;;  %v3081_v59 = vadd.f32 %v3080_v3, %v2968_v0  ;;  %v8983_v14 = vld [vmem:[#allocation8 + $0x438] ss:$12 sps:$4 sm:$0xff]  }
 0x23b   : > { %6078 = vmatprep.subr.bf16.mxu1 %v8979_v39  ;;  %v3082_v57 = vpop.f32.mrf.mxu0  ;;  %6175 = vmatprep.subr.bf16.mxu0 %v8982_v24  ;;  %v3615_v39 = vmax.f32 %v3079_v21, 0.0  ;;  %v8986_v63 = vld [vmem:[#allocation8 + $0x4f8] ss:$12 sps:$4 sm:$0xff]   ;;  %v2976_v0 = vadd.f32 %v10552_v55, %v10621_v16  ;;  %v2980_v55 = vadd.f32 %v10566_v43, %v10621_v16 }
 0x23c   : > { %12433 = vst [vmem:[#allocation65_spill] sm:$0xff] %v10644_v1  ;;  %v10646_v38 = vpop.f32.mrf.mxu1  ;;  %v3083_v29 = vadd.f32 %v3082_v57, %v2970_v15  ;;  %v8991_v27 = vld [vmem:[#allocation8 + $0x424] ss:$12 sps:$4 sm:$0xff]   ;;  %v3616_v3 = vmax.f32 %v3081_v59, 0.0  ;;  %v12435_v21 = vld [vmem:[#allocation38_spill] sm:$0xff] }
 0x23d   : > { %v3084_v31 = vpop.f32.mrf.mxu0  ;;  %v8994_v36 = vld [vmem:[#allocation8 + $0x4e4] ss:$12 sps:$4 sm:$0xff]  }
 0x23e   : > { %6079 = vmatpush2.bf16.msra.mxu1 %v8977_v35  ;;  %v10650_v18 = vpop.f32.mrf.mxu1  ;;  %v3627_v13 = vmax.f32 %v3083_v29, 0.0  ;;  %6176 = vmatpush1.bf16.msra.mxu0 %v8980_v44  ;;  %v3085_v2 = vadd.f32 %v3084_v31, %v2972_v42  ;;  %v12436_v44 = vld [vmem:[#allocation33_spill] sm:$0xff]  ;;  %v12437_v57 = vld [vmem:[#allocation40_spill] sm:$0xff] }
 0x23f   : > { %6080 = vmatprep.subr.bf16.mxu1 %v8985_v58  ;;  %v3088_v24 = vpop.f32.mrf.mxu0  ;;  %6177 = vmatprep.subr.bf16.mxu0 %v8988_v49  ;;  %v2978_v58 = vadd.f32 %v10559_v7, %v10624_v20  ;;  %v8989_v29 = vld [vmem:[#allocation8 + $0x420] ss:$12 sps:$4 sm:$0xff]  }
 0x240   : > { %v10652_v48 = vpop.f32.mrf.mxu1  ;;  %5917 = vmatmul.mubr.bf16.gmra.mxu1 %v10150_v17  ;;  %v10657_v35 = vpack.c.bf16 %v3627_v13, %v3615_v39  ;;  %v3628_v15 = vmax.f32 %v3085_v2, 0.0  ;;  %5990 = vmatmul.mubr.bf16.gmra.mxu0 %v12435_v21  ;;  %v3089_v59 = vadd.f32 %v3088_v24, %v2976_v0  ;;  %v8992_v31 = vld [vmem:[#allocation8 + $0x4e0] ss:$12 sps:$4 sm:$0xff]  }
 0x241   : > { %5926 = vmatprep.mubr.bf16.mxu1 %v12436_v44  ;;  %5999 = vmatprep.mubr.bf16.mxu0 %v12437_v57  ;;  %v3090_v49 = vpop.f32.mrf.mxu0  ;;  %v8997_v39 = vld [vmem:[#allocation8 + $0x40c] ss:$12 sps:$4 sm:$0xff]  }
 0x242   : > { %12434 = vst [vmem:[#allocation66_spill] sm:$0xff] %v10657_v35  ;;  %6081 = vmatpush2.bf16.msra.mxu1 %v8983_v14  ;;  %v10664_v42 = vpop.f32.mrf.mxu1  ;;  %6178 = vmatpush1.bf16.msra.mxu0 %v8986_v63  ;;  %v10668_v13 = vpack.c.bf16 %v3628_v15, %v3616_v3  ;;  %v9000_v57 = vld [vmem:[#allocation8 + $0x4cc] ss:$12 sps:$4 sm:$0xff]   ;;  %v2982_v14 = vadd.f32 %v10570_v4, %v10624_v20  ;;  %v8995_v63 = vld [vmem:[#allocation8 + $0x408] ss:$12 sps:$4 sm:$0xff]  }
 0x243   : > { %6082 = vmatprep.subr.bf16.mxu1 %v8991_v27  ;;  %v3092_v7 = vpop.f32.mrf.mxu0  ;;  %6179 = vmatprep.subr.bf16.mxu0 %v8994_v36  ;;  %v3091_v21 = vadd.f32 %v3090_v49, %v2978_v58  ;;  %v3639_v27 = vmax.f32 %v3089_v59, 0.0  ;;  %v8998_v3 = vld [vmem:[#allocation8 + $0x4c8] ss:$12 sps:$4 sm:$0xff]   ;;  %v2986_v58 = vadd.f32 %v10576_v33, %v10621_v16  ;;  %v12442_v59 = vld [vmem:[#allocation35_spill] sm:$0xff]  ;;  %v2990_v33 = vadd.f32 %v10590_v22, %v10621_v16 }
 0x244   : > { %12438 = vst [vmem:[#allocation67_spill] sm:$0xff] %v10668_v13  ;;  %v10670_v2 = vpop.f32.mrf.mxu1  ;;  %v3093_v44 = vadd.f32 %v3092_v7, %v2980_v55  ;;  %v9003_v15 = vld [vmem:[#allocation8 + $0x3f4] ss:$12 sps:$4 sm:$0xff]  }
 0x245   : > { %v3094_v43 = vpop.f32.mrf.mxu0  ;;  %v9006_v4 = vld [vmem:[#allocation8 + $0x4b4] ss:$12 sps:$4 sm:$0xff]   ;;  %v3640_v49 = vmax.f32 %v3091_v21, 0.0 }
 0x246   : > { %6083 = vmatpush2.bf16.msra.mxu1 %v8989_v29  ;;  %v10674_v17 = vpop.f32.mrf.mxu1  ;;  %v3651_v24 = vmax.f32 %v3093_v44, 0.0  ;;  %6180 = vmatpush1.bf16.msra.mxu0 %v8992_v31  ;;  %v3095_v0 = vadd.f32 %v3094_v43, %v2982_v14  ;;  %v12441_v44 = vld [vmem:[#allocation39_spill] sm:$0xff]  ;;  %v2988_v31 = vadd.f32 %v10583_v54, %v10624_v20 }
 0x247   : > { %6084 = vmatprep.subr.bf16.mxu1 %v8997_v39  ;;  %v3098_v36 = vpop.f32.mrf.mxu0  ;;  %6181 = vmatprep.subr.bf16.mxu0 %v9000_v57  ;;  %v12443_v39 = vld [vmem:[#allocation42_spill] sm:$0xff]  ;;  %v9001_v14 = vld [vmem:[#allocation8 + $0x3f0] ss:$12 sps:$4 sm:$0xff]  }
 0x248   : > { %v10676_v37 = vpop.f32.mrf.mxu1  ;;  %5927 = vmatmul.mubr.bf16.gmra.mxu1 %v12439_v12  ;;  %v10681_v29 = vpack.c.bf16 %v3651_v24, %v3639_v27  ;;  %v3652_v55 = vmax.f32 %v3095_v0, 0.0  ;;  %6000 = vmatmul.mubr.bf16.gmra.mxu0 %v12441_v44  ;;  %v3099_v21 = vadd.f32 %v3098_v36, %v2986_v58  ;;  %v9004_v43 = vld [vmem:[#allocation8 + $0x4b0] ss:$12 sps:$4 sm:$0xff]  }
 0x249   : > { %5936 = vmatprep.mubr.bf16.mxu1 %v12442_v59  ;;  %6009 = vmatprep.mubr.bf16.mxu0 %v12443_v39  ;;  %v3100_v57 = vpop.f32.mrf.mxu0  ;;  %v9009_v27 = vld [vmem:[#allocation8 + $0x3dc] ss:$12 sps:$4 sm:$0xff]  }
 0x24a   : > { %12440 = vst [vmem:[#allocation68_spill] sm:$0xff] %v10681_v29  ;;  %6085 = vmatpush2.bf16.msra.mxu1 %v8995_v63  ;;  %v10688_v7 = vpop.f32.mrf.mxu1  ;;  %6182 = vmatpush1.bf16.msra.mxu0 %v8998_v3  ;;  %v10692_v24 = vpack.c.bf16 %v3652_v55, %v3640_v49  ;;  %v9012_v39 = vld [vmem:[#allocation8 + $0x49c] ss:$12 sps:$4 sm:$0xff]   ;;  %v2992_v63 = vadd.f32 %v10594_v62, %v10624_v20  ;;  %v9007_v3 = vld [vmem:[#allocation8 + $0x3d8] ss:$12 sps:$4 sm:$0xff]  }
 0x24b   : > { %6086 = vmatprep.subr.bf16.mxu1 %v9003_v15  ;;  %v3102_v54 = vpop.f32.mrf.mxu0  ;;  %6183 = vmatprep.subr.bf16.mxu0 %v9006_v4  ;;  %v3101_v44 = vadd.f32 %v3100_v57, %v2988_v31  ;;  %v3663_v15 = vmax.f32 %v3099_v21, 0.0  ;;  %v9010_v49 = vld [vmem:[#allocation8 + $0x498] ss:$12 sps:$4 sm:$0xff]   ;;  %v2996_v31 = vadd.f32 %v10601_v23, %v10621_v16  ;;  %v2998_v21 = vadd.f32 %v10610_v40, %v10624_v20 }
 0x24c   : > { %12444 = vst [vmem:[#allocation69_spill] sm:$0xff] %v10692_v24  ;;  %v10694_v0 = vpop.f32.mrf.mxu1  ;;  %v3103_v59 = vadd.f32 %v3102_v54, %v2990_v33  ;;  %v9015_v55 = vld [vmem:[#allocation8 + $0x3c4] ss:$12 sps:$4 sm:$0xff]   ;;  %v9013_v54 = vld [vmem:[#allocation8 + $0x3c0] ss:$12 sps:$4 sm:$0xff]   ;;  %v3000_v23 = vadd.f32 %v10616_v10, %v10621_v16 }
 0x24d   : > { %v3104_v22 = vpop.f32.mrf.mxu0  ;;  %v9018_v62 = vld [vmem:[#allocation8 + $0x484] ss:$12 sps:$4 sm:$0xff]   ;;  %v3664_v57 = vmax.f32 %v3101_v44, 0.0 }
 0x24e   : > { %6087 = vmatpush2.bf16.msra.mxu1 %v9001_v14  ;;  %v10698_v12 = vpop.f32.mrf.mxu1  ;;  %v3675_v36 = vmax.f32 %v3103_v59, 0.0  ;;  %6184 = vmatpush1.bf16.msra.mxu0 %v9004_v43  ;;  %v3105_v58 = vadd.f32 %v3104_v22, %v2992_v63  ;;  %v12447_v59 = vld [vmem:[#allocation41_spill] sm:$0xff]  ;;  %v12448_v43 = vld [vmem:[#allocation44_spill] sm:$0xff] }
 0x24f   : > { %6088 = vmatprep.subr.bf16.mxu1 %v9009_v27  ;;  %v3108_v4 = vpop.f32.mrf.mxu0  ;;  %6185 = vmatprep.subr.bf16.mxu0 %v9012_v39  ;;  %v9016_v63 = vld [vmem:[#allocation8 + $0x480] ss:$12 sps:$4 sm:$0xff]  }
 0x250   : > { %v10700_v53 = vpop.f32.mrf.mxu1  ;;  %5937 = vmatmul.mubr.bf16.gmra.mxu1 %v12445_v51  ;;  %v10705_v14 = vpack.c.bf16 %v3675_v36, %v3663_v15  ;;  %v3676_v33 = vmax.f32 %v3105_v58, 0.0  ;;  %6010 = vmatmul.mubr.bf16.gmra.mxu0 %v12447_v59  ;;  %v3109_v44 = vadd.f32 %v3108_v4, %v2996_v31  ;;  %v9024_v22 = vld [vmem:[#allocation8 + $0x6ac] ss:$12 sps:$4 sm:$0xff]   ;;  %v9019_v31 = vld [vmem:[#allocation8 + $0x5e8] ss:$12 sps:$4 sm:$0xff]  }
 0x251   : > { %6092 = vmatprep.mubr.bf16.mxu1 %v10468_v28  ;;  %6019 = vmatprep.mubr.bf16.mxu0 %v12448_v43  ;;  %v3110_v39 = vpop.f32.mrf.mxu0  ;;  %v9021_v58 = vld [vmem:[#allocation8 + $0x5ec] ss:$12 sps:$4 sm:$0xff]  }
 0x252   : > { %12446 = vst [vmem:[#allocation70_spill] sm:$0xff] %v10705_v14  ;;  %6089 = vmatpush2.bf16.msra.mxu1 %v9007_v3  ;;  %v10712_v27 = vpop.f32.mrf.mxu1  ;;  %6186 = vmatpush1.bf16.msra.mxu0 %v9010_v49  ;;  %v10716_v15 = vpack.c.bf16 %v3676_v33, %v3664_v57  ;;  %v3002_v3 = vadd.f32 %v10626_v46, %v10624_v20  ;;  %v3687_v49 = vmax.f32 %v3109_v44, 0.0  ;;  %v9022_v57 = vld [vmem:[#allocation8 + $0x6a8] ss:$12 sps:$4 sm:$0xff]  }
 0x253   : > { %6090 = vmatprep.subr.bf16.mxu1 %v9015_v55  ;;  %v3112_v40 = vpop.f32.mrf.mxu0  ;;  %6187 = vmatprep.subr.bf16.mxu0 %v9018_v62  ;;  %v3111_v43 = vadd.f32 %v3110_v39, %v2998_v21  ;;  %v9027_v62 = vld [vmem:[#allocation8 + $0x5d4] ss:$12 sps:$4 sm:$0xff]   ;;  %v3006_v46 = vadd.f32 %v10628_v6, %v10621_v16  ;;  %v3010_v6 = vadd.f32 %v10646_v38, %v10621_v16 }
 0x254   : > { %12449 = vst [vmem:[#allocation71_spill] sm:$0xff] %v10716_v15  ;;  %v10718_v36 = vpop.f32.mrf.mxu1  ;;  %v3113_v59 = vadd.f32 %v3112_v40, %v3000_v23  ;;  %v12451_v23 = vld [vmem:[#allocation43_spill] sm:$0xff]  ;;  %v12452_v44 = vld [vmem:[#allocation46_spill] sm:$0xff] }
 0x255   : > { %v3114_v10 = vpop.f32.mrf.mxu0  ;;  %v3688_v21 = vmax.f32 %v3111_v43, 0.0  ;;  %v9025_v40 = vld [vmem:[#allocation8 + $0x5d0] ss:$12 sps:$4 sm:$0xff]  }
 0x256   : > { %6091 = vmatpush2.bf16.msra.mxu1 %v9013_v54  ;;  %v10722_v28 = vpop.f32.mrf.mxu1  ;;  %v3699_v55 = vmax.f32 %v3113_v59, 0.0  ;;  %6188 = vmatpush1.bf16.msra.mxu0 %v9016_v63  ;;  %v3115_v4 = vadd.f32 %v3114_v10, %v3002_v3  ;;  %v3008_v59 = vadd.f32 %v10640_v61, %v10624_v20  ;;  %v9033_v61 = vld [vmem:[#allocation8 + $0x5bc] ss:$12 sps:$4 sm:$0xff]  }
 0x257   : > { %6286 = vmatprep.subr.bf16.mxu1 %v9024_v22  ;;  %v3118_v33 = vpop.f32.mrf.mxu0  ;;  %6189 = vmatprep.subr.bf16.mxu0 %v9021_v58  ;;  %v9028_v58 = vld [vmem:[#allocation8 + $0x690] ss:$12 sps:$4 sm:$0xff]  }
 0x258   : > { %v10724_v51 = vpop.f32.mrf.mxu1  ;;  %v10728_v39 = vpack.c.bf16 %v3699_v55, %v3687_v49  ;;  %v3700_v54 = vmax.f32 %v3115_v4, 0.0  ;;  %6020 = vmatmul.mubr.bf16.gmra.mxu0 %v12451_v23  ;;  %v3119_v43 = vadd.f32 %v3118_v33, %v3006_v46  ;;  %v9036_v55 = vld [vmem:[#allocation8 + $0x67c] ss:$12 sps:$4 sm:$0xff]   ;;  %v3012_v4 = vadd.f32 %v10650_v18, %v10624_v20 }
 0x259   : > { %6093 = vmatmul.mubr.bf16.vlgmr.msra.gmra.mxu1 %v10460_v41  ;;  %6029 = vmatprep.mubr.bf16.mxu0 %v12452_v44  ;;  %v3120_v63 = vpop.f32.mrf.mxu0  ;;  %v9042_v41 = vld [vmem:[#allocation8 + $0x664] ss:$12 sps:$4 sm:$0xff]   ;;  %v3016_v18 = vadd.f32 %v10652_v48, %v10621_v16  ;;  %v3020_v48 = vadd.f32 %v10670_v2, %v10621_v16 }
 0x25a   : > { %12450 = vst [vmem:[#allocation72_spill] sm:$0xff] %v10728_v39  ;;  %6102 = vmatprep.mubr.bf16.mxu1 %v10492_v45  ;;  %v10736_v22 = vpop.f32.mrf.mxu1  ;;  %6190 = vmatpush2.bf16.msra.mxu0 %v9019_v31  ;;  %v10740_v3 = vpack.c.bf16 %v3700_v54, %v3688_v21  ;;  %v3121_v44 = vadd.f32 %v3120_v63, %v3008_v59  ;;  %v3711_v31 = vmax.f32 %v3119_v43, 0.0  ;;  %v9031_v21 = vld [vmem:[#allocation8 + $0x5b8] ss:$12 sps:$4 sm:$0xff]  }
 0x25b   : > { %6287 = vmatpush1.bf16.msra.mxu1 %v9022_v57  ;;  %v3122_v10 = vpop.f32.mrf.mxu0  ;;  %6191 = vmatprep.subr.bf16.mxu0 %v9027_v62  ;;  %v9034_v54 = vld [vmem:[#allocation8 + $0x678] ss:$12 sps:$4 sm:$0xff]   ;;  %v3018_v43 = vadd.f32 %v10664_v42, %v10624_v20 }
 0x25c   : > { %12453 = vst [vmem:[#allocation73_spill] sm:$0xff] %v10740_v3  ;;  %v10742_v49 = vpop.f32.mrf.mxu1  ;;  %6288 = vmatprep.subr.bf16.mxu1 %v9030_v50  ;;  %v3123_v23 = vadd.f32 %v3122_v10, %v3010_v6  ;;  %v9039_v50 = vld [vmem:[#allocation8 + $0x5a4] ss:$12 sps:$4 sm:$0xff]   ;;  %v3712_v59 = vmax.f32 %v3121_v44, 0.0  ;;  %v9045_v42 = vld [vmem:[#allocation8 + $0x58c] ss:$12 sps:$4 sm:$0xff]  }
 0x25d   : > { %v3124_v38 = vpop.f32.mrf.mxu0 }
 0x25e   : > { %v10746_v33 = vpop.f32.mrf.mxu1  ;;  %v3723_v57 = vmax.f32 %v3123_v23, 0.0  ;;  %6192 = vmatpush2.bf16.msra.mxu0 %v9025_v40  ;;  %v3125_v46 = vadd.f32 %v3124_v38, %v3012_v4  ;;  %v12455_v23 = vld [vmem:[#allocation45_spill] sm:$0xff]  ;;  %v12456_v40 = vld [vmem:[#allocation48_spill] sm:$0xff] }
 0x25f   : > { %6289 = vmatpush1.bf16.msra.mxu1 %v9028_v58  ;;  %v3128_v45 = vpop.f32.mrf.mxu0  ;;  %6193 = vmatprep.subr.bf16.mxu0 %v9033_v61  ;;  %v9037_v61 = vld [vmem:[#allocation8 + $0x5a0] ss:$12 sps:$4 sm:$0xff]  }
 0x260   : > { %v10748_v62 = vpop.f32.mrf.mxu1  ;;  %6290 = vmatprep.subr.bf16.mxu1 %v9036_v55  ;;  %v10752_v63 = vpack.c.bf16 %v3723_v57, %v3711_v31  ;;  %v3724_v6 = vmax.f32 %v3125_v46, 0.0  ;;  %6030 = vmatmul.mubr.bf16.gmra.mxu0 %v12455_v23  ;;  %v3129_v44 = vadd.f32 %v3128_v45, %v3016_v18  ;;  %v9040_v55 = vld [vmem:[#allocation8 + $0x660] ss:$12 sps:$4 sm:$0xff]   ;;  %v3022_v46 = vadd.f32 %v10674_v17, %v10624_v20 }
 0x261   : > { %6103 = vmatmul.mubr.bf16.gmra.mxu1 %v10484_v19  ;;  %6039 = vmatprep.mubr.bf16.mxu0 %v12456_v40  ;;  %v3130_v58 = vpop.f32.mrf.mxu0  ;;  %v9048_v57 = vld [vmem:[#allocation8 + $0x64c] ss:$12 sps:$4 sm:$0xff]   ;;  %v9054_v19 = vld [vmem:[#allocation8 + $0x634] ss:$12 sps:$4 sm:$0xff]   ;;  %v3026_v17 = vadd.f32 %v10676_v37, %v10621_v16  ;;  %v3030_v37 = vadd.f32 %v10694_v0, %v10621_v16 }
 0x262   : > { %12454 = vst [vmem:[#allocation74_spill] sm:$0xff] %v10752_v63  ;;  %6112 = vmatprep.mubr.bf16.mxu1 %v10516_v56  ;;  %v10760_v10 = vpop.f32.mrf.mxu1  ;;  %6194 = vmatpush2.bf16.msra.mxu0 %v9031_v21  ;;  %v10764_v4 = vpack.c.bf16 %v3724_v6, %v3712_v59  ;;  %v3131_v40 = vadd.f32 %v3130_v58, %v3018_v43  ;;  %v3735_v21 = vmax.f32 %v3129_v44, 0.0  ;;  %v9043_v59 = vld [vmem:[#allocation8 + $0x588] ss:$12 sps:$4 sm:$0xff]  }
 0x263   : > { %6291 = vmatpush1.bf16.msra.mxu1 %v9034_v54  ;;  %v3132_v38 = vpop.f32.mrf.mxu0  ;;  %6195 = vmatprep.subr.bf16.mxu0 %v9039_v50  ;;  %v9046_v6 = vld [vmem:[#allocation8 + $0x648] ss:$12 sps:$4 sm:$0xff]   ;;  %v3028_v44 = vadd.f32 %v10688_v7, %v10624_v20 }
 0x264   : > { %12457 = vst [vmem:[#allocation75_spill] sm:$0xff] %v10764_v4  ;;  %v10766_v31 = vpop.f32.mrf.mxu1  ;;  %6292 = vmatprep.subr.bf16.mxu1 %v9042_v41  ;;  %v3133_v23 = vadd.f32 %v3132_v38, %v3020_v48  ;;  %v9051_v41 = vld [vmem:[#allocation8 + $0x574] ss:$12 sps:$4 sm:$0xff]   ;;  %v3736_v43 = vmax.f32 %v3131_v40, 0.0  ;;  %v9057_v7 = vld [vmem:[#allocation8 + $0x55c] ss:$12 sps:$4 sm:$0xff]  }
 0x265   : > { %v3134_v2 = vpop.f32.mrf.mxu0 }
 0x266   : > { %v10770_v45 = vpop.f32.mrf.mxu1  ;;  %v3747_v54 = vmax.f32 %v3133_v23, 0.0  ;;  %6196 = vmatpush2.bf16.msra.mxu0 %v9037_v61  ;;  %v3135_v18 = vadd.f32 %v3134_v2, %v3022_v46  ;;  %v12459_v23 = vld [vmem:[#allocation47_spill] sm:$0xff]  ;;  %v12460_v61 = vld [vmem:[#allocation50_spill] sm:$0xff] }
 0x267   : > { %6293 = vmatpush1.bf16.msra.mxu1 %v9040_v55  ;;  %v3138_v56 = vpop.f32.mrf.mxu0  ;;  %6197 = vmatprep.subr.bf16.mxu0 %v9045_v42  ;;  %v9049_v42 = vld [vmem:[#allocation8 + $0x570] ss:$12 sps:$4 sm:$0xff]  }
 0x268   : > { %v10772_v50 = vpop.f32.mrf.mxu1  ;;  %6294 = vmatprep.subr.bf16.mxu1 %v9048_v57  ;;  %v10776_v58 = vpack.c.bf16 %v3747_v54, %v3735_v21  ;;  %v3748_v48 = vmax.f32 %v3135_v18, 0.0  ;;  %6040 = vmatmul.mubr.bf16.gmra.mxu0 %v12459_v23  ;;  %v3139_v40 = vadd.f32 %v3138_v56, %v3026_v17  ;;  %v9052_v57 = vld [vmem:[#allocation8 + $0x630] ss:$12 sps:$4 sm:$0xff]   ;;  %v3032_v18 = vadd.f32 %v10698_v12, %v10624_v20 }
 0x269   : > { %6113 = vmatmul.mubr.bf16.gmra.mxu1 %v10508_v32  ;;  %6049 = vmatprep.mubr.bf16.mxu0 %v12460_v61  ;;  %v3140_v55 = vpop.f32.mrf.mxu0  ;;  %v9060_v54 = vld [vmem:[#allocation8 + $0x61c] ss:$12 sps:$4 sm:$0xff]   ;;  %v9066_v32 = vld [vmem:[#allocation8 + $0x604] ss:$12 sps:$4 sm:$0xff]   ;;  %v3036_v12 = vadd.f32 %v10700_v53, %v10621_v16  ;;  %v3040_v53 = vadd.f32 %v10718_v36, %v10621_v16 }
 0x26a   : > { %12458 = vst [vmem:[#allocation76_spill] sm:$0xff] %v10776_v58  ;;  %6122 = vmatprep.mubr.bf16.mxu1 %v10540_v30  ;;  %v10784_v38 = vpop.f32.mrf.mxu1  ;;  %6198 = vmatpush2.bf16.msra.mxu0 %v9043_v59  ;;  %v10788_v46 = vpack.c.bf16 %v3748_v48, %v3736_v43  ;;  %v3141_v61 = vadd.f32 %v3140_v55, %v3028_v44  ;;  %v3759_v59 = vmax.f32 %v3139_v40, 0.0  ;;  %v9055_v43 = vld [vmem:[#allocation8 + $0x558] ss:$12 sps:$4 sm:$0xff]  }
 0x26b   : > { %6295 = vmatpush1.bf16.msra.mxu1 %v9046_v6  ;;  %v3142_v2 = vpop.f32.mrf.mxu0  ;;  %6199 = vmatprep.subr.bf16.mxu0 %v9051_v41  ;;  %v9058_v48 = vld [vmem:[#allocation8 + $0x618] ss:$12 sps:$4 sm:$0xff]   ;;  %v3038_v40 = vadd.f32 %v10712_v27, %v10624_v20 }
 0x26c   : > { %12461 = vst [vmem:[#allocation77_spill] sm:$0xff] %v10788_v46  ;;  %v10790_v21 = vpop.f32.mrf.mxu1  ;;  %6296 = vmatprep.subr.bf16.mxu1 %v9054_v19  ;;  %v3143_v23 = vadd.f32 %v3142_v2, %v3030_v37  ;;  %v9063_v19 = vld [vmem:[#allocation8 + $0x544] ss:$12 sps:$4 sm:$0xff]   ;;  %v3760_v44 = vmax.f32 %v3141_v61, 0.0  ;;  %v9061_v2 = vld [vmem:[#allocation8 + $0x540] ss:$12 sps:$4 sm:$0xff]  }
 0x26d   : > { %v3144_v0 = vpop.f32.mrf.mxu0  ;;  %v9069_v27 = vld [vmem:[#allocation8 + $0x76c] ss:$12 sps:$4 sm:$0xff]  }
 0x26e   : > { %v10794_v56 = vpop.f32.mrf.mxu1  ;;  %v3771_v6 = vmax.f32 %v3143_v23, 0.0  ;;  %6200 = vmatpush2.bf16.msra.mxu0 %v9049_v42  ;;  %v3145_v17 = vadd.f32 %v3144_v0, %v3032_v18  ;;  %v12463_v23 = vld [vmem:[#allocation49_spill] sm:$0xff] }
 0x26f   : > { %6297 = vmatpush1.bf16.msra.mxu1 %v9052_v57  ;;  %v3148_v30 = vpop.f32.mrf.mxu0  ;;  %6201 = vmatprep.subr.bf16.mxu0 %v9057_v7  ;;  %v9064_v7 = vld [vmem:[#allocation8 + $0x600] ss:$12 sps:$4 sm:$0xff]  }
 0x270   : > { %v10796_v41 = vpop.f32.mrf.mxu1  ;;  %6298 = vmatprep.subr.bf16.mxu1 %v9060_v54  ;;  %v10800_v55 = vpack.c.bf16 %v3771_v6, %v3759_v59  ;;  %v3772_v37 = vmax.f32 %v3145_v17, 0.0  ;;  %6050 = vmatmul.mubr.bf16.gmra.mxu0 %v12463_v23  ;;  %v3149_v61 = vadd.f32 %v3148_v30, %v3036_v12  ;;  %v9081_v59 = vld [vmem:[#allocation8 + $0x82c] ss:$12 sps:$4 sm:$0xff]   ;;  %v3042_v6 = vadd.f32 %v10722_v28, %v10624_v20  ;;  %v9067_v12 = vld [vmem:[#allocation8 + $0x768] ss:$12 sps:$4 sm:$0xff]  }
 0x271   : > { %6123 = vmatmul.mubr.bf16.gmra.mxu1 %v10532_v8  ;;  %6205 = vmatprep.mubr.bf16.mxu0 %v10668_v13  ;;  %v3150_v42 = vpop.f32.mrf.mxu0  ;;  %v12469_v8 = vld [vmem:[#allocation16_spill] sm:$0xff] }
 0x272   : > { %12462 = vst [vmem:[#allocation78_spill] sm:$0xff] %v10800_v55  ;;  %6132 = vmatprep.mubr.bf16.mxu1 %v10564_v11  ;;  %v10808_v57 = vpop.f32.mrf.mxu1  ;;  %6202 = vmatpush2.bf16.msra.mxu0 %v9055_v43  ;;  %v10812_v54 = vpack.c.bf16 %v3772_v37, %v3760_v44  ;;  %v3151_v17 = vadd.f32 %v3150_v42, %v3038_v40  ;;  %v3783_v36 = vmax.f32 %v3149_v61, 0.0  ;;  %v9079_v37 = vld [vmem:[#allocation8 + $0x828] ss:$12 sps:$4 sm:$0xff]   ;;  %v9070_v61 = vld [vmem:[#allocation8 + $0x750] ss:$12 sps:$4 sm:$0xff]  }
 0x273   : > { %6299 = vmatpush1.bf16.msra.mxu1 %v9058_v48  ;;  %v3152_v18 = vpop.f32.mrf.mxu0  ;;  %6203 = vmatprep.subr.bf16.mxu0 %v9063_v19  ;;  %v9087_v42 = vld [vmem:[#allocation8 + $0x814] ss:$12 sps:$4 sm:$0xff]  }
 0x274   : > { %12464 = vst [vmem:[#allocation79_spill] sm:$0xff] %v10812_v54  ;;  %v10814_v0 = vpop.f32.mrf.mxu1  ;;  %6300 = vmatprep.subr.bf16.mxu1 %v9066_v32  ;;  %v3153_v13 = vadd.f32 %v3152_v18, %v3040_v53  ;;  %v9072_v32 = vld [vmem:[#allocation8 + $0x754] ss:$12 sps:$4 sm:$0xff]   ;;  %v3784_v20 = vmax.f32 %v3151_v17, 0.0 }
 0x275   : > { %v3154_v16 = vpop.f32.mrf.mxu0 }
 0x276   : > { %v10818_v30 = vpop.f32.mrf.mxu1  ;;  %v3795_v43 = vmax.f32 %v3153_v13, 0.0  ;;  %6204 = vmatpush2.bf16.msra.mxu0 %v9061_v2  ;;  %v3155_v48 = vadd.f32 %v3154_v16, %v3042_v6  ;;  %v9093_v6 = vld [vmem:[#allocation8 + $0x7fc] ss:$12 sps:$4 sm:$0xff]  }
 0x277   : > { %6301 = vmatpush1.bf16.msra.mxu1 %v9064_v7  ;;  %v10822_v19 = vpop.f32.mrf.mxu0  ;;  %6399 = vmatprep.subr.bf16.mxu0 %v9081_v59  ;;  %v9085_v59 = vld [vmem:[#allocation8 + $0x810] ss:$12 sps:$4 sm:$0xff]  }
 0x278   : > { %v10820_v44 = vpop.f32.mrf.mxu1  ;;  %6302 = vmatprep.subr.bf16.mxu1 %v9069_v27  ;;  %v10824_v28 = vpack.c.bf16 %v3795_v43, %v3783_v36  ;;  %v3796_v40 = vmax.f32 %v3155_v48, 0.0  ;;  %v9075_v27 = vld [vmem:[#allocation8 + $0x73c] ss:$12 sps:$4 sm:$0xff]   ;;  %v9073_v43 = vld [vmem:[#allocation8 + $0x738] ss:$12 sps:$4 sm:$0xff]  }
 0x279   : > { %6133 = vmatmul.mubr.bf16.gmra.mxu1 %v10556_v34  ;;  %6206 = vmatmul.mubr.bf16.vlgmr.msra.gmra.mxu0 %v10657_v35  ;;  %v3306_v53 = vpop.f32.mrf.mxu0  ;;  %v10840_v36 = vld [vmem:[#allocation7 + $0x8] sm:$0xf]  ;;  %v9084_v35 = vld [vmem:[#allocation8 + $0x70c] ss:$12 sps:$4 sm:$0xff]  }
 0x27a   : > { %12465 = vst [vmem:[#allocation80_spill] sm:$0xff] %v10824_v28  ;;  %6142 = vmatprep.mubr.bf16.mxu1 %v10588_v9  ;;  %v10829_v13 = vpop.f32.mrf.mxu1  ;;  %6215 = vmatprep.mubr.bf16.mxu0 %v10692_v24  ;;  %v10832_v2 = vpack.c.bf16 %v3796_v40, %v3784_v20  ;;  %v9078_v20 = vld [vmem:[#allocation8 + $0x724] ss:$12 sps:$4 sm:$0xff]  }
 0x27b   : > { %6303 = vmatpush2.bf16.msra.mxu1 %v9067_v12  ;;  %v10836_v18 = vpop.f32.mrf.mxu0  ;;  %6400 = vmatpush1.bf16.msra.mxu0 %v9079_v37  ;;  %v9099_v37 = vld [vmem:[#allocation8 + $0x7e4] ss:$12 sps:$4 sm:$0xff]  }
 0x27c   : > { %12466 = vst [vmem:[#allocation81_spill] sm:$0xff] %v10832_v2  ;;  %v10834_v7 = vpop.f32.mrf.mxu1  ;;  %6304 = vmatprep.subr.bf16.mxu1 %v9072_v32  ;;  %6401 = vmatprep.subr.bf16.mxu0 %v9087_v42  ;;  %v9091_v32 = vld [vmem:[#allocation8 + $0x7f8] ss:$12 sps:$4 sm:$0xff]   ;;  %v12467_v40 = vld [vmem:[#allocation17_spill] sm:$0xff] }
 0x27d   : > { %v3310_v16 = vpop.f32.mrf.mxu0  ;;  %v10849_v42 = vrot.slane %v10840_v36, %v12467_v40 }
 0x27e   : > { %v10838_v17 = vpop.f32.mrf.mxu1 }
 0x27f   : > { %6305 = vmatpush2.bf16.msra.mxu1 %v9070_v61  ;;  %v10844_v12 = vpop.f32.mrf.mxu0  ;;  %6402 = vmatpush1.bf16.msra.mxu0 %v9085_v59 }
 0x280   : > { %v10842_v48 = vpop.f32.mrf.mxu1  ;;  %6306 = vmatprep.subr.bf16.mxu1 %v9075_v27  ;;  %6403 = vmatprep.subr.bf16.mxu0 %v9093_v6  ;;  %v9076_v27 = vld [vmem:[#allocation8 + $0x720] ss:$12 sps:$4 sm:$0xff]  }
 0x281   : > { %6143 = vmatmul.mubr.bf16.gmra.mxu1 %v10580_v47  ;;  %6216 = vmatmul.mubr.bf16.gmra.mxu0 %v10681_v29  ;;  %v10855_v24 = vpop.f32.mrf.mxu0  ;;  %v9097_v47 = vld [vmem:[#allocation8 + $0x7e0] ss:$12 sps:$4 sm:$0xff]  }
 0x282   : > { %6152 = vmatprep.mubr.bf16.mxu1 %v10614_v60  ;;  %v10853_v61 = vpop.f32.mrf.mxu1  ;;  %6225 = vmatprep.mubr.bf16.mxu0 %v10716_v15  ;;  %v9105_v29 = vld [vmem:[#allocation8 + $0x7cc] ss:$12 sps:$4 sm:$0xff]   ;;  %v3198_v60 = vadd.f32 %v10746_v33, %v10849_v42  ;;  %v9082_v15 = vld [vmem:[#allocation8 + $0x708] ss:$12 sps:$4 sm:$0xff]  }
 0x283   : > { %6307 = vmatpush2.bf16.msra.mxu1 %v9073_v43  ;;  %v10860_v6 = vpop.f32.mrf.mxu0  ;;  %6404 = vmatpush1.bf16.msra.mxu0 %v9091_v32  ;;  %v3194_v43 = vadd.f32 %v10736_v22, %v10849_v42  ;;  %v9090_v32 = vld [vmem:[#allocation8 + $0x6f4] ss:$12 sps:$4 sm:$0xff]  }
 0x284   : > { %v10858_v59 = vpop.f32.mrf.mxu1  ;;  %6308 = vmatprep.subr.bf16.mxu1 %v9078_v20  ;;  %6405 = vmatprep.subr.bf16.mxu0 %v9099_v37  ;;  %v3311_v34 = vadd.f32 %v3310_v16, %v3198_v60  ;;  %v9103_v37 = vld [vmem:[#allocation8 + $0x7c8] ss:$12 sps:$4 sm:$0xff]  }
 0x285   : > { %v3320_v9 = vpop.f32.mrf.mxu0  ;;  %v9108_v33 = vld [vmem:[#allocation8 + $0x7b4] ss:$12 sps:$4 sm:$0xff]   ;;  %v3307_v40 = vadd.f32 %v3306_v53, %v3194_v43  ;;  %v9106_v53 = vld [vmem:[#allocation8 + $0x7b0] ss:$12 sps:$4 sm:$0xff]  }
 0x286   : > { %v10864_v23 = vpop.f32.mrf.mxu1  ;;  %v9111_v43 = vld [vmem:[#allocation8 + $0x79c] ss:$12 sps:$4 sm:$0xff]  }
 0x287   : > { %6309 = vmatpush2.bf16.msra.mxu1 %v9076_v27  ;;  %v10870_v20 = vpop.f32.mrf.mxu0  ;;  %6406 = vmatpush1.bf16.msra.mxu0 %v9097_v47  ;;  %v10875_v27 = vrot.slane %v10840_v36, %v12469_v8  ;;  %v9088_v47 = vld [vmem:[#allocation8 + $0x6f0] ss:$12 sps:$4 sm:$0xff]  }
 0x288   : > { %v10868_v11 = vpop.f32.mrf.mxu1  ;;  %6310 = vmatprep.subr.bf16.mxu1 %v9084_v35  ;;  %6407 = vmatprep.subr.bf16.mxu0 %v9105_v29  ;;  %v3630_v35 = vmax.f32 %v3311_v34, 0.0  ;;  %v3208_v34 = vadd.f32 %v10770_v45, %v10849_v42  ;;  %v3204_v45 = vadd.f32 %v10760_v10, %v10849_v42 }
 0x289   : > { %12468 = vst [vmem:[#allocation82_spill] sm:$0xff] %v10868_v11  ;;  %6153 = vmatmul.mubr.bf16.gmra.mxu1 %v10605_v52  ;;  %6226 = vmatmul.mubr.bf16.gmra.mxu0 %v10705_v14  ;;  %v10881_v22 = vpop.f32.mrf.mxu0  ;;  %v9096_v52 = vld [vmem:[#allocation8 + $0x6dc] ss:$12 sps:$4 sm:$0xff]   ;;  %v3196_v14 = vadd.f32 %v10742_v49, %v10875_v27  ;;  %v9109_v11 = vld [vmem:[#allocation8 + $0x798] ss:$12 sps:$4 sm:$0xff]  }
 0x28a   : > { %6162 = vmatprep.mubr.bf16.mxu1 %v10644_v1  ;;  %v10879_v60 = vpop.f32.mrf.mxu1  ;;  %6235 = vmatprep.mubr.bf16.mxu0 %v10740_v3  ;;  %v3618_v1 = vmax.f32 %v3307_v40, 0.0  ;;  %v9102_v40 = vld [vmem:[#allocation8 + $0x6c4] ss:$12 sps:$4 sm:$0xff]  }
 0x28b   : > { %6311 = vmatpush2.bf16.msra.mxu1 %v9082_v15  ;;  %v10886_v16 = vpop.f32.mrf.mxu0  ;;  %6408 = vmatpush1.bf16.msra.mxu0 %v9103_v37  ;;  %v9094_v15 = vld [vmem:[#allocation8 + $0x6d8] ss:$12 sps:$4 sm:$0xff]   ;;  %v3309_v37 = vadd.f32 %v10836_v18, %v3196_v14  ;;  %v3317_v18 = vadd.f32 %v10855_v24, %v3204_v45 }
 0x28c   : > { %v10884_v29 = vpop.f32.mrf.mxu1  ;;  %6312 = vmatprep.subr.bf16.mxu1 %v9090_v32  ;;  %6409 = vmatprep.subr.bf16.mxu0 %v9108_v33  ;;  %v3192_v32 = vadd.f32 %v10724_v51, %v10875_v27  ;;  %v10901_v49 = vpack.c.bf16 %v3630_v35, %v3618_v1  ;;  %v9114_v51 = vld [vmem:[#allocation8 + $0x784] ss:$12 sps:$4 sm:$0xff]  }
 0x28d   : > { %v3330_v3 = vpop.f32.mrf.mxu0  ;;  %v3629_v10 = vmax.f32 %v3309_v37, 0.0  ;;  %v3218_v37 = vadd.f32 %v10794_v56, %v10849_v42  ;;  %v3214_v56 = vadd.f32 %v10784_v38, %v10849_v42 }
 0x28e   : > { %v10890_v8 = vpop.f32.mrf.mxu1  ;;  %12470 = vst [vmem:[#allocation83_spill] sm:$0xff] %v10901_v49  ;;  %v3305_v14 = vadd.f32 %v10822_v19, %v3192_v32  ;;  %v9112_v19 = vld [vmem:[#allocation8 + $0x780] ss:$12 sps:$4 sm:$0xff]  }
 0x28f   : > { %6313 = vmatpush2.bf16.msra.mxu1 %v9088_v47  ;;  %v10899_v33 = vpop.f32.mrf.mxu0  ;;  %6410 = vmatpush1.bf16.msra.mxu0 %v9106_v53  ;;  %v3321_v47 = vadd.f32 %v3320_v9, %v3208_v34  ;;  %v9100_v9 = vld [vmem:[#allocation8 + $0x6c0] ss:$12 sps:$4 sm:$0xff]  }
 0x290   : > { %v10897_v5 = vpop.f32.mrf.mxu1  ;;  %6314 = vmatprep.subr.bf16.mxu1 %v9096_v52  ;;  %6411 = vmatprep.subr.bf16.mxu0 %v9111_v43  ;;  %v9118_v43 = vld [vmem:[#allocation8 + $0x170] ss:$12 sps:$4 sm:$0xff]   ;;  %v9117_v32 = vld [vmem:[#allocation8 + $0x8ec] ss:$12 sps:$4 sm:$0xff]   ;;  %v3617_v24 = vmax.f32 %v3305_v14, 0.0 }
 0x291   : > { %6163 = vmatmul.mubr.bf16.gmra.mxu1 %v10633_v25  ;;  %6236 = vmatmul.mubr.bf16.gmra.mxu0 %v10728_v39  ;;  %v10911_v1 = vpop.f32.mrf.mxu0  ;;  %v3654_v34 = vmax.f32 %v3321_v47, 0.0  ;;  %v3206_v39 = vadd.f32 %v10766_v31, %v10875_v27  ;;  %v9115_v31 = vld [vmem:[#allocation8 + $0x8e8] ss:$12 sps:$4 sm:$0xff]   ;;  %v9119_v14 = vld [vmem:[#allocation8 + $0xb0] ss:$12 sps:$4 sm:$0xff]  }
 0x292   : > { %6318 = vmatprep.mubr.bf16.mxu1 %v10901_v49  ;;  %v10909_v52 = vpop.f32.mrf.mxu1  ;;  %6245 = vmatprep.mubr.bf16.mxu0 %v10764_v4  ;;  %v3642_v4 = vmax.f32 %v3317_v18, 0.0  ;;  %v3331_v18 = vadd.f32 %v3330_v3, %v3218_v37  ;;  %v9134_v37 = vld [vmem:[#allocation8 + $0x140] ss:$12 sps:$4 sm:$0xff]  }
 0x293   : > { %6315 = vmatpush2.bf16.msra.mxu1 %v9094_v15  ;;  %v10917_v53 = vpop.f32.mrf.mxu0  ;;  %6412 = vmatpush1.bf16.msra.mxu0 %v9109_v11  ;;  %v3202_v11 = vadd.f32 %v10748_v62, %v10875_v27  ;;  %v3319_v47 = vadd.f32 %v10860_v6, %v3206_v39  ;;  %v9122_v62 = vld [vmem:[#allocation8 + $0x8d4] ss:$12 sps:$4 sm:$0xff]  }
 0x294   : > { %v10915_v35 = vpop.f32.mrf.mxu1  ;;  %6316 = vmatprep.subr.bf16.mxu1 %v9102_v40  ;;  %6413 = vmatprep.subr.bf16.mxu0 %v9114_v51  ;;  %v10927_v40 = vpack.c.bf16 %v3629_v10, %v3617_v24  ;;  %v9126_v10 = vld [vmem:[#allocation8 + $0x158] ss:$12 sps:$4 sm:$0xff]  }
 0x295   : > { %v3340_v15 = vpop.f32.mrf.mxu0  ;;  %v3315_v24 = vadd.f32 %v10844_v12, %v3202_v11  ;;  %v3653_v3 = vmax.f32 %v3319_v47, 0.0  ;;  %v9120_v12 = vld [vmem:[#allocation8 + $0x8d0] ss:$12 sps:$4 sm:$0xff]   ;;  %v3228_v47 = vadd.f32 %v10818_v30, %v10849_v42 }
 0x296   : > { %v10921_v45 = vpop.f32.mrf.mxu1 }
 0x297   : > { %6317 = vmatpush2.bf16.msra.mxu1 %v9100_v9  ;;  %v10930_v51 = vpop.f32.mrf.mxu0  ;;  %6414 = vmatpush1.bf16.msra.mxu0 %v9112_v19  ;;  %v10936_v9 = vpack.c.bf16 %v3654_v34, %v3642_v4  ;;  %v3327_v19 = vadd.f32 %v10881_v22, %v3214_v56  ;;  %v3678_v34 = vmax.f32 %v3331_v18, 0.0  ;;  %v3216_v22 = vadd.f32 %v10790_v21, %v10875_v27  ;;  %v9123_v21 = vld [vmem:[#allocation8 + $0x8b8] ss:$12 sps:$4 sm:$0xff]  }
 0x298   : > { %v10932_v49 = vpop.f32.mrf.mxu1  ;;  %7888 = vmatprep.subr.bf16.mxu1 %v9118_v43  ;;  %6415 = vmatprep.subr.bf16.mxu0 %v9117_v32  ;;  %v9127_v43 = vld [vmem:[#allocation8 + $0x98] ss:$12 sps:$4 sm:$0xff]   ;;  %v9125_v32 = vld [vmem:[#allocation8 + $0x8bc] ss:$12 sps:$4 sm:$0xff]   ;;  %v3641_v11 = vmax.f32 %v3315_v24, 0.0  ;;  %v3341_v30 = vadd.f32 %v3340_v15, %v3228_v47 }
 0x299   : > { %12471 = vst [vmem:[#allocation84_spill] sm:$0xff] %v10936_v9  ;;  %6246 = vmatmul.mubr.bf16.gmra.mxu0 %v10752_v63  ;;  %v10941_v39 = vpop.f32.mrf.mxu0  ;;  %v3666_v63 = vmax.f32 %v3327_v19, 0.0  ;;  %v3329_v18 = vadd.f32 %v10886_v16, %v3216_v22  ;;  %v9135_v24 = vld [vmem:[#allocation8 + $0x80] ss:$12 sps:$4 sm:$0xff]  }
 0x29a   : > { %6319 = vmatmul.mubr.bf16.vlgmr.msra.gmra.mxu1 %v10927_v40  ;;  %v10943_v6 = vpop.f32.mrf.mxu1  ;;  %6255 = vmatprep.mubr.bf16.mxu0 %v10788_v46 }
 0x29b   : > { %6328 = vmatprep.mubr.bf16.mxu1 %v10936_v9  ;;  %v10948_v4 = vpop.f32.mrf.mxu0  ;;  %6416 = vmatpush2.bf16.msra.mxu0 %v9115_v31  ;;  %v3212_v31 = vadd.f32 %v10772_v50, %v10875_v27  ;;  %v3224_v9 = vadd.f32 %v10808_v57, %v10849_v42  ;;  %v10969_v19 = vpack.c.bf16 %v3678_v34, %v3666_v63  ;;  %v9130_v50 = vld [vmem:[#allocation8 + $0x8a4] ss:$12 sps:$4 sm:$0xff]   ;;  %v3677_v63 = vmax.f32 %v3329_v18, 0.0  ;;  %v9143_v34 = vld [vmem:[#allocation8 + $0x68] ss:$12 sps:$4 sm:$0xff]  }
 0x29c   : > { %v10950_v38 = vpop.f32.mrf.mxu1  ;;  %7889 = vmatpush3.bf16.msra.mxu1 %v9119_v14  ;;  %6417 = vmatprep.subr.bf16.mxu0 %v9122_v62  ;;  %v10960_v14 = vpack.c.bf16 %v3653_v3, %v3641_v11  ;;  %v9142_v3 = vld [vmem:[#allocation8 + $0x128] ss:$12 sps:$4 sm:$0xff]   ;;  %v9147_v11 = vld [vmem:[#allocation8 + $0x110] ss:$12 sps:$4 sm:$0xff]   ;;  %v3238_v18 = vadd.f32 %v10838_v17, %v10849_v42 }
 0x29d   : > { %7890 = vmatprep.subr.bf16.mxu1 %v9126_v10  ;;  %v3350_v56 = vpop.f32.mrf.mxu0  ;;  %v3325_v16 = vadd.f32 %v10870_v20, %v3212_v31  ;;  %v3337_v22 = vadd.f32 %v10911_v1, %v3224_v9  ;;  %v9128_v20 = vld [vmem:[#allocation8 + $0x8a0] ss:$12 sps:$4 sm:$0xff]   ;;  %v3226_v1 = vadd.f32 %v10814_v0, %v10875_v27  ;;  %v9131_v0 = vld [vmem:[#allocation8 + $0x888] ss:$12 sps:$4 sm:$0xff]  }
 0x29e   : > { %v10954_v46 = vpop.f32.mrf.mxu1  ;;  %v3351_v17 = vadd.f32 %v3350_v56, %v3238_v18 }
 0x29f   : > { %v10963_v62 = vpop.f32.mrf.mxu0  ;;  %6418 = vmatpush2.bf16.msra.mxu0 %v9120_v12  ;;  %v3665_v9 = vmax.f32 %v3325_v16, 0.0  ;;  %v9149_v16 = vld [vmem:[#allocation8 + $0x50] ss:$12 sps:$4 sm:$0xff]  }
 0x2a0   : > { %v10965_v10 = vpop.f32.mrf.mxu1  ;;  %7891 = vmatpush3.bf16.msra.mxu1 %v9127_v43  ;;  %6419 = vmatprep.subr.bf16.mxu0 %v9125_v32  ;;  %v3702_v32 = vmax.f32 %v3341_v30, 0.0  ;;  %v3339_v30 = vadd.f32 %v10917_v53, %v3226_v1 }
 0x2a1   : > { %7892 = vmatprep.subr.bf16.mxu1 %v9134_v37  ;;  %6256 = vmatmul.mubr.bf16.gmra.mxu0 %v10776_v58  ;;  %v10974_v12 = vpop.f32.mrf.mxu0  ;;  %v9133_v37 = vld [vmem:[#allocation8 + $0x88c] ss:$12 sps:$4 sm:$0xff]   ;;  %v3234_v58 = vadd.f32 %v10829_v13, %v10849_v42 }
 0x2a2   : > { %6329 = vmatmul.mubr.bf16.gmra.mxu1 %v10960_v14  ;;  %v10976_v43 = vpop.f32.mrf.mxu1  ;;  %6265 = vmatprep.mubr.bf16.mxu0 %v10812_v54  ;;  %v3690_v54 = vmax.f32 %v3337_v22, 0.0 }
 0x2a3   : > { %6338 = vmatprep.mubr.bf16.mxu1 %v10969_v19  ;;  %v10981_v57 = vpop.f32.mrf.mxu0  ;;  %6420 = vmatpush2.bf16.msra.mxu0 %v9123_v21  ;;  %v3222_v21 = vadd.f32 %v10796_v41, %v10875_v27  ;;  %v9138_v41 = vld [vmem:[#allocation8 + $0x874] ss:$12 sps:$4 sm:$0xff]   ;;  %v3347_v1 = vadd.f32 %v10941_v39, %v3234_v58  ;;  %v3236_v58 = vadd.f32 %v10834_v7, %v10875_v27  ;;  %v9139_v7 = vld [vmem:[#allocation8 + $0x858] ss:$12 sps:$4 sm:$0xff]  }
 0x2a4   : > { %v10983_v15 = vpop.f32.mrf.mxu1  ;;  %7893 = vmatpush3.bf16.msra.mxu1 %v9135_v24  ;;  %6421 = vmatprep.subr.bf16.mxu0 %v9130_v50  ;;  %v10993_v24 = vpack.c.bf16 %v3677_v63, %v3665_v9  ;;  %v11002_v22 = vpack.c.bf16 %v3702_v32, %v3690_v54  ;;  %v9151_v63 = vld [vmem:[#allocation8 + $0xf8] ss:$12 sps:$4 sm:$0xff]   ;;  %v3701_v54 = vmax.f32 %v3339_v30, 0.0  ;;  %v9155_v9 = vld [vmem:[#allocation8 + $0xe0] ss:$12 sps:$4 sm:$0xff]   ;;  %v3248_v30 = vadd.f32 %v10864_v23, %v10849_v42 }
 0x2a5   : > { %7894 = vmatprep.subr.bf16.mxu1 %v9142_v3  ;;  %v3360_v47 = vpop.f32.mrf.mxu0  ;;  %v3335_v53 = vadd.f32 %v10899_v33, %v3222_v21  ;;  %v9136_v33 = vld [vmem:[#allocation8 + $0x870] ss:$12 sps:$4 sm:$0xff]   ;;  %v9152_v32 = vld [vmem:[#allocation8 + $0x38] ss:$12 sps:$4 sm:$0xff]  }
 0x2a6   : > { %v10987_v31 = vpop.f32.mrf.mxu1  ;;  %v3361_v23 = vadd.f32 %v3360_v47, %v3248_v30  ;;  %v3246_v30 = vadd.f32 %v10858_v59, %v10875_v27  ;;  %v3242_v59 = vadd.f32 %v10842_v48, %v10875_v27 }
 0x2a7   : > { %v10996_v50 = vpop.f32.mrf.mxu0  ;;  %6422 = vmatpush2.bf16.msra.mxu0 %v9128_v20  ;;  %v3689_v39 = vmax.f32 %v3335_v53, 0.0  ;;  %v9156_v53 = vld [vmem:[#allocation8 + $0x20] ss:$12 sps:$4 sm:$0xff]  }
 0x2a8   : > { %v10998_v3 = vpop.f32.mrf.mxu1  ;;  %7895 = vmatpush3.bf16.msra.mxu1 %v9143_v34  ;;  %6423 = vmatprep.subr.bf16.mxu0 %v9133_v37  ;;  %v3726_v37 = vmax.f32 %v3351_v17, 0.0  ;;  %v3349_v17 = vadd.f32 %v10948_v4, %v3236_v58 }
 0x2a9   : > { %7896 = vmatprep.subr.bf16.mxu1 %v9147_v11  ;;  %6266 = vmatmul.mubr.bf16.gmra.mxu0 %v10800_v55  ;;  %v11007_v20 = vpop.f32.mrf.mxu0  ;;  %v9141_v11 = vld [vmem:[#allocation8 + $0x85c] ss:$12 sps:$4 sm:$0xff]   ;;  %v3244_v55 = vadd.f32 %v10853_v61, %v10849_v42 }
 0x2aa   : > { %6339 = vmatmul.mubr.bf16.gmra.mxu1 %v10993_v24  ;;  %v11009_v34 = vpop.f32.mrf.mxu1  ;;  %6275 = vmatprep.mubr.bf16.mxu0 %v10832_v2  ;;  %v3714_v2 = vmax.f32 %v3347_v1, 0.0 }
 0x2ab   : > { %6348 = vmatprep.mubr.bf16.mxu1 %v11002_v22  ;;  %v11014_v13 = vpop.f32.mrf.mxu0  ;;  %6424 = vmatpush2.bf16.msra.mxu0 %v9131_v0  ;;  %v3232_v0 = vadd.f32 %v10820_v44, %v10875_v27  ;;  %v9146_v44 = vld [vmem:[#allocation8 + $0x844] ss:$12 sps:$4 sm:$0xff]   ;;  %v3357_v58 = vadd.f32 %v10974_v12, %v3244_v55 }
 0x2ac   : > { %v11016_v56 = vpop.f32.mrf.mxu1  ;;  %7897 = vmatpush3.bf16.msra.mxu1 %v9149_v16  ;;  %6425 = vmatprep.subr.bf16.mxu0 %v9138_v41  ;;  %v11026_v16 = vpack.c.bf16 %v3701_v54, %v3689_v39  ;;  %v11035_v1 = vpack.c.bf16 %v3726_v37, %v3714_v2  ;;  %v9157_v54 = vld [vmem:[#allocation8 + $0xc8] ss:$12 sps:$4 sm:$0xff]   ;;  %v3725_v2 = vmax.f32 %v3349_v17, 0.0  ;;  %v9144_v37 = vld [vmem:[#allocation8 + $0x840] ss:$12 sps:$4 sm:$0xff]   ;;  %v3258_v17 = vadd.f32 %v10890_v8, %v10849_v42 }
 0x2ad   : > { %7898 = vmatprep.subr.bf16.mxu1 %v9151_v63  ;;  %v3370_v18 = vpop.f32.mrf.mxu0  ;;  %v3345_v4 = vadd.f32 %v10930_v51, %v3232_v0  ;;  %v9158_v51 = vld [vmem:[#allocation8 + $0x8] ss:$12 sps:$4 sm:$0xff]   ;;  %v9164_v39 = vld [vmem:[#allocation8 + $0x470] ss:$12 sps:$4 sm:$0xff]  }
 0x2ae   : > { %v11020_v21 = vpop.f32.mrf.mxu1  ;;  %12472 = vst [vmem:[#allocation85_spill] sm:$0xff] %v11026_v16  ;;  %12473 = vst [vmem:[#allocation86_spill] sm:$0xff] %v11035_v1 }
 0x2af   : > { %v11029_v41 = vpop.f32.mrf.mxu0  ;;  %6426 = vmatpush2.bf16.msra.mxu0 %v9136_v33  ;;  %v3713_v55 = vmax.f32 %v3345_v4, 0.0  ;;  %v3359_v4 = vadd.f32 %v10981_v57, %v3246_v30 }
 0x2b0   : > { %v11031_v63 = vpop.f32.mrf.mxu1  ;;  %7899 = vmatpush3.bf16.msra.mxu1 %v9152_v32  ;;  %6427 = vmatprep.subr.bf16.mxu0 %v9141_v11  ;;  %v3750_v11 = vmax.f32 %v3361_v23, 0.0 }
 0x2b1   : > { %7900 = vmatprep.subr.bf16.mxu1 %v9155_v9  ;;  %6276 = vmatmul.mubr.bf16.gmra.mxu0 %v10824_v28  ;;  %v11040_v33 = vpop.f32.mrf.mxu0  ;;  %v9148_v9 = vld [vmem:[#allocation8 + $0x2f0] ss:$12 sps:$4 sm:$0xff]   ;;  %v12474_v28 = vld [vmem:[#allocation30_spill] sm:$0xff] }
 0x2b2   : > { %6349 = vmatmul.mubr.bf16.gmra.mxu1 %v11026_v16  ;;  %v11042_v32 = vpop.f32.mrf.mxu1 }
 0x2b3   : > { %6358 = vmatprep.mubr.bf16.mxu1 %v11035_v1  ;;  %v11046_v61 = vpop.f32.mrf.mxu0  ;;  %6428 = vmatpush2.bf16.msra.mxu0 %v9139_v7  ;;  %v11058_v7 = vrot.slane %v10840_v36, %v12474_v28  ;;  %v3254_v28 = vadd.f32 %v10879_v60, %v10849_v42 }
 0x2b4   : > { %v11048_v47 = vpop.f32.mrf.mxu1  ;;  %7901 = vmatpush3.bf16.msra.mxu1 %v9156_v53  ;;  %6429 = vmatprep.subr.bf16.mxu0 %v9146_v44  ;;  %v12475_v53 = vsub.s32 3, %v9939_v26  ;;  %v3738_v44 = vmax.f32 %v3357_v58, 0.0  ;;  %v3371_v26 = vadd.f32 %v3370_v18, %v3258_v17 }
 0x2b5   : > { %7902 = vmatprep.subr.bf16.mxu1 %v9157_v54  ;;  %v3380_v12 = vpop.f32.mrf.mxu0  ;;  %v11067_v54 = vpack.c.bf16 %v3725_v2, %v3713_v55  ;;  %v3422_v2 = vadd.f32 %v10950_v38, %v11058_v7  ;;  %v3367_v60 = vadd.f32 %v11007_v20, %v3254_v28  ;;  %v3418_v18 = vadd.f32 %v10932_v49, %v11058_v7  ;;  %v12476_v49 = vld [vmem:[#allocation82_spill] sm:$0xff] }
 0x2b6   : > { %v11052_v0 = vpop.f32.mrf.mxu1  ;;  %v11063_v23 = vrot.slane %v10840_v36, %v12475_v53  ;;  %v11074_v16 = vpack.c.bf16 %v3750_v11, %v3738_v44  ;;  %v3355_v36 = vadd.f32 %v10963_v62, %v3242_v59  ;;  %v3256_v38 = vadd.f32 %v10884_v29, %v10875_v27 }
 0x2b7   : > { %v3530_v8 = vpop.f32.mrf.mxu0  ;;  %6430 = vmatpush2.bf16.msra.mxu0 %v9144_v37  ;;  %v3749_v37 = vmax.f32 %v3359_v4, 0.0  ;;  %v3252_v17 = vadd.f32 %v12476_v49, %v10875_v27  ;;  %v3268_v53 = vadd.f32 %v10921_v45, %v10849_v42  ;;  %v3762_v44 = vmax.f32 %v3367_v60, 0.0 }
 0x2b8   : > { %v11070_v1 = vpop.f32.mrf.mxu1  ;;  %7903 = vmatpush3.bf16.msra.mxu1 %v9158_v51  ;;  %7952 = vmatprep.subr.bf16.mxu0 %v9148_v9  ;;  %v3420_v58 = vadd.f32 %v10943_v6, %v11063_v23  ;;  %v3424_v11 = vadd.f32 %v10954_v46, %v11063_v23  ;;  %v3774_v9 = vmax.f32 %v3371_v26, 0.0  ;;  %v3737_v30 = vmax.f32 %v3355_v36, 0.0 }
 0x2b9   : > { %8016 = vmatprep.subr.bf16.mxu1 %v9164_v39  ;;  %v3532_v57 = vpop.f32.mrf.mxu0  ;;  %v3531_v28 = vadd.f32 %v3530_v8, %v3418_v18  ;;  %v3264_v46 = vadd.f32 %v10909_v52, %v10849_v42  ;;  %v3369_v29 = vadd.f32 %v11014_v13, %v3256_v38  ;;  %v3365_v45 = vadd.f32 %v10996_v50, %v3252_v17 }
 0x2ba   : > { %6359 = vmatmul.mubr.bf16.gmra.mxu1 %v11067_v54  ;;  %v11078_v48 = vpop.f32.mrf.mxu1  ;;  %v3533_v39 = vadd.f32 %v3532_v57, %v3420_v58  ;;  %v11102_v4 = vpack.c.bf16 %v3749_v37, %v3737_v30  ;;  %v3381_v57 = vadd.f32 %v3380_v12, %v3268_v53  ;;  %v11107_v18 = vpack.c.bf16 %v3774_v9, %v3762_v44 }
 0x2bb   : > { %6368 = vmatprep.mubr.bf16.mxu1 %v11074_v16  ;;  %v3534_v51 = vpop.f32.mrf.mxu0  ;;  %v3619_v60 = vmax.f32 %v3531_v28, 0.0  ;;  %v3430_v52 = vadd.f32 %v10976_v43, %v11063_v23  ;;  %v3432_v13 = vadd.f32 %v10983_v15, %v11058_v7  ;;  %v3377_v12 = vadd.f32 %v11040_v33, %v3264_v46  ;;  %v9153_v43 = vld [vmem:[#allocation8 + $0x2d8] ss:$12 sps:$4 sm:$0xff]  }
 0x2bc   : > { %v11088_v62 = vpop.f32.mrf.mxu1  ;;  %v3535_v6 = vadd.f32 %v3534_v51, %v3422_v2  ;;  %v3620_v58 = vmax.f32 %v3533_v39, 0.0  ;;  %v3428_v50 = vadd.f32 %v10965_v10, %v11058_v7  ;;  %v3773_v9 = vmax.f32 %v3369_v29, 0.0  ;;  %v9154_v46 = vld [vmem:[#allocation8 + $0x218] ss:$12 sps:$4 sm:$0xff]  }
 0x2bd   : > { %v3536_v55 = vpop.f32.mrf.mxu0  ;;  %v3434_v15 = vadd.f32 %v10987_v31, %v11063_v23  ;;  %v3798_v30 = vmax.f32 %v3381_v57, 0.0  ;;  %v3761_v49 = vmax.f32 %v3365_v45, 0.0  ;;  %v3786_v44 = vmax.f32 %v3377_v12, 0.0 }
 0x2be   : > { %v11094_v20 = vpop.f32.mrf.mxu1  ;;  %v3537_v59 = vadd.f32 %v3536_v55, %v3424_v11  ;;  %v3631_v26 = vmax.f32 %v3535_v6, 0.0  ;;  %v9150_v11 = vld [vmem:[#allocation8 + $0x230] ss:$12 sps:$4 sm:$0xff]   ;;  %v3266_v55 = vadd.f32 %v10915_v35, %v10875_v27  ;;  %v3262_v31 = vadd.f32 %v10897_v5, %v10875_v27 }
 0x2bf   : > { %v3540_v36 = vpop.f32.mrf.mxu0  ;;  %v11137_v29 = vpack.c.bf16 %v3773_v9, %v3761_v49 }
 0x2c0   : > { %v11105_v8 = vpop.f32.mrf.mxu1  ;;  %v3632_v2 = vmax.f32 %v3537_v59, 0.0  ;;  %v11123_v39 = vpack.c.bf16 %v3631_v26, %v3619_v60  ;;  %v3541_v10 = vadd.f32 %v3540_v36, %v3428_v50  ;;  %v3379_v26 = vadd.f32 %v11046_v61, %v3266_v55 }
 0x2c1   : > { %v3542_v42 = vpop.f32.mrf.mxu0  ;;  %v11142_v60 = vpack.c.bf16 %v3798_v30, %v3786_v44  ;;  %v3440_v61 = vadd.f32 %v11009_v34, %v11063_v23  ;;  %v9161_v34 = vld [vmem:[#allocation8 + $0x2a8] ss:$12 sps:$4 sm:$0xff]  }
 0x2c2   : > { %6369 = vmatmul.mubr.bf16.gmra.mxu1 %v11102_v4  ;;  %v11111_v51 = vpop.f32.mrf.mxu1  ;;  %v11119_v37 = vpack.c.bf16 %v3632_v2, %v3620_v58  ;;  %v3543_v33 = vadd.f32 %v3542_v42, %v3430_v52  ;;  %v9159_v58 = vld [vmem:[#allocation8 + $0x2c0] ss:$12 sps:$4 sm:$0xff]   ;;  %v3375_v42 = vadd.f32 %v11029_v41, %v3262_v31  ;;  %v3643_v52 = vmax.f32 %v3541_v10, 0.0  ;;  %v9162_v10 = vld [vmem:[#allocation8 + $0x1e8] ss:$12 sps:$4 sm:$0xff]  }
 0x2c3   : > { %6378 = vmatprep.mubr.bf16.mxu1 %v11107_v18  ;;  %v3544_v38 = vpop.f32.mrf.mxu0  ;;  %12477 = vst [vmem:[#allocation82_spill] sm:$0xff] %v11142_v60  ;;  %v3438_v41 = vadd.f32 %v10998_v3, %v11058_v7  ;;  %v3797_v50 = vmax.f32 %v3379_v26, 0.0 }
 0x2c4   : > { %v11125_v6 = vpop.f32.mrf.mxu1  ;;  %v3545_v28 = vadd.f32 %v3544_v38, %v3432_v13  ;;  %6431 = vmatprep.mubr.bf16.mxu0 %v11119_v37  ;;  %v3644_v2 = vmax.f32 %v3543_v33, 0.0  ;;  %v3442_v13 = vadd.f32 %v11016_v56, %v11058_v7  ;;  %v3444_v56 = vadd.f32 %v11020_v21, %v11063_v23 }
 0x2c5   : > { %v3546_v53 = vpop.f32.mrf.mxu0  ;;  %6432 = vmatmul.mubr.bf16.vlgmr.msra.gmra.mxu0 %v11123_v39  ;;  %v3785_v33 = vmax.f32 %v3375_v42, 0.0  ;;  %v12480_v42 = vld [vmem:[#allocation19_spill] sm:$0xff] }
 0x2c6   : > { %v11132_v17 = vpop.f32.mrf.mxu1  ;;  %v3547_v59 = vadd.f32 %v3546_v53, %v3434_v15  ;;  %7953 = vmatpush3.bf16.msra.mxu0 %v9150_v11  ;;  %v3655_v57 = vmax.f32 %v3545_v28, 0.0  ;;  %v9160_v11 = vld [vmem:[#allocation8 + $0x200] ss:$12 sps:$4 sm:$0xff]  }
 0x2c7   : > { %v3550_v36 = vpop.f32.mrf.mxu0  ;;  %7954 = vmatprep.subr.bf16.mxu0 %v9153_v43  ;;  %v11167_v53 = vpack.c.bf16 %v3797_v50, %v3785_v33  ;;  %v9167_v50 = vld [vmem:[#allocation8 + $0x278] ss:$12 sps:$4 sm:$0xff]  }
 0x2c8   : > { %v11140_v35 = vpop.f32.mrf.mxu1  ;;  %v3656_v45 = vmax.f32 %v3547_v59, 0.0  ;;  %v11157_v9 = vpack.c.bf16 %v3655_v57, %v3643_v52  ;;  %v3551_v28 = vadd.f32 %v3550_v36, %v3438_v41 }
 0x2c9   : > { %v3552_v27 = vpop.f32.mrf.mxu0  ;;  %12479 = vst [vmem:[#allocation88_spill] sm:$0xff] %v11167_v53 }
 0x2ca   : > { %6379 = vmatmul.mubr.bf16.gmra.mxu1 %v11137_v29  ;;  %v11146_v5 = vpop.f32.mrf.mxu1  ;;  %v11153_v12 = vpack.c.bf16 %v3656_v45, %v3644_v2  ;;  %7955 = vmatpush3.bf16.msra.mxu0 %v9154_v46  ;;  %12478 = vst [vmem:[#allocation87_spill] sm:$0xff] %v11157_v9  ;;  %v3553_v15 = vadd.f32 %v3552_v27, %v3440_v61  ;;  %v9163_v46 = vld [vmem:[#allocation8 + $0x290] ss:$12 sps:$4 sm:$0xff]   ;;  %v3667_v57 = vmax.f32 %v3551_v28, 0.0 }
 0x2cb   : > { %6388 = vmatprep.mubr.bf16.mxu1 %v11142_v60  ;;  %v3554_v43 = vpop.f32.mrf.mxu0  ;;  %7956 = vmatprep.subr.bf16.mxu0 %v9159_v58  ;;  %v3450_v2 = vadd.f32 %v11042_v32, %v11063_v23  ;;  %v3452_v45 = vadd.f32 %v11048_v47, %v11058_v7  ;;  %v9165_v27 = vld [vmem:[#allocation8 + $0x1d0] ss:$12 sps:$4 sm:$0xff]   ;;  %v3448_v61 = vadd.f32 %v11031_v63, %v11058_v7 }
 0x2cc   : > { %v11159_v38 = vpop.f32.mrf.mxu1  ;;  %v3555_v30 = vadd.f32 %v3554_v43, %v3442_v13  ;;  %6441 = vmatprep.mubr.bf16.mxu0 %v11153_v12  ;;  %v3668_v31 = vmax.f32 %v3553_v15, 0.0  ;;  %v3454_v32 = vadd.f32 %v11052_v0, %v11063_v23  ;;  %v9169_v0 = vld [vmem:[#allocation8 + $0x1b8] ss:$12 sps:$4 sm:$0xff]  }
 0x2cd   : > { %v3556_v3 = vpop.f32.mrf.mxu0  ;;  %6442 = vmatmul.mubr.bf16.gmra.mxu0 %v11157_v9  ;;  %v12519_v9 = vld [vmem:[#allocation54_spill] sm:$0xff] }
 0x2ce   : > { %v11164_v55 = vpop.f32.mrf.mxu1  ;;  %v3557_v49 = vadd.f32 %v3556_v3, %v3444_v56  ;;  %7957 = vmatpush3.bf16.msra.mxu0 %v9160_v11  ;;  %v3679_v44 = vmax.f32 %v3555_v30, 0.0  ;;  %v9166_v30 = vld [vmem:[#allocation8 + $0x3b0] ss:$12 sps:$4 sm:$0xff]  }
 0x2cf   : > { %v3560_v21 = vpop.f32.mrf.mxu0  ;;  %7958 = vmatprep.subr.bf16.mxu0 %v9161_v34 }
 0x2d0   : > { %v11169_v59 = vpop.f32.mrf.mxu1  ;;  %v3680_v26 = vmax.f32 %v3557_v49, 0.0  ;;  %v11183_v13 = vpack.c.bf16 %v3679_v44, %v3667_v57  ;;  %v3561_v34 = vadd.f32 %v3560_v21, %v3448_v61  ;;  %v9168_v49 = vld [vmem:[#allocation8 + $0x458] ss:$12 sps:$4 sm:$0xff]   ;;  %v3458_v61 = vadd.f32 %v11070_v1, %v11058_v7 }
 0x2d1   : > { %v3562_v58 = vpop.f32.mrf.mxu0  ;;  %v12483_v21 = vld [vmem:[#allocation18_spill] sm:$0xff] }
 0x2d2   : > { %6389 = vmatmul.mubr.bf16.gmra.mxu1 %v11167_v53  ;;  %v11172_v36 = vpop.f32.mrf.mxu1  ;;  %v11179_v52 = vpack.c.bf16 %v3680_v26, %v3668_v31  ;;  %7959 = vmatpush3.bf16.msra.mxu0 %v9162_v10  ;;  %12482 = vst [vmem:[#allocation89_spill] sm:$0xff] %v11183_v13  ;;  %v3563_v47 = vadd.f32 %v3562_v58, %v3450_v2  ;;  %v3691_v31 = vmax.f32 %v3561_v34, 0.0  ;;  %v9201_v53 = vld [vmem:[#allocation8 + $0x4b8] ss:$12 sps:$4 sm:$0xff]  }
 0x2d3   : > { %6544 = vmatprep.mubr.bf16.mxu1 %v12480_v42  ;;  %v3564_v41 = vpop.f32.mrf.mxu0  ;;  %7960 = vmatprep.subr.bf16.mxu0 %v9163_v46  ;;  %v9171_v46 = vld [vmem:[#allocation8 + $0x260] ss:$12 sps:$4 sm:$0xff]   ;;  %v3460_v58 = vadd.f32 %v11078_v48, %v11063_v23  ;;  %v3462_v2 = vadd.f32 %v11088_v62, %v11058_v7  ;;  %v3464_v62 = vadd.f32 %v11094_v20, %v11063_v23  ;;  %v9176_v20 = vld [vmem:[#allocation8 + $0x428] ss:$12 sps:$4 sm:$0xff]  }
 0x2d4   : > { %12481 = vst [vmem:[#allocation19_spill] sm:$0xff] %v11179_v52  ;;  %v11185_v11 = vpop.f32.mrf.mxu1  ;;  %v3565_v43 = vadd.f32 %v3564_v41, %v3452_v45  ;;  %6451 = vmatprep.mubr.bf16.mxu0 %v11179_v52  ;;  %v3692_v10 = vmax.f32 %v3563_v47, 0.0  ;;  %v12484_v45 = vld [vmem:[#allocation22_spill] sm:$0xff]  ;;  %v9172_v48 = vld [vmem:[#allocation8 + $0x440] ss:$12 sps:$4 sm:$0xff]  }
 0x2d5   : > { %v3566_v15 = vpop.f32.mrf.mxu0  ;;  %6452 = vmatmul.mubr.bf16.gmra.mxu0 %v11183_v13  ;;  %v9173_v47 = vld [vmem:[#allocation8 + $0x1a0] ss:$12 sps:$4 sm:$0xff]  }
 0x2d6   : > { %v11190_v56 = vpop.f32.mrf.mxu1  ;;  %v3567_v63 = vadd.f32 %v3566_v15, %v3454_v32  ;;  %7961 = vmatpush3.bf16.msra.mxu0 %v9165_v27  ;;  %v3703_v33 = vmax.f32 %v3565_v43, 0.0  ;;  %v9170_v27 = vld [vmem:[#allocation8 + $0x398] ss:$12 sps:$4 sm:$0xff]   ;;  %v9175_v15 = vld [vmem:[#allocation8 + $0x248] ss:$12 sps:$4 sm:$0xff]  }
 0x2d7   : > { %v3570_v28 = vpop.f32.mrf.mxu0  ;;  %7962 = vmatprep.subr.bf16.mxu0 %v9167_v50 }
 0x2d8   : > { %v11193_v3 = vpop.f32.mrf.mxu1  ;;  %v3704_v44 = vmax.f32 %v3567_v63, 0.0  ;;  %v11207_v41 = vpack.c.bf16 %v3703_v33, %v3691_v31  ;;  %v3571_v63 = vadd.f32 %v3570_v28, %v3458_v61  ;;  %v9177_v31 = vld [vmem:[#allocation8 + $0x188] ss:$12 sps:$4 sm:$0xff]   ;;  %v9180_v28 = vld [vmem:[#allocation8 + $0x5f0] ss:$12 sps:$4 sm:$0xff]   ;;  %v3472_v61 = vadd.f32 %v11125_v6, %v11058_v7 }
 0x2d9   : > { %v3572_v26 = vpop.f32.mrf.mxu0  ;;  %v3474_v6 = vadd.f32 %v11132_v17, %v11063_v23  ;;  %v9183_v17 = vld [vmem:[#allocation8 + $0x3f8] ss:$12 sps:$4 sm:$0xff]  }
 0x2da   : > { %6545 = vmatmul.mubr.bf16.vlgmr.msra.gmra.mxu1 %v12483_v21  ;;  %v11196_v57 = vpop.f32.mrf.mxu1  ;;  %v11203_v42 = vpack.c.bf16 %v3704_v44, %v3692_v10  ;;  %12486 = vst [vmem:[#allocation22_spill] sm:$0xff] %v11207_v41  ;;  %7963 = vmatpush3.bf16.msra.mxu0 %v9169_v0  ;;  %v3573_v43 = vadd.f32 %v3572_v26, %v3460_v58  ;;  %v3715_v26 = vmax.f32 %v3571_v63, 0.0  ;;  %v12487_v58 = vld [vmem:[#allocation21_spill] sm:$0xff] }
 0x2db   : > { %6552 = vmatprep.mubr.bf16.mxu1 %v12484_v45  ;;  %8017 = vmatpush3.bf16.msra.mxu1 %v9166_v30  ;;  %v3574_v50 = vpop.f32.mrf.mxu0 }
 0x2dc   : > { %12485 = vst [vmem:[#allocation18_spill] sm:$0xff] %v11203_v42  ;;  %v11209_v32 = vpop.f32.mrf.mxu1  ;;  %8018 = vmatprep.subr.bf16.mxu1 %v9168_v49  ;;  %v3575_v34 = vadd.f32 %v3574_v50, %v3462_v2  ;;  %6461 = vmatprep.mubr.bf16.mxu0 %v11203_v42  ;;  %v9174_v49 = vld [vmem:[#allocation8 + $0x380] ss:$12 sps:$4 sm:$0xff]   ;;  %v3716_v21 = vmax.f32 %v3573_v43, 0.0  ;;  %v12488_v50 = vld [vmem:[#allocation24_spill] sm:$0xff] }
 0x2dd   : > { %7964 = vmatprep.subr.bf16.mxu0 %v9171_v46  ;;  %v3576_v1 = vpop.f32.mrf.mxu0  ;;  %6462 = vmatmul.mubr.bf16.gmra.mxu0 %v11207_v41 }
 0x2de   : > { %v11214_v30 = vpop.f32.mrf.mxu1  ;;  %v3577_v33 = vadd.f32 %v3576_v1, %v3464_v62  ;;  %v3727_v0 = vmax.f32 %v3575_v34, 0.0  ;;  %7965 = vmatpush3.bf16.msra.mxu0 %v9173_v47  ;;  %v9178_v47 = vld [vmem:[#allocation8 + $0x368] ss:$12 sps:$4 sm:$0xff]   ;;  %v3468_v62 = vadd.f32 %v11105_v8, %v11058_v7 }
 0x2df   : > { %8019 = vmatpush3.bf16.msra.mxu1 %v9170_v27  ;;  %v3580_v10 = vpop.f32.mrf.mxu0  ;;  %7966 = vmatprep.subr.bf16.mxu0 %v9175_v15  ;;  %v3470_v27 = vadd.f32 %v11111_v51, %v11063_v23  ;;  %v9179_v51 = vld [vmem:[#allocation8 + $0x410] ss:$12 sps:$4 sm:$0xff]  }
 0x2e0   : > { %v11217_v44 = vpop.f32.mrf.mxu1  ;;  %8020 = vmatprep.subr.bf16.mxu1 %v9172_v48  ;;  %v3728_v46 = vmax.f32 %v3577_v33, 0.0  ;;  %v11231_v43 = vpack.c.bf16 %v3727_v0, %v3715_v26  ;;  %v3581_v33 = vadd.f32 %v3580_v10, %v3468_v62  ;;  %v9181_v0 = vld [vmem:[#allocation8 + $0x350] ss:$12 sps:$4 sm:$0xff]  }
 0x2e1   : > { %v3582_v2 = vpop.f32.mrf.mxu0 }
 0x2e2   : > { %6553 = vmatmul.mubr.bf16.gmra.mxu1 %v12487_v58  ;;  %v11220_v45 = vpop.f32.mrf.mxu1  ;;  %v11227_v48 = vpack.c.bf16 %v3728_v46, %v3716_v21  ;;  %12490 = vst [vmem:[#allocation24_spill] sm:$0xff] %v11231_v43  ;;  %7967 = vmatpush3.bf16.msra.mxu0 %v9177_v31  ;;  %v3583_v63 = vadd.f32 %v3582_v2, %v3470_v27  ;;  %v3739_v2 = vmax.f32 %v3581_v33, 0.0  ;;  %v12491_v27 = vld [vmem:[#allocation23_spill] sm:$0xff] }
 0x2e3   : > { %6560 = vmatprep.mubr.bf16.mxu1 %v12488_v50  ;;  %8021 = vmatpush3.bf16.msra.mxu1 %v9174_v49  ;;  %v3584_v34 = vpop.f32.mrf.mxu0  ;;  %v3482_v50 = vadd.f32 %v11159_v38, %v11058_v7  ;;  %v9187_v33 = vld [vmem:[#allocation8 + $0x3e0] ss:$12 sps:$4 sm:$0xff]  }
 0x2e4   : > { %12489 = vst [vmem:[#allocation21_spill] sm:$0xff] %v11227_v48  ;;  %v11233_v15 = vpop.f32.mrf.mxu1  ;;  %8022 = vmatprep.subr.bf16.mxu1 %v9176_v20  ;;  %v3585_v1 = vadd.f32 %v3584_v34, %v3472_v61  ;;  %6471 = vmatprep.mubr.bf16.mxu0 %v11227_v48  ;;  %v3740_v26 = vmax.f32 %v3583_v63, 0.0  ;;  %v3480_v61 = vadd.f32 %v11146_v5, %v11063_v23  ;;  %v9184_v34 = vld [vmem:[#allocation8 + $0x338] ss:$12 sps:$4 sm:$0xff]  }
 0x2e5   : > { %8080 = vmatprep.subr.bf16.mxu0 %v9180_v28  ;;  %v3586_v49 = vpop.f32.mrf.mxu0  ;;  %6472 = vmatmul.mubr.bf16.gmra.mxu0 %v11231_v43  ;;  %v3484_v5 = vadd.f32 %v11164_v55, %v11063_v23  ;;  %v4281_v55 = vld [vmem:[#allocation10] sm:$0x7] }
 0x2e6   : > { %v11238_v21 = vpop.f32.mrf.mxu1  ;;  %v3587_v8 = vadd.f32 %v3586_v49, %v3474_v6  ;;  %v3751_v20 = vmax.f32 %v3585_v1, 0.0 }
 0x2e7   : > { %8023 = vmatpush3.bf16.msra.mxu1 %v9178_v47  ;;  %v3590_v31 = vpop.f32.mrf.mxu0  ;;  %v12492_v47 = vld [vmem:[#allocation26_spill] sm:$0xff] }
 0x2e8   : > { %v11241_v46 = vpop.f32.mrf.mxu1  ;;  %8024 = vmatprep.subr.bf16.mxu1 %v9179_v51  ;;  %v3752_v58 = vmax.f32 %v3587_v8, 0.0  ;;  %v3478_v51 = vadd.f32 %v11140_v35, %v11058_v7  ;;  %v11255_v6 = vpack.c.bf16 %v3751_v20, %v3739_v2  ;;  %v9188_v20 = vld [vmem:[#allocation8 + $0x320] ss:$12 sps:$4 sm:$0xff]  }
 0x2e9   : > { %v3592_v10 = vpop.f32.mrf.mxu0 }
 0x2ea   : > { %6561 = vmatmul.mubr.bf16.gmra.mxu1 %v12491_v27  ;;  %v11244_v28 = vpop.f32.mrf.mxu1  ;;  %v11251_v62 = vpack.c.bf16 %v3752_v58, %v3740_v26  ;;  %12494 = vst [vmem:[#allocation26_spill] sm:$0xff] %v11255_v6  ;;  %v3593_v38 = vadd.f32 %v3592_v10, %v3480_v61  ;;  %v3591_v8 = vadd.f32 %v3590_v31, %v3478_v51  ;;  %v9189_v27 = vld [vmem:[#allocation8 + $0x3c8] ss:$12 sps:$4 sm:$0xff]  }
 0x2eb   : > { %6568 = vmatprep.mubr.bf16.mxu1 %v12492_v47  ;;  %8025 = vmatpush3.bf16.msra.mxu1 %v9181_v0  ;;  %v3594_v63 = vpop.f32.mrf.mxu0  ;;  %v12495_v47 = vld [vmem:[#allocation25_spill] sm:$0xff] }
 0x2ec   : > { %12493 = vst [vmem:[#allocation23_spill] sm:$0xff] %v11251_v62  ;;  %v11257_v1 = vpop.f32.mrf.mxu1  ;;  %8026 = vmatprep.subr.bf16.mxu1 %v9183_v17  ;;  %v3595_v49 = vadd.f32 %v3594_v63, %v3482_v50  ;;  %6481 = vmatprep.mubr.bf16.mxu0 %v11251_v62  ;;  %v3764_v10 = vmax.f32 %v3593_v38, 0.0  ;;  %v3763_v50 = vmax.f32 %v3591_v8, 0.0  ;;  %v3490_v63 = vadd.f32 %v11172_v36, %v11063_v23  ;;  %v12498_v8 = vld [vmem:[#allocation16_spill] sm:$0xff]  ;;  %v9196_v36 = vld [vmem:[#allocation8 + $0x770] ss:$12 sps:$4 sm:$0xff]  }
 0x2ed   : > { %v3596_v0 = vpop.f32.mrf.mxu0  ;;  %6482 = vmatmul.mubr.bf16.gmra.mxu0 %v11255_v6  ;;  %v3488_v38 = vadd.f32 %v11169_v59, %v11058_v7  ;;  %v12509_v62 = vld [vmem:[#allocation20_spill] sm:$0xff] }
 0x2ee   : > { %v11262_v26 = vpop.f32.mrf.mxu1  ;;  %v3597_v35 = vadd.f32 %v3596_v0, %v3484_v5  ;;  %v3775_v58 = vmax.f32 %v3595_v49, 0.0  ;;  %v12496_v5 = vld [vmem:[#allocation28_spill] sm:$0xff]  ;;  %v11280_v0 = vrot.slane %v4281_v55, %v12498_v8 }
 0x2ef   : > { %8027 = vmatpush3.bf16.msra.mxu1 %v9184_v34  ;;  %v3600_v2 = vpop.f32.mrf.mxu0  ;;  %v3492_v34 = vadd.f32 %v11185_v11, %v11058_v7  ;;  %v3494_v11 = vadd.f32 %v11190_v56, %v11063_v23 }
 0x2f0   : > { %v11265_v17 = vpop.f32.mrf.mxu1  ;;  %8028 = vmatprep.subr.bf16.mxu1 %v9187_v33  ;;  %v3776_v61 = vmax.f32 %v3597_v35, 0.0  ;;  %v9190_v33 = vld [vmem:[#allocation8 + $0x308] ss:$12 sps:$4 sm:$0xff]   ;;  %v11282_v35 = vpack.c.bf16 %v3775_v58, %v3763_v50  ;;  %v3601_v7 = vadd.f32 %v3600_v2, %v3488_v38  ;;  %v12501_v38 = vld [vmem:[#allocation27_spill] sm:$0xff] }
 0x2f1   : > { %v3602_v31 = vpop.f32.mrf.mxu0 }
 0x2f2   : > { %6569 = vmatmul.mubr.bf16.gmra.mxu1 %v12495_v47  ;;  %v11268_v51 = vpop.f32.mrf.mxu1  ;;  %v11275_v49 = vpack.c.bf16 %v3776_v61, %v3764_v10  ;;  %12499 = vst [vmem:[#allocation28_spill] sm:$0xff] %v11282_v35  ;;  %v3603_v10 = vadd.f32 %v3602_v31, %v3490_v63 }
 0x2f3   : > { %6576 = vmatprep.mubr.bf16.mxu1 %v12496_v5  ;;  %8029 = vmatpush3.bf16.msra.mxu1 %v9188_v20  ;;  %v3604_v47 = vpop.f32.mrf.mxu0  ;;  %v12500_v20 = vld [vmem:[#allocation17_spill] sm:$0xff] }
 0x2f4   : > { %12497 = vst [vmem:[#allocation25_spill] sm:$0xff] %v11275_v49  ;;  %v11284_v6 = vpop.f32.mrf.mxu1  ;;  %8030 = vmatprep.subr.bf16.mxu1 %v9189_v27  ;;  %v3605_v61 = vadd.f32 %v3604_v47, %v3492_v34  ;;  %6491 = vmatprep.mubr.bf16.mxu0 %v11275_v49  ;;  %v11290_v5 = vrot.slane %v4281_v55, %v12500_v20  ;;  %v3788_v56 = vmax.f32 %v3603_v10, 0.0  ;;  %v3787_v55 = vmax.f32 %v3601_v7, 0.0  ;;  %v12517_v49 = vld [vmem:[#allocation42_spill] sm:$0xff] }
 0x2f5   : > { %v3606_v59 = vpop.f32.mrf.mxu0  ;;  %6492 = vmatmul.mubr.bf16.gmra.mxu0 %v11282_v35  ;;  %v5869_v27 = vadd.f32 %v11193_v3, %v11280_v0 }
 0x2f6   : > { %v11292_v8 = vpop.f32.mrf.mxu1  ;;  %v3607_v58 = vadd.f32 %v3606_v59, %v3494_v11  ;;  %v3799_v50 = vmax.f32 %v3605_v61, 0.0  ;;  %v5871_v2 = vadd.f32 %v11196_v57, %v11290_v5  ;;  %v5875_v7 = vadd.f32 %v11214_v30, %v11290_v5 }
 0x2f7   : > { %8031 = vmatpush3.bf16.msra.mxu1 %v9190_v33  ;;  %v12502_v33 = vld [vmem:[#allocation31_spill] sm:$0xff]  ;;  %v5881_v30 = vadd.f32 %v11220_v45, %v11290_v5  ;;  %v5885_v45 = vadd.f32 %v11238_v21, %v11290_v5 }
 0x2f8   : > { %v11297_v23 = vpop.f32.mrf.mxu1  ;;  %8144 = vmatprep.subr.bf16.mxu1 %v9196_v36  ;;  %v3800_v31 = vmax.f32 %v3607_v58, 0.0  ;;  %v5981_v63 = vpop.f32.mrf.mxu0  ;;  %v5873_v36 = vadd.f32 %v11209_v32, %v11280_v0  ;;  %v11311_v10 = vpack.c.bf16 %v3799_v50, %v3787_v55  ;;  %v12505_v32 = vld [vmem:[#allocation37_spill] sm:$0xff]  ;;  %v5879_v50 = vadd.f32 %v11217_v44, %v11280_v0 }
 0x2f9   : > { %v11301_v34 = vadd.f32 %v5981_v63, %v5869_v27  ;;  %v12506_v55 = vld [vmem:[#allocation29_spill] sm:$0xff]  ;;  %v5883_v44 = vadd.f32 %v11233_v15, %v11280_v0  ;;  %v9186_v15 = vld [vmem:[#allocation8 + $0x518] ss:$12 sps:$4 sm:$0xff]  }
 0x2fa   : > { %6577 = vmatmul.mubr.bf16.gmra.mxu1 %v12501_v38  ;;  %v11304_v47 = vpop.f32.mrf.mxu1  ;;  %v5983_v3 = vpop.f32.mrf.mxu0  ;;  %v11307_v11 = vpack.c.bf16 %v3800_v31, %v3788_v56  ;;  %12504 = vst [vmem:[#allocation17_spill] sm:$0xff] %v11311_v10  ;;  %v9191_v21 = vld [vmem:[#allocation8 + $0x5c0] ss:$12 sps:$4 sm:$0xff]  }
 0x2fb   : > { %6584 = vmatprep.mubr.bf16.mxu1 %v12502_v33  ;;  %v11313_v61 = vadd.f32 %v5983_v3, %v5871_v2  ;;  %v12507_v33 = vld [vmem:[#allocation33_spill] sm:$0xff]  ;;  %v5911_v52 = vadd.f32 %v11304_v47, %v11290_v5 }
 0x2fc   : > { %12503 = vst [vmem:[#allocation16_spill] sm:$0xff] %v11307_v11  ;;  %v11315_v57 = vpop.f32.mrf.mxu1  ;;  %v5985_v20 = vpop.f32.mrf.mxu0  ;;  %6501 = vmatprep.mubr.bf16.mxu0 %v11307_v11  ;;  %v12513_v11 = vld [vmem:[#allocation40_spill] sm:$0xff] }
 0x2fd   : > { %v11320_v59 = vadd.f32 %v5985_v20, %v5873_v36  ;;  %6502 = vmatmul.mubr.bf16.gmra.mxu0 %v11311_v10  ;;  %v9182_v36 = vld [vmem:[#allocation8 + $0x530] ss:$12 sps:$4 sm:$0xff]  }
 0x2fe   : > { %v11322_v58 = vpop.f32.mrf.mxu1  ;;  %v5987_v27 = vpop.f32.mrf.mxu0  ;;  %6641 = vmatprep.mubr.bf16.mxu0 %v12505_v32 }
 0x2ff   : > { %v11328_v56 = vadd.f32 %v5987_v27, %v5875_v7  ;;  %v9185_v27 = vld [vmem:[#allocation8 + $0x5d8] ss:$12 sps:$4 sm:$0xff]  }
 0x300   : > { %v11330_v31 = vpop.f32.mrf.mxu1  ;;  %v5991_v63 = vpop.f32.mrf.mxu0 }
 0x301   : > { %v11334_v2 = vadd.f32 %v5991_v63, %v5879_v50 }
 0x302   : > { %6585 = vmatmul.mubr.bf16.gmra.mxu1 %v12506_v55  ;;  %v11337_v38 = vpop.f32.mrf.mxu1  ;;  %v5993_v3 = vpop.f32.mrf.mxu0  ;;  %v12508_v55 = vld [vmem:[#allocation36_spill] sm:$0xff] }
 0x303   : > { %6592 = vmatprep.mubr.bf16.mxu1 %v12507_v33  ;;  %v11342_v20 = vadd.f32 %v5993_v3, %v5881_v30  ;;  %v5889_v30 = vadd.f32 %v11241_v46, %v11280_v0  ;;  %v9192_v46 = vld [vmem:[#allocation8 + $0x500] ss:$12 sps:$4 sm:$0xff]  }
 0x304   : > { %v11344_v7 = vpop.f32.mrf.mxu1  ;;  %v5995_v32 = vpop.f32.mrf.mxu0 }
 0x305   : > { %v11348_v50 = vadd.f32 %v5995_v32, %v5883_v44  ;;  %6642 = vmatmul.mubr.bf16.vlgmr.msra.gmra.mxu0 %v12508_v55  ;;  %v5891_v32 = vadd.f32 %v11244_v28, %v11290_v5  ;;  %v12510_v55 = vld [vmem:[#allocation32_spill] sm:$0xff] }
 0x306   : > { %v11350_v63 = vpop.f32.mrf.mxu1  ;;  %v5997_v33 = vpop.f32.mrf.mxu0  ;;  %6649 = vmatprep.mubr.bf16.mxu0 %v12509_v62  ;;  %8081 = vmatpush3.bf16.msra.mxu0 %v9182_v36  ;;  %v12511_v36 = vld [vmem:[#allocation35_spill] sm:$0xff]  ;;  %v9193_v28 = vld [vmem:[#allocation8 + $0x5a8] ss:$12 sps:$4 sm:$0xff]  }
 0x307   : > { %v11356_v3 = vadd.f32 %v5997_v33, %v5885_v45  ;;  %8082 = vmatprep.subr.bf16.mxu0 %v9185_v27  ;;  %v5893_v45 = vadd.f32 %v11257_v1, %v11280_v0  ;;  %v5899_v1 = vadd.f32 %v11265_v17, %v11280_v0  ;;  %v9197_v17 = vld [vmem:[#allocation8 + $0x4d0] ss:$12 sps:$4 sm:$0xff]  }
 0x308   : > { %v11358_v43 = vpop.f32.mrf.mxu1  ;;  %v6001_v44 = vpop.f32.mrf.mxu0 }
 0x309   : > { %v11362_v10 = vadd.f32 %v6001_v44, %v5889_v30  ;;  %v5895_v44 = vadd.f32 %v11262_v26, %v11290_v5  ;;  %v9195_v26 = vld [vmem:[#allocation8 + $0x590] ss:$12 sps:$4 sm:$0xff]  }
 0x30a   : > { %6593 = vmatmul.mubr.bf16.gmra.mxu1 %v12510_v55  ;;  %v11365_v62 = vpop.f32.mrf.mxu1  ;;  %v6003_v48 = vpop.f32.mrf.mxu0  ;;  %8083 = vmatpush3.bf16.msra.mxu0 %v9186_v15 }
 0x30b   : > { %6600 = vmatprep.mubr.bf16.mxu1 %v12511_v36  ;;  %v11370_v27 = vadd.f32 %v6003_v48, %v5891_v32  ;;  %8084 = vmatprep.subr.bf16.mxu0 %v9191_v21  ;;  %v12512_v36 = vld [vmem:[#allocation38_spill] sm:$0xff] }
 0x30c   : > { %v11372_v33 = vpop.f32.mrf.mxu1  ;;  %v6005_v30 = vpop.f32.mrf.mxu0  ;;  %v9194_v48 = vld [vmem:[#allocation8 + $0x4e8] ss:$12 sps:$4 sm:$0xff]  }
 0x30d   : > { %v11376_v55 = vadd.f32 %v6005_v30, %v5893_v45  ;;  %6650 = vmatmul.mubr.bf16.gmra.mxu0 %v12512_v36  ;;  %v5901_v30 = vadd.f32 %v11268_v51, %v11290_v5  ;;  %v12514_v36 = vld [vmem:[#allocation34_spill] sm:$0xff] }
 0x30e   : > { %v11378_v41 = vpop.f32.mrf.mxu1  ;;  %v6007_v15 = vpop.f32.mrf.mxu0  ;;  %6657 = vmatprep.mubr.bf16.mxu0 %v12513_v11  ;;  %8085 = vmatpush3.bf16.msra.mxu0 %v9192_v46  ;;  %v12515_v46 = vld [vmem:[#allocation52_spill] sm:$0xff] }
 0x30f   : > { %v11384_v21 = vadd.f32 %v6007_v15, %v5895_v44  ;;  %8086 = vmatprep.subr.bf16.mxu0 %v9193_v28  ;;  %v5903_v44 = vadd.f32 %v11284_v6, %v11280_v0  ;;  %v9199_v51 = vld [vmem:[#allocation8 + $0x578] ss:$12 sps:$4 sm:$0xff]   ;;  %v5909_v6 = vadd.f32 %v11297_v23, %v11280_v0 }
 0x310   : > { %v11386_v32 = vpop.f32.mrf.mxu1  ;;  %v6011_v45 = vpop.f32.mrf.mxu0 }
 0x311   : > { %v11390_v35 = vadd.f32 %v6011_v45, %v5899_v1  ;;  %v5905_v45 = vadd.f32 %v11292_v8, %v11290_v5 }
 0x312   : > { %6601 = vmatmul.mubr.bf16.gmra.mxu1 %v12514_v36  ;;  %v11393_v11 = vpop.f32.mrf.mxu1  ;;  %v6013_v42 = vpop.f32.mrf.mxu0  ;;  %8087 = vmatpush3.bf16.msra.mxu0 %v9194_v48 }
 0x313   : > { %6738 = vmatprep.mubr.bf16.mxu1 %v12515_v46  ;;  %v11398_v28 = vadd.f32 %v6013_v42, %v5901_v30  ;;  %8088 = vmatprep.subr.bf16.mxu0 %v9195_v26  ;;  %v12516_v46 = vld [vmem:[#allocation39_spill] sm:$0xff]  ;;  %v9200_v30 = vld [vmem:[#allocation8 + $0x758] ss:$12 sps:$4 sm:$0xff]  }
 0x314   : > { %v11400_v15 = vpop.f32.mrf.mxu1  ;;  %v6015_v1 = vpop.f32.mrf.mxu0  ;;  %v9198_v42 = vld [vmem:[#allocation8 + $0x6b0] ss:$12 sps:$4 sm:$0xff]  }
 0x315   : > { %v11404_v36 = vadd.f32 %v6015_v1, %v5903_v44  ;;  %6658 = vmatmul.mubr.bf16.gmra.mxu0 %v12516_v46  ;;  %v9203_v1 = vld [vmem:[#allocation8 + $0x560] ss:$12 sps:$4 sm:$0xff]  }
 0x316   : > { %v11406_v13 = vpop.f32.mrf.mxu1  ;;  %v6017_v48 = vpop.f32.mrf.mxu0  ;;  %6665 = vmatprep.mubr.bf16.mxu0 %v12517_v49  ;;  %8089 = vmatpush3.bf16.msra.mxu0 %v9197_v17  ;;  %v12518_v17 = vld [vmem:[#allocation51_spill] sm:$0xff] }
 0x317   : > { %v11412_v26 = vadd.f32 %v6017_v48, %v5905_v45  ;;  %8090 = vmatprep.subr.bf16.mxu0 %v9199_v51  ;;  %v9202_v51 = vld [vmem:[#allocation8 + $0x698] ss:$12 sps:$4 sm:$0xff]   ;;  %v5913_v48 = vadd.f32 %v11315_v57, %v11280_v0 }
 0x318   : > { %v6021_v8 = vpop.f32.mrf.mxu0 }
 0x319   : > { %v6094_v44 = vpop.f32.mrf.mxu1  ;;  %v11416_v46 = vadd.f32 %v6021_v8, %v5909_v6  ;;  %v9205_v6 = vld [vmem:[#allocation8 + $0x4a0] ss:$12 sps:$4 sm:$0xff]  }
 0x31a   : > { %v11419_v49 = vadd.f32 %v6094_v44, %v11301_v34  ;;  %6739 = vmatmul.mubr.bf16.vlgmr.msra.gmra.mxu1 %v12518_v17  ;;  %v6023_v23 = vpop.f32.mrf.mxu0  ;;  %8091 = vmatpush3.bf16.msra.mxu0 %v9201_v53  ;;  %v9204_v34 = vld [vmem:[#allocation8 + $0x740] ss:$12 sps:$4 sm:$0xff]  }
 0x31b   : > { %6746 = vmatprep.mubr.bf16.mxu1 %v12519_v9  ;;  %v6096_v45 = vpop.f32.mrf.mxu1  ;;  %8145 = vmatpush3.bf16.msra.mxu1 %v9198_v42  ;;  %v11425_v60 = vadd.f32 %v6023_v23, %v5911_v52  ;;  %v9207_v9 = vld [vmem:[#allocation8 + $0x548] ss:$12 sps:$4 sm:$0xff]   ;;  %v5915_v42 = vadd.f32 %v11322_v58, %v11290_v5  ;;  %v12520_v52 = vld [vmem:[#allocation41_spill] sm:$0xff] }
 0x31c   : > { %v11428_v47 = vadd.f32 %v6096_v45, %v11313_v61  ;;  %8146 = vmatprep.subr.bf16.mxu1 %v9200_v30  ;;  %v6025_v8 = vpop.f32.mrf.mxu0  ;;  %8092 = vmatprep.subr.bf16.mxu0 %v9203_v1  ;;  %v12521_v30 = vld [vmem:[#allocation44_spill] sm:$0xff]  ;;  %v9206_v53 = vld [vmem:[#allocation8 + $0x680] ss:$12 sps:$4 sm:$0xff]   ;;  %v5919_v1 = vadd.f32 %v11330_v31, %v11280_v0 }
 0x31d   : > { %v6098_v44 = vpop.f32.mrf.mxu1  ;;  %v11432_v17 = vadd.f32 %v6025_v8, %v5913_v48  ;;  %6666 = vmatmul.mubr.bf16.gmra.mxu0 %v12520_v52  ;;  %v9209_v48 = vld [vmem:[#allocation8 + $0x488] ss:$12 sps:$4 sm:$0xff]   ;;  %v11446_v52 = vld [vmem:[#allocation8 + $0x8f0] ss:$12 sps:$4 sm:$0xff]  }
 0x31e   : > { %v11435_v57 = vadd.f32 %v6098_v44, %v11320_v59  ;;  %v6027_v61 = vpop.f32.mrf.mxu0  ;;  %6673 = vmatprep.mubr.bf16.mxu0 %v12521_v30  ;;  %8093 = vmatpush3.bf16.msra.mxu0 %v9205_v6  ;;  %v9208_v59 = vld [vmem:[#allocation8 + $0x728] ss:$12 sps:$4 sm:$0xff]  }
 0x31f   : > { %v6100_v23 = vpop.f32.mrf.mxu1  ;;  %8147 = vmatpush3.bf16.msra.mxu1 %v9202_v51  ;;  %v11441_v45 = vadd.f32 %v6027_v61, %v5915_v42  ;;  %8094 = vmatprep.subr.bf16.mxu0 %v9207_v9  ;;  %v5921_v51 = vadd.f32 %v11337_v38, %v11290_v5  ;;  %v12522_v42 = vld [vmem:[#allocation53_spill] sm:$0xff]  ;;  %v9210_v61 = vld [vmem:[#allocation8 + $0x668] ss:$12 sps:$4 sm:$0xff]   ;;  %v5923_v9 = vadd.f32 %v11344_v7, %v11280_v0  ;;  %v12524_v7 = vld [vmem:[#allocation43_spill] sm:$0xff] }
 0x320   : > { %v11444_v58 = vadd.f32 %v6100_v23, %v11328_v56  ;;  %8148 = vmatprep.subr.bf16.mxu1 %v9204_v34  ;;  %v6031_v8 = vpop.f32.mrf.mxu0  ;;  %v12523_v56 = vld [vmem:[#allocation56_spill] sm:$0xff] }
 0x321   : > { %v6104_v44 = vpop.f32.mrf.mxu1  ;;  %v11450_v30 = vadd.f32 %v6031_v8, %v5919_v1 }
 0x322   : > { %v11453_v31 = vadd.f32 %v6104_v44, %v11334_v2  ;;  %6747 = vmatmul.mubr.bf16.gmra.mxu1 %v12522_v42  ;;  %v6033_v34 = vpop.f32.mrf.mxu0  ;;  %8095 = vmatpush3.bf16.msra.mxu0 %v9209_v48  ;;  %v9211_v2 = vld [vmem:[#allocation8 + $0x710] ss:$12 sps:$4 sm:$0xff]   ;;  %v5925_v44 = vadd.f32 %v11350_v63, %v11290_v5  ;;  %v5929_v48 = vadd.f32 %v11358_v43, %v11280_v0  ;;  %v12527_v43 = vld [vmem:[#allocation58_spill] sm:$0xff] }
 0x323   : > { %6754 = vmatprep.mubr.bf16.mxu1 %v12523_v56  ;;  %v6106_v6 = vpop.f32.mrf.mxu1  ;;  %8149 = vmatpush3.bf16.msra.mxu1 %v9206_v53  ;;  %v11459_v23 = vadd.f32 %v6033_v34, %v5921_v51  ;;  %v12525_v56 = vld [vmem:[#allocation46_spill] sm:$0xff] }
 0x324   : > { %v11462_v38 = vadd.f32 %v6106_v6, %v11342_v20  ;;  %8150 = vmatprep.subr.bf16.mxu1 %v9208_v59  ;;  %v6035_v1 = vpop.f32.mrf.mxu0  ;;  %8208 = vmatprep.subr.bf16.mxu0 %v11446_v52  ;;  %v9213_v59 = vld [vmem:[#allocation8 + $0x650] ss:$12 sps:$4 sm:$0xff]   ;;  %v9215_v6 = vld [vmem:[#allocation8 + $0x6f8] ss:$12 sps:$4 sm:$0xff]  }
 0x325   : > { %v6108_v8 = vpop.f32.mrf.mxu1  ;;  %v11467_v53 = vadd.f32 %v6035_v1, %v5923_v9  ;;  %6674 = vmatmul.mubr.bf16.gmra.mxu0 %v12524_v7  ;;  %v5931_v1 = vadd.f32 %v11365_v62, %v11290_v5  ;;  %v12526_v7 = vld [vmem:[#allocation55_spill] sm:$0xff] }
 0x326   : > { %v11470_v42 = vadd.f32 %v6108_v8, %v11348_v50  ;;  %v6037_v51 = vpop.f32.mrf.mxu0  ;;  %6681 = vmatprep.mubr.bf16.mxu0 %v12525_v56  ;;  %v9219_v56 = vld [vmem:[#allocation8 + $0x6e0] ss:$12 sps:$4 sm:$0xff]  }
 0x327   : > { %v6110_v20 = vpop.f32.mrf.mxu1  ;;  %8151 = vmatpush3.bf16.msra.mxu1 %v9210_v61  ;;  %v11476_v34 = vadd.f32 %v6037_v51, %v5925_v44 }
 0x328   : > { %v11479_v63 = vadd.f32 %v6110_v20, %v11356_v3  ;;  %8152 = vmatprep.subr.bf16.mxu1 %v9211_v2  ;;  %v6041_v50 = vpop.f32.mrf.mxu0  ;;  %v9216_v3 = vld [vmem:[#allocation8 + $0x638] ss:$12 sps:$4 sm:$0xff]   ;;  %v5933_v2 = vadd.f32 %v11372_v33, %v11280_v0 }
 0x329   : > { %v6114_v9 = vpop.f32.mrf.mxu1  ;;  %v11483_v8 = vadd.f32 %v6041_v50, %v5929_v48  ;;  %v5935_v50 = vadd.f32 %v11378_v41, %v11290_v5 }
 0x32a   : > { %v11486_v61 = vadd.f32 %v6114_v9, %v11362_v10  ;;  %6755 = vmatmul.mubr.bf16.gmra.mxu1 %v12526_v7  ;;  %v6043_v44 = vpop.f32.mrf.mxu0  ;;  %v12528_v7 = vld [vmem:[#allocation45_spill] sm:$0xff] }
 0x32b   : > { %6762 = vmatprep.mubr.bf16.mxu1 %v12527_v43  ;;  %v6116_v51 = vpop.f32.mrf.mxu1  ;;  %8153 = vmatpush3.bf16.msra.mxu1 %v9213_v59  ;;  %v11492_v20 = vadd.f32 %v6043_v44, %v5931_v1  ;;  %v12529_v43 = vld [vmem:[#allocation48_spill] sm:$0xff] }
 0x32c   : > { %v11495_v62 = vadd.f32 %v6116_v51, %v11370_v27  ;;  %8154 = vmatprep.subr.bf16.mxu1 %v9215_v6  ;;  %v6045_v10 = vpop.f32.mrf.mxu0  ;;  %v9220_v27 = vld [vmem:[#allocation8 + $0x620] ss:$12 sps:$4 sm:$0xff]   ;;  %v5939_v6 = vadd.f32 %v11386_v32, %v11280_v0  ;;  %v9221_v51 = vld [vmem:[#allocation8 + $0x6c8] ss:$12 sps:$4 sm:$0xff]  }
 0x32d   : > { %v6118_v48 = vpop.f32.mrf.mxu1  ;;  %v11499_v9 = vadd.f32 %v6045_v10, %v5933_v2  ;;  %6682 = vmatmul.mubr.bf16.gmra.mxu0 %v12528_v7  ;;  %v5941_v10 = vadd.f32 %v11393_v11, %v11290_v5  ;;  %v12530_v7 = vld [vmem:[#allocation57_spill] sm:$0xff]  ;;  %v12531_v32 = vld [vmem:[#allocation60_spill] sm:$0xff] }
 0x32e   : > { %v11502_v59 = vadd.f32 %v6118_v48, %v11376_v55  ;;  %v6047_v33 = vpop.f32.mrf.mxu0  ;;  %6689 = vmatprep.mubr.bf16.mxu0 %v12529_v43 }
 0x32f   : > { %v6120_v1 = vpop.f32.mrf.mxu1  ;;  %8155 = vmatpush3.bf16.msra.mxu1 %v9216_v3  ;;  %v11508_v44 = vadd.f32 %v6047_v33, %v5935_v50 }
 0x330   : > { %v11511_v41 = vadd.f32 %v6120_v1, %v11384_v21  ;;  %8156 = vmatprep.subr.bf16.mxu1 %v9219_v56  ;;  %v6051_v55 = vpop.f32.mrf.mxu0  ;;  %v9222_v21 = vld [vmem:[#allocation8 + $0x608] ss:$12 sps:$4 sm:$0xff]   ;;  %v5943_v56 = vadd.f32 %v11400_v15, %v11280_v0 }
 0x331   : > { %v6124_v2 = vpop.f32.mrf.mxu1  ;;  %v11515_v48 = vadd.f32 %v6051_v55, %v5939_v6  ;;  %v5945_v6 = vadd.f32 %v11406_v13, %v11290_v5  ;;  %v12534_v15 = vld [vmem:[#allocation50_spill] sm:$0xff] }
 0x332   : > { %v11518_v3 = vadd.f32 %v6124_v2, %v11390_v35  ;;  %6763 = vmatmul.mubr.bf16.gmra.mxu1 %v12530_v7  ;;  %v6053_v50 = vpop.f32.mrf.mxu0 }
 0x333   : > { %6770 = vmatprep.mubr.bf16.mxu1 %v12531_v32  ;;  %v6126_v33 = vpop.f32.mrf.mxu1  ;;  %8157 = vmatpush3.bf16.msra.mxu1 %v9220_v27  ;;  %v11524_v1 = vadd.f32 %v6053_v50, %v5941_v10  ;;  %v12533_v27 = vld [vmem:[#allocation47_spill] sm:$0xff]  ;;  %v12538_v32 = vld [vmem:[#allocation62_spill] sm:$0xff] }
 0x334   : > { %v11527_v11 = vadd.f32 %v6126_v33, %v11398_v28  ;;  %8158 = vmatprep.subr.bf16.mxu1 %v9221_v51  ;;  %v6055_v43 = vpop.f32.mrf.mxu0  ;;  %v12537_v10 = vld [vmem:[#allocation59_spill] sm:$0xff] }
 0x335   : > { %v6128_v35 = vpop.f32.mrf.mxu1  ;;  %v11531_v55 = vadd.f32 %v6055_v43, %v5943_v56  ;;  %6690 = vmatmul.mubr.bf16.gmra.mxu0 %v12533_v27 }
 0x336   : > { %v11534_v2 = vadd.f32 %v6128_v35, %v11404_v36  ;;  %v6057_v7 = vpop.f32.mrf.mxu0  ;;  %6697 = vmatprep.mubr.bf16.mxu0 %v12534_v15  ;;  %v12542_v35 = vld [vmem:[#allocation67_spill] sm:$0xff]  ;;  %v12546_v15 = vld [vmem:[#allocation64_spill] sm:$0xff] }
 0x337   : > { %v6130_v0 = vpop.f32.mrf.mxu1  ;;  %8159 = vmatpush3.bf16.msra.mxu1 %v9222_v21  ;;  %v11538_v28 = vadd.f32 %v6057_v7, %v5945_v6 }
 0x338   : > { %12532 = vst [vmem:[#allocation27_spill] sm:$0xff] %v11534_v2  ;;  %v11541_v51 = vadd.f32 %v6130_v0, %v11412_v26  ;;  %8272 = vmatprep.subr.bf16.mxu1 %v11446_v52 }
 0x339   : > { %v6134_v13 = vpop.f32.mrf.mxu1  ;;  %v11547_v36 = vpop.f32.mrf.mxu0 }
 0x33a   : > { %12535 = vst [vmem:[#allocation31_spill] sm:$0xff] %v11541_v51  ;;  %v11545_v5 = vadd.f32 %v6134_v13, %v11416_v46  ;;  %6771 = vmatmul.mubr.bf16.gmra.mxu1 %v12537_v10  ;;  %v12541_v46 = vld [vmem:[#allocation49_spill] sm:$0xff] }
 0x33b   : > { %6778 = vmatprep.mubr.bf16.mxu1 %v12538_v32  ;;  %v6136_v50 = vpop.f32.mrf.mxu1  ;;  %v11554_v21 = vpop.f32.mrf.mxu0  ;;  %v11575_v10 = vld [vmem:[#allocation8 + $0x830] ss:$12 sps:$4 sm:$0xff]   ;;  %v9231_v51 = vld [vmem:[#allocation8 + $0x860] ss:$12 sps:$4 sm:$0xff]  }
 0x33c   : > { %12536 = vst [vmem:[#allocation37_spill] sm:$0xff] %v11545_v5  ;;  %v11552_v33 = vadd.f32 %v6136_v50, %v11425_v60  ;;  %v11582_v50 = vld [vmem:[#allocation8 + $0x8d8] ss:$12 sps:$4 sm:$0xff]   ;;  %v12565_v5 = vld [vmem:[#allocation73_spill] sm:$0xff] }
 0x33d   : > { %v6138_v26 = vpop.f32.mrf.mxu1  ;;  %v11559_v52 = vpop.f32.mrf.mxu0  ;;  %6698 = vmatmul.mubr.bf16.gmra.mxu0 %v12541_v46 }
 0x33e   : > { %12539 = vst [vmem:[#allocation29_spill] sm:$0xff] %v11552_v33  ;;  %v11557_v56 = vadd.f32 %v6138_v26, %v11432_v17  ;;  %6835 = vmatprep.mubr.bf16.mxu0 %v12542_v35  ;;  %v12545_v17 = vld [vmem:[#allocation61_spill] sm:$0xff]  ;;  %v9229_v33 = vld [vmem:[#allocation8 + $0x878] ss:$12 sps:$4 sm:$0xff]  }
 0x33f   : > { %v6140_v43 = vpop.f32.mrf.mxu1  ;;  %v11566_v27 = vpop.f32.mrf.mxu0 }
 0x340   : > { %12540 = vst [vmem:[#allocation33_spill] sm:$0xff] %v11557_v56  ;;  %v11564_v6 = vadd.f32 %v6140_v43, %v11441_v45  ;;  %v12549_v43 = vld [vmem:[#allocation66_spill] sm:$0xff] }
 0x341   : > { %v6144_v60 = vpop.f32.mrf.mxu1  ;;  %v11571_v0 = vpop.f32.mrf.mxu0 }
 0x342   : > { %12543 = vst [vmem:[#allocation36_spill] sm:$0xff] %v11564_v6  ;;  %v11569_v7 = vadd.f32 %v6144_v60, %v11450_v30  ;;  %6779 = vmatmul.mubr.bf16.gmra.mxu1 %v12545_v17  ;;  %v12550_v60 = vld [vmem:[#allocation69_spill] sm:$0xff]  ;;  %v11592_v17 = vld [vmem:[#allocation8 + $0x818] ss:$12 sps:$4 sm:$0xff]   ;;  %v12558_v6 = vld [vmem:[#allocation71_spill] sm:$0xff] }
 0x343   : > { %6786 = vmatprep.mubr.bf16.mxu1 %v12546_v15  ;;  %v6146_v13 = vpop.f32.mrf.mxu1  ;;  %v11580_v45 = vpop.f32.mrf.mxu0 }
 0x344   : > { %12544 = vst [vmem:[#allocation20_spill] sm:$0xff] %v11569_v7  ;;  %v11578_v32 = vadd.f32 %v6146_v13, %v11459_v23 }
 0x345   : > { %v6148_v26 = vpop.f32.mrf.mxu1  ;;  %v11587_v46 = vpop.f32.mrf.mxu0  ;;  %6836 = vmatmul.mubr.bf16.vlgmr.msra.gmra.mxu0 %v12549_v43 }
 0x346   : > { %12547 = vst [vmem:[#allocation32_spill] sm:$0xff] %v11578_v32  ;;  %v11585_v30 = vadd.f32 %v6148_v26, %v11467_v53  ;;  %6843 = vmatprep.mubr.bf16.mxu0 %v12550_v60  ;;  %8209 = vmatpush3.bf16.msra.mxu0 %v11575_v10  ;;  %v11600_v53 = vld [vmem:[#allocation8 + $0x8c0] ss:$12 sps:$4 sm:$0xff]  }
 0x347   : > { %v6150_v35 = vpop.f32.mrf.mxu1  ;;  %v11597_v15 = vpop.f32.mrf.mxu0  ;;  %8210 = vmatprep.subr.bf16.mxu0 %v11582_v50  ;;  %v12553_v60 = vld [vmem:[#allocation63_spill] sm:$0xff] }
 0x348   : > { %12548 = vst [vmem:[#allocation35_spill] sm:$0xff] %v11585_v30  ;;  %v11595_v23 = vadd.f32 %v6150_v35, %v11476_v34  ;;  %v12554_v30 = vld [vmem:[#allocation65_spill] sm:$0xff] }
 0x349   : > { %v6154_v13 = vpop.f32.mrf.mxu1  ;;  %v11605_v43 = vpop.f32.mrf.mxu0  ;;  %v11610_v34 = vld [vmem:[#allocation8 + $0x800] ss:$12 sps:$4 sm:$0xff]  }
 0x34a   : > { %12551 = vst [vmem:[#allocation38_spill] sm:$0xff] %v11595_v23  ;;  %v11603_v26 = vadd.f32 %v6154_v13, %v11483_v8  ;;  %6787 = vmatmul.mubr.bf16.gmra.mxu1 %v12553_v60  ;;  %8211 = vmatpush3.bf16.msra.mxu0 %v11592_v17  ;;  %v11618_v8 = vld [vmem:[#allocation8 + $0x8a8] ss:$12 sps:$4 sm:$0xff]  }
 0x34b   : > { %6794 = vmatprep.mubr.bf16.mxu1 %v12554_v30  ;;  %v6156_v32 = vpop.f32.mrf.mxu1  ;;  %v11615_v23 = vpop.f32.mrf.mxu0  ;;  %8212 = vmatprep.subr.bf16.mxu0 %v11600_v53  ;;  %v12557_v30 = vld [vmem:[#allocation68_spill] sm:$0xff] }
 0x34c   : > { %12552 = vst [vmem:[#allocation40_spill] sm:$0xff] %v11603_v26  ;;  %v11613_v35 = vadd.f32 %v6156_v32, %v11492_v20  ;;  %v11628_v20 = vld [vmem:[#allocation8 + $0x7e8] ss:$12 sps:$4 sm:$0xff]  }
 0x34d   : > { %v6158_v13 = vpop.f32.mrf.mxu1  ;;  %v11623_v60 = vpop.f32.mrf.mxu0  ;;  %6844 = vmatmul.mubr.bf16.gmra.mxu0 %v12557_v30 }
 0x34e   : > { %12555 = vst [vmem:[#allocation34_spill] sm:$0xff] %v11613_v35  ;;  %v11621_v26 = vadd.f32 %v6158_v13, %v11499_v9  ;;  %6851 = vmatprep.mubr.bf16.mxu0 %v12558_v6  ;;  %8213 = vmatpush3.bf16.msra.mxu0 %v11610_v34  ;;  %v11636_v9 = vld [vmem:[#allocation8 + $0x890] ss:$12 sps:$4 sm:$0xff]  }
 0x34f   : > { %v6160_v7 = vpop.f32.mrf.mxu1  ;;  %v11633_v35 = vpop.f32.mrf.mxu0  ;;  %8214 = vmatprep.subr.bf16.mxu0 %v11618_v8  ;;  %v12561_v6 = vld [vmem:[#allocation83_spill] sm:$0xff] }
 0x350   : > { %12556 = vst [vmem:[#allocation52_spill] sm:$0xff] %v11621_v26  ;;  %v11631_v32 = vadd.f32 %v6160_v7, %v11508_v44  ;;  %v9228_v44 = vld [vmem:[#allocation8 + $0x7d0] ss:$12 sps:$4 sm:$0xff]  }
 0x351   : > { %v6164_v13 = vpop.f32.mrf.mxu1  ;;  %v11641_v30 = vpop.f32.mrf.mxu0 }
 0x352   : > { %12559 = vst [vmem:[#allocation39_spill] sm:$0xff] %v11631_v32  ;;  %v11639_v26 = vadd.f32 %v6164_v13, %v11515_v48  ;;  %6795 = vmatmul.mubr.bf16.gmra.mxu1 %v10633_v25  ;;  %8215 = vmatpush3.bf16.msra.mxu0 %v11628_v20  ;;  %v12564_v25 = vld [vmem:[#allocation70_spill] sm:$0xff] }
 0x353   : > { %6932 = vmatprep.mubr.bf16.mxu1 %v12561_v6  ;;  %v6166_v56 = vpop.f32.mrf.mxu1  ;;  %v11649_v32 = vpop.f32.mrf.mxu0  ;;  %8216 = vmatprep.subr.bf16.mxu0 %v11636_v9 }
 0x354   : > { %12560 = vst [vmem:[#allocation42_spill] sm:$0xff] %v11639_v26  ;;  %v11647_v7 = vadd.f32 %v6166_v56, %v11524_v1 }
 0x355   : > { %v6168_v48 = vpop.f32.mrf.mxu1  ;;  %v11655_v26 = vpop.f32.mrf.mxu0  ;;  %6852 = vmatmul.mubr.bf16.gmra.mxu0 %v12564_v25 }
 0x356   : > { %12562 = vst [vmem:[#allocation51_spill] sm:$0xff] %v11647_v7  ;;  %v11653_v13 = vadd.f32 %v6168_v48, %v11531_v55  ;;  %6859 = vmatprep.mubr.bf16.mxu0 %v12565_v5  ;;  %8217 = vmatpush3.bf16.msra.mxu0 %v9228_v44  ;;  %v9230_v7 = vld [vmem:[#allocation8 + $0x7b8] ss:$12 sps:$4 sm:$0xff]  }
 0x357   : > { %v6170_v6 = vpop.f32.mrf.mxu1  ;;  %v11662_v56 = vpop.f32.mrf.mxu0  ;;  %8218 = vmatprep.subr.bf16.mxu0 %v9229_v33  ;;  %v12568_v48 = vld [vmem:[#allocation84_spill] sm:$0xff] }
 0x358   : > { %12563 = vst [vmem:[#allocation54_spill] sm:$0xff] %v11653_v13  ;;  %v11660_v1 = vadd.f32 %v6170_v6, %v11538_v28  ;;  %v9232_v28 = vld [vmem:[#allocation8 + $0x7a0] ss:$12 sps:$4 sm:$0xff]   ;;  %v9233_v6 = vld [vmem:[#allocation8 + $0x848] ss:$12 sps:$4 sm:$0xff]  }
 0x359   : > { %v11664_v2 = vpop.f32.mrf.mxu0 }
 0x35a   : > { %12566 = vst [vmem:[#allocation41_spill] sm:$0xff] %v11660_v1  ;;  %12567 = vst [vmem:[#allocation44_spill] sm:$0xff] %v11664_v2  ;;  %v11666_v55 = vpop.f32.mrf.mxu1  ;;  %6933 = vmatmul.mubr.bf16.vlgmr.msra.gmra.mxu1 %v10927_v40  ;;  %8219 = vmatpush3.bf16.msra.mxu0 %v9230_v7  ;;  %v12571_v2 = vld [vmem:[#allocation72_spill] sm:$0xff]  ;;  %v12572_v40 = vld [vmem:[#allocation75_spill] sm:$0xff] }
 0x35b   : > { %6940 = vmatprep.mubr.bf16.mxu1 %v12568_v48  ;;  %8280 = vmatpush3.bf16.msra.mxu1 %v11575_v10  ;;  %v11671_v5 = vpop.f32.mrf.mxu0 }
 0x35c   : > { %12569 = vst [vmem:[#allocation53_spill] sm:$0xff] %v11671_v5  ;;  %v11673_v25 = vpop.f32.mrf.mxu1  ;;  %8273 = vmatprep.subr.bf16.mxu1 %v11582_v50  ;;  %8220 = vmatprep.subr.bf16.mxu0 %v9231_v51  ;;  %v9234_v50 = vld [vmem:[#allocation8 + $0x788] ss:$12 sps:$4 sm:$0xff]  }
 0x35d   : > { %v11676_v1 = vpop.f32.mrf.mxu0  ;;  %6860 = vmatmul.mubr.bf16.gmra.mxu0 %v12571_v2 }
 0x35e   : > { %12570 = vst [vmem:[#allocation56_spill] sm:$0xff] %v11676_v1  ;;  %v11678_v13 = vpop.f32.mrf.mxu1  ;;  %6867 = vmatprep.mubr.bf16.mxu0 %v12572_v40  ;;  %8221 = vmatpush3.bf16.msra.mxu0 %v9232_v28 }
 0x35f   : > { %8281 = vmatpush3.bf16.msra.mxu1 %v11592_v17  ;;  %v11683_v10 = vpop.f32.mrf.mxu0  ;;  %8222 = vmatprep.subr.bf16.mxu0 %v9233_v6 }
 0x360   : > { %12573 = vst [vmem:[#allocation43_spill] sm:$0xff] %v11683_v10  ;;  %v11685_v48 = vpop.f32.mrf.mxu1  ;;  %8274 = vmatprep.subr.bf16.mxu1 %v11600_v53  ;;  %v12577_v10 = vld [vmem:[#allocation77_spill] sm:$0xff] }
 0x361   : > { %v11688_v5 = vpop.f32.mrf.mxu0 }
 0x362   : > { %12574 = vst [vmem:[#allocation46_spill] sm:$0xff] %v11688_v5  ;;  %v11690_v1 = vpop.f32.mrf.mxu1  ;;  %6941 = vmatmul.mubr.bf16.gmra.mxu1 %v10960_v14  ;;  %8223 = vmatpush3.bf16.msra.mxu0 %v9234_v50  ;;  %v12576_v5 = vld [vmem:[#allocation74_spill] sm:$0xff] }
 0x363   : > { %6948 = vmatprep.mubr.bf16.mxu1 %v10969_v19  ;;  %8282 = vmatpush3.bf16.msra.mxu1 %v11610_v34  ;;  %v11695_v2 = vpop.f32.mrf.mxu0 }
 0x364   : > { %v11697_v17 = vpop.f32.mrf.mxu1  ;;  %8275 = vmatprep.subr.bf16.mxu1 %v11618_v8 }
 0x365   : > { %v11700_v53 = vpop.f32.mrf.mxu0  ;;  %6868 = vmatmul.mubr.bf16.gmra.mxu0 %v12576_v5 }
 0x366   : > { %12575 = vst [vmem:[#allocation55_spill] sm:$0xff] %v11700_v53  ;;  %v11702_v40 = vpop.f32.mrf.mxu1  ;;  %6875 = vmatprep.mubr.bf16.mxu0 %v12577_v10  ;;  %v12582_v53 = vld [vmem:[#allocation79_spill] sm:$0xff] }
 0x367   : > { %8283 = vmatpush3.bf16.msra.mxu1 %v11628_v20  ;;  %v11707_v14 = vpop.f32.mrf.mxu0 }
 0x368   : > { %12578 = vst [vmem:[#allocation58_spill] sm:$0xff] %v11707_v14  ;;  %v11709_v19 = vpop.f32.mrf.mxu1  ;;  %8276 = vmatprep.subr.bf16.mxu1 %v11636_v9  ;;  %v12581_v14 = vld [vmem:[#allocation76_spill] sm:$0xff] }
 0x369   : > { %v11712_v34 = vpop.f32.mrf.mxu0 }
 0x36a   : > { %12579 = vst [vmem:[#allocation45_spill] sm:$0xff] %v11712_v34  ;;  %v11714_v8 = vpop.f32.mrf.mxu1  ;;  %6949 = vmatmul.mubr.bf16.gmra.mxu1 %v10993_v24 }
 0x36b   : > { %6956 = vmatprep.mubr.bf16.mxu1 %v11002_v22  ;;  %8284 = vmatpush3.bf16.msra.mxu1 %v9228_v44  ;;  %v11718_v5 = vpop.f32.mrf.mxu0  ;;  %v12584_v22 = vld [vmem:[#allocation85_spill] sm:$0xff]  ;;  %v12585_v44 = vld [vmem:[#allocation86_spill] sm:$0xff] }
 0x36c   : > { %12580 = vst [vmem:[#allocation48_spill] sm:$0xff] %v11718_v5  ;;  %v11720_v10 = vpop.f32.mrf.mxu1  ;;  %8277 = vmatprep.subr.bf16.mxu1 %v9229_v33 }
 0x36d   : > { %6876 = vmatmul.mubr.bf16.gmra.mxu0 %v12581_v14  ;;  %v11726_v9 = vpop.f32.mrf.mxu0 }
 0x36e   : > { %v11722_v20 = vpop.f32.mrf.mxu1  ;;  %6883 = vmatprep.mubr.bf16.mxu0 %v12582_v53  ;;  %12583 = vst [vmem:[#allocation57_spill] sm:$0xff] %v11726_v9  ;;  %v12588_v53 = vld [vmem:[#allocation81_spill] sm:$0xff] }
 0x36f   : > { %8285 = vmatpush3.bf16.msra.mxu1 %v9230_v7  ;;  %v11734_v33 = vpop.f32.mrf.mxu0  ;;  %v12587_v7 = vld [vmem:[#allocation78_spill] sm:$0xff] }
 0x370   : > { %v11728_v34 = vpop.f32.mrf.mxu1  ;;  %8278 = vmatprep.subr.bf16.mxu1 %v9231_v51  ;;  %12586 = vst [vmem:[#allocation60_spill] sm:$0xff] %v11734_v33 }
 0x371   : > { %v11742_v51 = vpop.f32.mrf.mxu0 }
 0x372   : > { %v11730_v24 = vpop.f32.mrf.mxu1  ;;  %6957 = vmatmul.mubr.bf16.gmra.mxu1 %v12584_v22  ;;  %12589 = vst [vmem:[#allocation47_spill] sm:$0xff] %v11742_v51 }
 0x373   : > { %6964 = vmatprep.mubr.bf16.mxu1 %v12585_v44  ;;  %8286 = vmatpush3.bf16.msra.mxu1 %v9232_v28  ;;  %v11750_v28 = vpop.f32.mrf.mxu0 }
 0x374   : > { %v11736_v5 = vpop.f32.mrf.mxu1  ;;  %8279 = vmatprep.subr.bf16.mxu1 %v9233_v6  ;;  %12590 = vst [vmem:[#allocation50_spill] sm:$0xff] %v11750_v28 }
 0x375   : > { %6884 = vmatmul.mubr.bf16.gmra.mxu0 %v12587_v7  ;;  %v12591_v7 = vld [vmem:[#allocation80_spill] sm:$0xff] }
 0x376   : > { %v11738_v14 = vpop.f32.mrf.mxu1  ;;  %6891 = vmatprep.mubr.bf16.mxu0 %v12588_v53 }
 0x377   : > { %8287 = vmatpush3.bf16.msra.mxu1 %v9234_v50  ;;  %v11758_v50 = vpop.f32.mrf.mxu0 }
 0x378   : > { %v11744_v9 = vpop.f32.mrf.mxu1  ;;  %12592 = vst [vmem:[#allocation59_spill] sm:$0xff] %v11758_v50 }
 0x37a   : > { %v11746_v22 = vpop.f32.mrf.mxu1  ;;  %6965 = vmatmul.mubr.bf16.gmra.mxu1 %v11067_v54  ;;  %v11769_v54 = vpop.f32.mrf.mxu0 }
 0x37b   : > { %6972 = vmatprep.mubr.bf16.mxu1 %v11074_v16  ;;  %v6208_v16 = vadd.f32 %v11547_v36, %v11419_v49  ;;  %12593 = vst [vmem:[#allocation62_spill] sm:$0xff] %v11769_v54 }
 0x37c   : > { %v11752_v6 = vpop.f32.mrf.mxu1 }
 0x37d   : > { %6892 = vmatmul.mubr.bf16.gmra.mxu0 %v12591_v7  ;;  %v6321_v7 = vadd.f32 %v11666_v55, %v6208_v16 }
 0x37e   : > { %v11754_v44 = vpop.f32.mrf.mxu1  ;;  %7029 = vmatprep.mubr.bf16.mxu0 %v11119_v37  ;;  %v6210_v37 = vadd.f32 %v11554_v21, %v11428_v47  ;;  %v6214_v47 = vadd.f32 %v11566_v27, %v11444_v58  ;;  %v12594_v27 = vld [vmem:[#allocation82_spill] sm:$0xff] }
 0x380   : > { %v11760_v53 = vpop.f32.mrf.mxu1  ;;  %v6323_v49 = vadd.f32 %v11673_v25, %v6210_v37  ;;  %v6327_v58 = vadd.f32 %v11685_v48, %v6214_v47  ;;  %v6222_v48 = vadd.f32 %v11587_v46, %v11470_v42  ;;  %v12597_v42 = vld [vmem:[#allocation88_spill] sm:$0xff] }
 0x382   : > { %v11762_v51 = vpop.f32.mrf.mxu1  ;;  %6973 = vmatmul.mubr.bf16.gmra.mxu1 %v11102_v4  ;;  %v6212_v4 = vadd.f32 %v11559_v52, %v11435_v57  ;;  %v6218_v52 = vadd.f32 %v11571_v0, %v11453_v31  ;;  %v12595_v0 = vld [vmem:[#allocation87_spill] sm:$0xff] }
 0x383   : > { %6980 = vmatprep.mubr.bf16.mxu1 %v11107_v18 }
 0x384   : > { %v11771_v28 = vpop.f32.mrf.mxu1  ;;  %v6325_v21 = vadd.f32 %v11678_v13, %v6212_v4  ;;  %v12596_v4 = vld [vmem:[#allocation19_spill] sm:$0xff] }
 0x385   : > { %v6433_v33 = vpop.f32.mrf.mxu0  ;;  %7030 = vmatmul.mubr.bf16.vlgmr.msra.gmra.mxu0 %v11123_v39 }
 0x386   : > { %v11776_v50 = vpop.f32.mrf.mxu1  ;;  %v6434_v18 = vadd.f32 %v6433_v33, %v6321_v7  ;;  %7037 = vmatprep.mubr.bf16.mxu0 %v11153_v12  ;;  %v6220_v33 = vadd.f32 %v11580_v45, %v11462_v38 }
 0x387   : > { %v6435_v54 = vpop.f32.mrf.mxu0 }
 0x388   : > { %v11783_v36 = vpop.f32.mrf.mxu1  ;;  %7094 = vst [vmem:[%s11788_s26] sm:$0xff] %v6434_v18  ;;  %v6436_v39 = vadd.f32 %v6435_v54, %v6323_v49  ;;  %v6333_v37 = vadd.f32 %v11697_v17, %v6220_v33  ;;  %v6335_v49 = vadd.f32 %v11702_v40, %v6222_v48  ;;  %v6228_v17 = vadd.f32 %v11605_v43, %v11486_v61  ;;  %v12599_v43 = vld [vmem:[#allocation89_spill] sm:$0xff]  ;;  %v12600_v33 = vld [vmem:[#allocation18_spill] sm:$0xff]  ;;  %v12602_v48 = vld [vmem:[#allocation16_spill] sm:$0xff] }
 0x389   : > { %v6437_v12 = vpop.f32.mrf.mxu0 }
 0x38a   : > { %v11791_v57 = vpop.f32.mrf.mxu1  ;;  %6981 = vmatmul.mubr.bf16.gmra.mxu1 %v11137_v29  ;;  %7095 = vst [vmem:[%s11788_s26 + $0x8] sm:$0xff] %v6436_v39  ;;  %v6438_v13 = vadd.f32 %v6437_v12, %v6325_v21  ;;  %v6331_v29 = vadd.f32 %v11690_v1, %v6218_v52  ;;  %v6224_v1 = vadd.f32 %v11597_v15, %v11479_v63  ;;  %v12598_v39 = vld [vmem:[#allocation25_spill] sm:$0xff] }
 0x38b   : > { %6988 = vmatprep.mubr.bf16.mxu1 %v12594_v27  ;;  %v6439_v25 = vpop.f32.mrf.mxu0  ;;  %v6230_v12 = vadd.f32 %v11615_v23, %v11495_v62  ;;  %v6341_v52 = vadd.f32 %v11714_v8, %v6228_v17  ;;  %v6234_v8 = vadd.f32 %v11633_v35, %v11511_v41 }
 0x38c   : > { %v11799_v55 = vpop.f32.mrf.mxu1  ;;  %7097 = vst [vmem:[%s11788_s26 + $0x18] sm:$0xff] %v6438_v13  ;;  %v6440_v16 = vadd.f32 %v6439_v25, %v6327_v58  ;;  %v6337_v21 = vadd.f32 %v11709_v19, %v6224_v1  ;;  %v6232_v19 = vadd.f32 %v11623_v60, %v11502_v59  ;;  %v12601_v59 = vld [vmem:[#allocation28_spill] sm:$0xff]  ;;  %v12604_v1 = vld [vmem:[#allocation27_spill] sm:$0xff] }
 0x38d   : > { %v6443_v31 = vpop.f32.mrf.mxu0  ;;  %7038 = vmatmul.mubr.bf16.gmra.mxu0 %v12595_v0  ;;  %v6343_v13 = vadd.f32 %v11720_v10, %v6230_v12  ;;  %v6238_v10 = vadd.f32 %v11641_v30, %v11518_v3  ;;  %v6347_v0 = vadd.f32 %v11728_v34, %v6234_v8  ;;  %v12603_v34 = vld [vmem:[#allocation22_spill] sm:$0xff]  ;;  %v12608_v12 = vld [vmem:[#allocation37_spill] sm:$0xff] }
 0x38e   : > { %v11805_v54 = vpop.f32.mrf.mxu1  ;;  %7098 = vst [vmem:[%s11788_s26 + $0x20] sm:$0xff] %v6440_v16  ;;  %v6444_v7 = vadd.f32 %v6443_v31, %v6331_v29  ;;  %7045 = vmatprep.mubr.bf16.mxu0 %v12596_v4  ;;  %v6345_v29 = vadd.f32 %v11722_v20, %v6232_v19  ;;  %v6240_v20 = vadd.f32 %v11649_v32, %v11527_v11  ;;  %v12605_v11 = vld [vmem:[#allocation21_spill] sm:$0xff] }
 0x38f   : > { %v6445_v45 = vpop.f32.mrf.mxu0 }
 0x390   : > { %v11813_v38 = vpop.f32.mrf.mxu1  ;;  %7100 = vst [vmem:[%s11788_s26 + $0x30] sm:$0xff] %v6444_v7  ;;  %v6446_v18 = vadd.f32 %v6445_v45, %v6333_v37  ;;  %v6351_v7 = vadd.f32 %v11730_v24, %v6238_v10 }
 0x391   : > { %v6447_v46 = vpop.f32.mrf.mxu0 }
 0x392   : > { %v11819_v47 = vpop.f32.mrf.mxu1  ;;  %6989 = vmatmul.mubr.bf16.gmra.mxu1 %v12597_v42  ;;  %7101 = vst [vmem:[%s11788_s26 + $0x38] sm:$0xff] %v6446_v18  ;;  %v6448_v63 = vadd.f32 %v6447_v46, %v6335_v49  ;;  %v6242_v49 = vadd.f32 %v11655_v26, %v12604_v1  ;;  %v6353_v18 = vadd.f32 %v11736_v5, %v6240_v20  ;;  %v12606_v46 = vld [vmem:[#allocation31_spill] sm:$0xff]  ;;  %v12618_v1 = vld [vmem:[#allocation20_spill] sm:$0xff] }
 0x393   : > { %7077 = vmatprep.mubr.bf16.mxu1 %v12598_v39  ;;  %v6449_v40 = vpop.f32.mrf.mxu0  ;;  %v6244_v17 = vadd.f32 %v11662_v56, %v12606_v46 }
 0x394   : > { %v11827_v15 = vpop.f32.mrf.mxu1  ;;  %7103 = vst [vmem:[%s11788_s26 + $0x48] sm:$0xff] %v6448_v63  ;;  %v6450_v58 = vadd.f32 %v6449_v40, %v6337_v21  ;;  %v6355_v21 = vadd.f32 %v11738_v14, %v6242_v49  ;;  %v12607_v40 = vld [vmem:[#allocation17_spill] sm:$0xff] }
 0x395   : > { %v6453_v61 = vpop.f32.mrf.mxu0  ;;  %7046 = vmatmul.mubr.bf16.gmra.mxu0 %v12599_v43  ;;  %v12611_v14 = vld [vmem:[#allocation53_spill] sm:$0xff] }
 0x396   : > { %v11833_v27 = vpop.f32.mrf.mxu1  ;;  %7104 = vst [vmem:[%s11788_s26 + $0x50] sm:$0xff] %v6450_v58  ;;  %v6454_v25 = vadd.f32 %v6453_v61, %v6341_v52  ;;  %7053 = vmatprep.mubr.bf16.mxu0 %v12600_v33  ;;  %v12609_v52 = vld [vmem:[#allocation44_spill] sm:$0xff]  ;;  %v6357_v61 = vadd.f32 %v11744_v9, %v6244_v17 }
 0x397   : > { %v6455_v23 = vpop.f32.mrf.mxu0  ;;  %v6248_v58 = vadd.f32 %v12609_v52, %v12608_v12  ;;  %v12614_v9 = vld [vmem:[#allocation56_spill] sm:$0xff] }
 0x398   : > { %v11841_v62 = vpop.f32.mrf.mxu1  ;;  %7106 = vst [vmem:[%s11788_s26 + $0x60] sm:$0xff] %v6454_v25  ;;  %v6456_v16 = vadd.f32 %v6455_v23, %v6343_v13  ;;  %v12610_v13 = vld [vmem:[#allocation29_spill] sm:$0xff] }
 0x399   : > { %v6457_v60 = vpop.f32.mrf.mxu0  ;;  %v6250_v25 = vadd.f32 %v12611_v14, %v12610_v13  ;;  %v6361_v33 = vadd.f32 %v11746_v22, %v6248_v58 }
 0x39a   : > { %v7904_v31 = vpop.f32.mrf.mxu1  ;;  %7078 = vmatmul.mubr.bf16.vlgmr.msra.gmra.mxu1 %v12601_v59  ;;  %7107 = vst [vmem:[%s11788_s26 + $0x68] sm:$0xff] %v6456_v16  ;;  %v6458_v37 = vadd.f32 %v6457_v60, %v6345_v29  ;;  %v12613_v59 = vld [vmem:[#allocation33_spill] sm:$0xff] }
 0x39b   : > { %7085 = vmatprep.mubr.bf16.mxu1 %v12602_v48  ;;  %v6459_v35 = vpop.f32.mrf.mxu0  ;;  %v6252_v60 = vadd.f32 %v12614_v9, %v12613_v59  ;;  %v6363_v10 = vadd.f32 %v11752_v6, %v6250_v25  ;;  %v12615_v48 = vld [vmem:[#allocation23_spill] sm:$0xff]  ;;  %v12619_v6 = vld [vmem:[#allocation46_spill] sm:$0xff] }
 0x39c   : > { %v7905_v41 = vpop.f32.mrf.mxu1  ;;  %7109 = vst [vmem:[%s11788_s26 + $0x78] sm:$0xff] %v6458_v37  ;;  %v6460_v45 = vadd.f32 %v6459_v35, %v6347_v0  ;;  %v12617_v35 = vld [vmem:[#allocation43_spill] sm:$0xff]  ;;  %v6258_v49 = vadd.f32 %v12619_v6, %v12618_v1  ;;  %v12633_v6 = vld [vmem:[#allocation60_spill] sm:$0xff] }
 0x39d   : > { %v11857_v4 = vadd.f32 %v7905_v41, %v7904_v31  ;;  %v6463_v30 = vpop.f32.mrf.mxu0  ;;  %7054 = vmatmul.mubr.bf16.gmra.mxu0 %v12603_v34  ;;  %v12612_v31 = vld [vmem:[#allocation24_spill] sm:$0xff]  ;;  %v12632_v1 = vld [vmem:[#allocation39_spill] sm:$0xff] }
 0x39e   : > { %v7907_v3 = vpop.f32.mrf.mxu1  ;;  %7110 = vst [vmem:[%s11788_s26 + $0x80] sm:$0xff] %v6460_v45  ;;  %v6464_v42 = vadd.f32 %v6463_v30, %v6351_v7  ;;  %7061 = vmatprep.mubr.bf16.mxu0 %v12605_v11  ;;  %v12616_v41 = vld [vmem:[#allocation36_spill] sm:$0xff]  ;;  %v6365_v7 = vadd.f32 %v11754_v44, %v6252_v60  ;;  %v6371_v44 = vadd.f32 %v11762_v51, %v6258_v49  ;;  %v12625_v51 = vld [vmem:[#allocation58_spill] sm:$0xff] }
 0x39f   : > { %v6465_v24 = vpop.f32.mrf.mxu0  ;;  %v6254_v20 = vadd.f32 %v12617_v35, %v12616_v41  ;;  %v12628_v60 = vld [vmem:[#allocation34_spill] sm:$0xff]  ;;  %v12630_v35 = vld [vmem:[#allocation52_spill] sm:$0xff] }
 0x3a0   : > { %v7908_v32 = vpop.f32.mrf.mxu1  ;;  %7112 = vst [vmem:[%s11788_s26 + $0x90] sm:$0xff] %v6464_v42  ;;  %v6466_v63 = vadd.f32 %v6465_v24, %v6353_v18  ;;  %v12620_v24 = vld [vmem:[#allocation32_spill] sm:$0xff] }
 0x3a1   : > { %v11869_v39 = vadd.f32 %v7908_v32, %v7907_v3  ;;  %v6467_v5 = vpop.f32.mrf.mxu0  ;;  %v6367_v18 = vadd.f32 %v11760_v53, %v6254_v20  ;;  %v6260_v46 = vadd.f32 %v11695_v2, %v12620_v24  ;;  %v12623_v53 = vld [vmem:[#allocation55_spill] sm:$0xff]  ;;  %v12631_v20 = vld [vmem:[#allocation57_spill] sm:$0xff]  ;;  %v12634_v24 = vld [vmem:[#allocation42_spill] sm:$0xff] }
 0x3a2   : > { %v7910_v26 = vpop.f32.mrf.mxu1  ;;  %7086 = vmatmul.mubr.bf16.gmra.mxu1 %v12607_v40  ;;  %7113 = vst [vmem:[%s11788_s26 + $0x98] sm:$0xff] %v6466_v63  ;;  %v6468_v43 = vadd.f32 %v6467_v5, %v6355_v21  ;;  %v12621_v40 = vld [vmem:[#allocation26_spill] sm:$0xff]  ;;  %v12622_v5 = vld [vmem:[#allocation35_spill] sm:$0xff] }
 0x3a3   : > { %v6469_v19 = vpop.f32.mrf.mxu0  ;;  %v6262_v12 = vadd.f32 %v12623_v53, %v12622_v5  ;;  %v6373_v52 = vadd.f32 %v11771_v28, %v6260_v46  ;;  %v12635_v46 = vld [vmem:[#allocation47_spill] sm:$0xff]  ;;  %v12637_v5 = vld [vmem:[#allocation50_spill] sm:$0xff] }
 0x3a4   : > { %v7911_v56 = vpop.f32.mrf.mxu1  ;;  %7115 = vst [vmem:[%s11788_s26 + $0xa8] sm:$0xff] %v6468_v43  ;;  %v6470_v8 = vadd.f32 %v6469_v19, %v6357_v61  ;;  %v12624_v43 = vld [vmem:[#allocation38_spill] sm:$0xff] }
 0x3a5   : > { %v11880_v23 = vadd.f32 %v7911_v56, %v7910_v26  ;;  %v6473_v16 = vpop.f32.mrf.mxu0  ;;  %7062 = vmatmul.mubr.bf16.gmra.mxu0 %v12612_v31  ;;  %v6264_v56 = vadd.f32 %v12625_v51, %v12624_v43  ;;  %v6375_v19 = vadd.f32 %v11776_v50, %v6262_v12  ;;  %v12639_v43 = vld [vmem:[#allocation59_spill] sm:$0xff] }
 0x3a6   : > { %v7913_v29 = vpop.f32.mrf.mxu1  ;;  %7116 = vst [vmem:[%s11788_s26 + $0xb0] sm:$0xff] %v6470_v8  ;;  %v6474_v0 = vadd.f32 %v6473_v16, %v6361_v33  ;;  %7069 = vmatprep.mubr.bf16.mxu0 %v12615_v48  ;;  %v12626_v8 = vld [vmem:[#allocation40_spill] sm:$0xff] }
 0x3a7   : > { %v6475_v37 = vpop.f32.mrf.mxu0  ;;  %v6377_v16 = vadd.f32 %v11783_v36, %v6264_v56  ;;  %v6272_v36 = vadd.f32 %v12631_v20, %v12630_v35 }
 0x3a8   : > { %v7914_v22 = vpop.f32.mrf.mxu1  ;;  %7118 = vst [vmem:[%s11788_s26 + $0xc0] sm:$0xff] %v6474_v0  ;;  %v6476_v3 = vadd.f32 %v6475_v37, %v6363_v10  ;;  %v12629_v10 = vld [vmem:[#allocation48_spill] sm:$0xff] }
 0x3a9   : > { %v11892_v45 = vadd.f32 %v7914_v22, %v7913_v29  ;;  %v6477_v34 = vpop.f32.mrf.mxu0  ;;  %v12627_v29 = vld [vmem:[#allocation45_spill] sm:$0xff]  ;;  %v6270_v50 = vadd.f32 %v12629_v10, %v12628_v60  ;;  %v6385_v49 = vadd.f32 %v11805_v54, %v6272_v36  ;;  %v9284_v10 = vld [vmem:[#allocation10] sm:$0x7] }
 0x3aa   : > { %v7916_v30 = vpop.f32.mrf.mxu1  ;;  %7119 = vst [vmem:[%s11788_s26 + $0xc8] sm:$0xff] %v6476_v3  ;;  %v6478_v42 = vadd.f32 %v6477_v34, %v6365_v7  ;;  %v6268_v28 = vadd.f32 %v12627_v29, %v12626_v8 }
 0x3ab   : > { %v6479_v32 = vpop.f32.mrf.mxu0  ;;  %v6383_v7 = vadd.f32 %v11799_v55, %v6270_v50  ;;  %v6278_v55 = vadd.f32 %v12635_v46, %v12634_v24  ;;  %v12642_v50 = vld [vmem:[#allocation30_spill] sm:$0xff] }
 0x3ac   : > { %v7917_v11 = vpop.f32.mrf.mxu1  ;;  %7121 = vst [vmem:[%s11788_s26 + $0xd8] sm:$0xff] %v6478_v42  ;;  %v6480_v21 = vadd.f32 %v6479_v32, %v6367_v18  ;;  %v6381_v0 = vadd.f32 %v11791_v57, %v6268_v28  ;;  %v6274_v57 = vadd.f32 %v12633_v6, %v12632_v1 }
 0x3ad   : > { %v11902_v17 = vadd.f32 %v7917_v11, %v7916_v30  ;;  %v6483_v26 = vpop.f32.mrf.mxu0  ;;  %7070 = vmatmul.mubr.bf16.gmra.mxu0 %v12621_v40  ;;  %v12636_v40 = vld [vmem:[#allocation51_spill] sm:$0xff]  ;;  %v6391_v53 = vadd.f32 %v11819_v47, %v6278_v55 }
 0x3ae   : > { %v7919_v63 = vpop.f32.mrf.mxu1  ;;  %7122 = vst [vmem:[%s11788_s26 + $0xe0] sm:$0xff] %v6480_v21  ;;  %v6484_v58 = vadd.f32 %v6483_v26, %v6371_v44  ;;  %v6387_v44 = vadd.f32 %v11813_v38, %v6274_v57  ;;  %v6280_v54 = vadd.f32 %v12637_v5, %v12636_v40 }
 0x3af   : > { %v6485_v61 = vpop.f32.mrf.mxu0 }
 0x3b0   : > { %v7920_v2 = vpop.f32.mrf.mxu1  ;;  %7124 = vst [vmem:[%s11788_s26 + $0xf0] sm:$0xff] %v6484_v58  ;;  %v6486_v14 = vadd.f32 %v6485_v61, %v6373_v52  ;;  %v12638_v61 = vld [vmem:[#allocation54_spill] sm:$0xff]  ;;  %v6393_v51 = vadd.f32 %v11827_v15, %v6280_v54 }
 0x3b1   : > { %v11913_v13 = vadd.f32 %v7920_v2, %v7919_v63  ;;  %v6487_v33 = vpop.f32.mrf.mxu0  ;;  %v6282_v38 = vadd.f32 %v12639_v43, %v12638_v61 }
 0x3b2   : > { %v7922_v25 = vpop.f32.mrf.mxu1  ;;  %7125 = vst [vmem:[%s11788_s26 + $0xf8] sm:$0xff] %v6486_v14  ;;  %v6488_v31 = vadd.f32 %v6487_v33, %v6375_v19  ;;  %v12641_v33 = vld [vmem:[#allocation62_spill] sm:$0xff] }
 0x3b3   : > { %v6489_v9 = vpop.f32.mrf.mxu0  ;;  %v6395_v8 = vadd.f32 %v11833_v27, %v6282_v38 }
 0x3b4   : > { %v7923_v59 = vpop.f32.mrf.mxu1  ;;  %7127 = vst [vmem:[%s11788_s26 + $0x108] sm:$0xff] %v6488_v31  ;;  %v6490_v22 = vadd.f32 %v6489_v9, %v6377_v16 }
 0x3b5   : > { %v11923_v48 = vadd.f32 %v7923_v59, %v7922_v25  ;;  %v6493_v41 = vpop.f32.mrf.mxu0  ;;  %v12640_v25 = vld [vmem:[#allocation41_spill] sm:$0xff] }
 0x3b6   : > { %v7925_v37 = vpop.f32.mrf.mxu1  ;;  %7128 = vst [vmem:[%s11788_s26 + $0x110] sm:$0xff] %v6490_v22  ;;  %v6494_v3 = vadd.f32 %v6493_v41, %v6381_v0  ;;  %v6284_v47 = vadd.f32 %v12641_v33, %v12640_v25  ;;  %v11958_v0 = vrot.slane %v9284_v10, %v12642_v50 }
 0x3b7   : > { %v6495_v34 = vpop.f32.mrf.mxu0 }
 0x3b8   : > { %v7926_v30 = vpop.f32.mrf.mxu1  ;;  %7130 = vst [vmem:[%s11788_s26 + $0x120] sm:$0xff] %v6494_v3  ;;  %v6496_v42 = vadd.f32 %v6495_v34, %v6383_v7  ;;  %v6397_v59 = vadd.f32 %v11841_v62, %v6284_v47  ;;  %v6547_v62 = vadd.f32 %v11857_v4, %v11958_v0  ;;  %v6550_v57 = vadd.f32 %v11869_v39, %v11958_v0 }
 0x3b9   : > { %v11933_v18 = vadd.f32 %v7926_v30, %v7925_v37  ;;  %v6497_v32 = vpop.f32.mrf.mxu0  ;;  %v6555_v4 = vadd.f32 %v11880_v23, %v11958_v0  ;;  %v6558_v39 = vadd.f32 %v11892_v45, %v11958_v0  ;;  %v6563_v23 = vadd.f32 %v11902_v17, %v11958_v0 }
 0x3ba   : > { %v7928_v11 = vpop.f32.mrf.mxu1  ;;  %7131 = vst [vmem:[%s11788_s26 + $0x128] sm:$0xff] %v6496_v42  ;;  %v6498_v21 = vadd.f32 %v6497_v32, %v6385_v49  ;;  %v6566_v45 = vadd.f32 %v11913_v13, %v11958_v0 }
 0x3bb   : > { %v6499_v26 = vpop.f32.mrf.mxu0 }
 0x3bc   : > { %v7929_v63 = vpop.f32.mrf.mxu1  ;;  %7133 = vst [vmem:[%s11788_s26 + $0x138] sm:$0xff] %v6498_v21  ;;  %v6500_v52 = vadd.f32 %v6499_v26, %v6387_v44 }
 0x3bd   : > { %v11943_v12 = vadd.f32 %v7929_v63, %v7928_v11  ;;  %v6503_v2 = vpop.f32.mrf.mxu0 }
 0x3be   : > { %v7931_v58 = vpop.f32.mrf.mxu1  ;;  %7134 = vst [vmem:[%s11788_s26 + $0x140] sm:$0xff] %v6500_v52  ;;  %v6504_v56 = vadd.f32 %v6503_v2, %v6391_v53 }
 0x3bf   : > { %v6505_v14 = vpop.f32.mrf.mxu0 }
 0x3c0   : > { %v7932_v19 = vpop.f32.mrf.mxu1  ;;  %7136 = vst [vmem:[%s11788_s26 + $0x150] sm:$0xff] %v6504_v56  ;;  %v6506_v28 = vadd.f32 %v6505_v14, %v6393_v51 }
 0x3c1   : > { %v11953_v29 = vadd.f32 %v7932_v19, %v7931_v58  ;;  %v6507_v31 = vpop.f32.mrf.mxu0 }
 0x3c2   : > { %v7934_v16 = vpop.f32.mrf.mxu1  ;;  %7137 = vst [vmem:[%s11788_s26 + $0x158] sm:$0xff] %v6506_v28  ;;  %v6508_v15 = vadd.f32 %v6507_v31, %v6395_v8 }
 0x3c3   : > { %v6509_v60 = vpop.f32.mrf.mxu0 }
 0x3c4   : > { %v7935_v9 = vpop.f32.mrf.mxu1  ;;  %7139 = vst [vmem:[%s11788_s26 + $0x168] sm:$0xff] %v6508_v15  ;;  %v6510_v27 = vadd.f32 %v6509_v60, %v6397_v59  ;;  %v6571_v60 = vadd.f32 %v11923_v48, %v11958_v0 }
 0x3c5   : > { %v11961_v22 = vadd.f32 %v7935_v9, %v7934_v16  ;;  %v7968_v41 = vpop.f32.mrf.mxu0 }
 0x3c6   : > { %v7937_v37 = vpop.f32.mrf.mxu1  ;;  %7140 = vst [vmem:[%s11788_s26 + $0x170] sm:$0xff] %v6510_v27 }
 0x3c7   : > { %v7969_v20 = vpop.f32.mrf.mxu0 }
 0x3c8   : > { %v7938_v35 = vpop.f32.mrf.mxu1  ;;  %v7970_v7 = vadd.f32 %v7969_v20, %v7968_v41 }
 0x3c9   : > { %v11966_v36 = vadd.f32 %v7938_v35, %v7937_v37  ;;  %v7971_v30 = vpop.f32.mrf.mxu0 }
 0x3ca   : > { %v7940_v3 = vpop.f32.mrf.mxu1  ;;  %v6644_v34 = vadd.f32 %v7970_v7, %v6547_v62  ;;  %v6574_v62 = vadd.f32 %v11933_v18, %v11958_v0 }
 0x3cb   : > { %v7972_v6 = vpop.f32.mrf.mxu0 }
 0x3cc   : > { %v7941_v1 = vpop.f32.mrf.mxu1  ;;  %v7973_v42 = vadd.f32 %v7972_v6, %v7971_v30 }
 0x3cd   : > { %v11970_v49 = vadd.f32 %v7941_v1, %v7940_v3  ;;  %v7974_v32 = vpop.f32.mrf.mxu0 }
 0x3ce   : > { %v7943_v11 = vpop.f32.mrf.mxu1  ;;  %v6647_v24 = vadd.f32 %v7973_v42, %v6550_v57  ;;  %v6579_v42 = vadd.f32 %v11943_v12, %v11958_v0 }
 0x3cf   : > { %v7975_v55 = vpop.f32.mrf.mxu0 }
 0x3d0   : > { %v7944_v46 = vpop.f32.mrf.mxu1  ;;  %v7976_v21 = vadd.f32 %v7975_v55, %v7974_v32 }
 0x3d1   : > { %v11974_v44 = vadd.f32 %v7944_v46, %v7943_v11  ;;  %v7977_v26 = vpop.f32.mrf.mxu0 }
 0x3d2   : > { %v7946_v63 = vpop.f32.mrf.mxu1  ;;  %v6652_v40 = vadd.f32 %v7976_v21, %v6555_v4 }
 0x3d3   : > { %v7978_v54 = vpop.f32.mrf.mxu0 }
 0x3d4   : > { %v7947_v5 = vpop.f32.mrf.mxu1  ;;  %v7979_v52 = vadd.f32 %v7978_v54, %v7977_v26 }
 0x3d5   : > { %v11978_v53 = vadd.f32 %v7947_v5, %v7946_v63  ;;  %v7980_v2 = vpop.f32.mrf.mxu0  ;;  %v6582_v63 = vadd.f32 %v11953_v29, %v11958_v0 }
 0x3d6   : > { %v7949_v58 = vpop.f32.mrf.mxu1  ;;  %v6655_v61 = vadd.f32 %v7979_v52, %v6558_v39 }
 0x3d7   : > { %v7981_v38 = vpop.f32.mrf.mxu0 }
 0x3d8   : > { %v7950_v43 = vpop.f32.mrf.mxu1  ;;  %v7982_v56 = vadd.f32 %v7981_v38, %v7980_v2  ;;  %v6587_v2 = vadd.f32 %v11961_v22, %v11958_v0 }
 0x3d9   : > { %v11982_v51 = vadd.f32 %v7950_v43, %v7949_v58  ;;  %v7983_v14 = vpop.f32.mrf.mxu0 }
 0x3da   : > { %v8032_v19 = vpop.f32.mrf.mxu1  ;;  %v6660_v25 = vadd.f32 %v7982_v56, %v6563_v23 }
 0x3db   : > { %v7984_v47 = vpop.f32.mrf.mxu0 }
 0x3dc   : > { %v8033_v33 = vpop.f32.mrf.mxu1  ;;  %v7985_v28 = vadd.f32 %v7984_v47, %v7983_v14 }
 0x3dd   : > { %v8034_v8 = vadd.f32 %v8033_v33, %v8032_v19  ;;  %v7986_v31 = vpop.f32.mrf.mxu0  ;;  %v6590_v33 = vadd.f32 %v11966_v36, %v11958_v0 }
 0x3de   : > { %v8035_v16 = vpop.f32.mrf.mxu1  ;;  %v6663_v15 = vadd.f32 %v7985_v28, %v6566_v45 }
 0x3df   : > { %v11986_v59 = vadd.f32 %v8034_v8, %v6644_v34  ;;  %v7987_v17 = vpop.f32.mrf.mxu0 }
 0x3e0   : > { %v8036_v9 = vpop.f32.mrf.mxu1  ;;  %v7988_v50 = vadd.f32 %v7987_v17, %v7986_v31 }
 0x3e1   : > { %v8037_v10 = vadd.f32 %v8036_v9, %v8035_v16  ;;  %v7989_v37 = vpop.f32.mrf.mxu0  ;;  %v6595_v9 = vadd.f32 %v11970_v49, %v11958_v0 }
 0x3e2   : > { %v8038_v27 = vpop.f32.mrf.mxu1  ;;  %v6668_v35 = vadd.f32 %v7988_v50, %v6571_v60 }
 0x3e3   : > { %v11990_v41 = vadd.f32 %v8037_v10, %v6647_v24  ;;  %v7990_v20 = vpop.f32.mrf.mxu0 }
 0x3e4   : > { %v8039_v13 = vpop.f32.mrf.mxu1  ;;  %v7991_v3 = vadd.f32 %v7990_v20, %v7989_v37 }
 0x3e5   : > { %v8040_v7 = vadd.f32 %v8039_v13, %v8038_v27  ;;  %v7992_v34 = vpop.f32.mrf.mxu0  ;;  %v6598_v13 = vadd.f32 %v11974_v44, %v11958_v0 }
 0x3e6   : > { %v8041_v30 = vpop.f32.mrf.mxu1  ;;  %v6671_v6 = vadd.f32 %v7991_v3, %v6574_v62 }
 0x3e7   : > { %v11994_v1 = vadd.f32 %v8040_v7, %v6652_v40  ;;  %v7993_v57 = vpop.f32.mrf.mxu0 }
 0x3e8   : > { %v8042_v48 = vpop.f32.mrf.mxu1  ;;  %v7994_v32 = vadd.f32 %v7993_v57, %v7992_v34 }
 0x3e9   : > { %v8043_v11 = vadd.f32 %v8042_v48, %v8041_v30  ;;  %v7995_v46 = vpop.f32.mrf.mxu0  ;;  %v6603_v48 = vadd.f32 %v11978_v53, %v11958_v0 }
 0x3ea   : > { %v8044_v24 = vpop.f32.mrf.mxu1  ;;  %v6676_v4 = vadd.f32 %v7994_v32, %v6579_v42 }
 0x3eb   : > { %v11998_v55 = vadd.f32 %v8043_v11, %v6655_v61  ;;  %v7996_v21 = vpop.f32.mrf.mxu0 }
 0x3ec   : > { %v8045_v18 = vpop.f32.mrf.mxu1  ;;  %v7997_v40 = vadd.f32 %v7996_v21, %v7995_v46 }
 0x3ed   : > { %v8046_v26 = vadd.f32 %v8045_v18, %v8044_v24  ;;  %v7998_v54 = vpop.f32.mrf.mxu0  ;;  %v6606_v18 = vadd.f32 %v11982_v51, %v11958_v0 }
 0x3ee   : > { %v8047_v5 = vpop.f32.mrf.mxu1  ;;  %v6679_v52 = vadd.f32 %v7997_v40, %v6582_v63 }
 0x3ef   : > { %v12002_v39 = vadd.f32 %v8046_v26, %v6660_v25  ;;  %v7999_v58 = vpop.f32.mrf.mxu0 }
 0x3f0   : > { %v8048_v12 = vpop.f32.mrf.mxu1  ;;  %v8000_v43 = vadd.f32 %v7999_v58, %v7998_v54 }
 0x3f1   : > { %v8049_v61 = vadd.f32 %v8048_v12, %v8047_v5  ;;  %v8001_v23 = vpop.f32.mrf.mxu0 }
 0x3f2   : > { %v8050_v38 = vpop.f32.mrf.mxu1  ;;  %v6684_v19 = vadd.f32 %v8000_v43, %v6587_v2 }
 0x3f3   : > { %v12006_v56 = vadd.f32 %v8049_v61, %v6663_v15  ;;  %v8002_v14 = vpop.f32.mrf.mxu0 }
 0x3f4   : > { %v8051_v29 = vpop.f32.mrf.mxu1  ;;  %v8003_v47 = vadd.f32 %v8002_v14, %v8001_v23 }
 0x3f5   : > { %v8052_v25 = vadd.f32 %v8051_v29, %v8050_v38  ;;  %v8004_v8 = vpop.f32.mrf.mxu0 }
 0x3f6   : > { %v8053_v45 = vpop.f32.mrf.mxu1  ;;  %v6687_v16 = vadd.f32 %v8003_v47, %v6590_v33 }
 0x3f7   : > { %v12010_v28 = vadd.f32 %v8052_v25, %v6668_v35  ;;  %v8005_v31 = vpop.f32.mrf.mxu0 }
 0x3f8   : > { %v8054_v22 = vpop.f32.mrf.mxu1  ;;  %v8006_v17 = vadd.f32 %v8005_v31, %v8004_v8 }
 0x3f9   : > { %v8055_v15 = vadd.f32 %v8054_v22, %v8053_v45  ;;  %v8007_v10 = vpop.f32.mrf.mxu0 }
 0x3fa   : > { %v8056_v60 = vpop.f32.mrf.mxu1  ;;  %v6692_v27 = vadd.f32 %v8006_v17, %v6595_v9 }
 0x3fb   : > { %v12014_v50 = vadd.f32 %v8055_v15, %v6671_v6  ;;  %v8008_v37 = vpop.f32.mrf.mxu0 }
 0x3fc   : > { %v8057_v36 = vpop.f32.mrf.mxu1  ;;  %v8009_v20 = vadd.f32 %v8008_v37, %v8007_v10 }
 0x3fd   : > { %v8058_v35 = vadd.f32 %v8057_v36, %v8056_v60  ;;  %v8010_v7 = vpop.f32.mrf.mxu0 }
 0x3fe   : > { %v8059_v62 = vpop.f32.mrf.mxu1  ;;  %v6695_v30 = vadd.f32 %v8009_v20, %v6598_v13 }
 0x3ff   : > { %v12018_v3 = vadd.f32 %v8058_v35, %v6676_v4  ;;  %v8011_v34 = vpop.f32.mrf.mxu0 }
 0x400   : > { %v8060_v49 = vpop.f32.mrf.mxu1  ;;  %v8012_v57 = vadd.f32 %v8011_v34, %v8010_v7 }
 0x401   : > { %12643 = vst [vmem:[#allocation49_spill] sm:$0xff] %v12018_v3  ;;  %v8061_v6 = vadd.f32 %v8060_v49, %v8059_v62  ;;  %v8013_v11 = vpop.f32.mrf.mxu0 }
 0x402   : > { %v8062_v42 = vpop.f32.mrf.mxu1  ;;  %v6700_v24 = vadd.f32 %v8012_v57, %v6603_v48 }
 0x403   : > { %v12022_v32 = vadd.f32 %v8061_v6, %v6679_v52  ;;  %v8014_v46 = vpop.f32.mrf.mxu0 }
 0x404   : > { %v8063_v44 = vpop.f32.mrf.mxu1  ;;  %v8015_v21 = vadd.f32 %v8014_v46, %v8013_v11 }
 0x405   : > { %12644 = vst [vmem:[#allocation67_spill] sm:$0xff] %v12022_v32  ;;  %v8064_v4 = vadd.f32 %v8063_v44, %v8062_v42  ;;  %v12026_v26 = vpop.f32.mrf.mxu0 }
 0x406   : > { %v8065_v63 = vpop.f32.mrf.mxu1  ;;  %v6703_v53 = vadd.f32 %v8015_v21, %v6606_v18 }
 0x407   : > { %v12028_v40 = vadd.f32 %v8064_v4, %v6684_v19  ;;  %v12030_v54 = vpop.f32.mrf.mxu0 }
 0x408   : > { %v8066_v5 = vpop.f32.mrf.mxu1 }
 0x409   : > { %12645 = vst [vmem:[#allocation61_spill] sm:$0xff] %v12028_v40  ;;  %v8067_v12 = vadd.f32 %v8066_v5, %v8065_v63  ;;  %v12032_v58 = vpop.f32.mrf.mxu0 }
 0x40a   : > { %v8068_v52 = vpop.f32.mrf.mxu1 }
 0x40b   : > { %v12034_v2 = vadd.f32 %v8067_v12, %v6687_v16  ;;  %v12036_v43 = vpop.f32.mrf.mxu0 }
 0x40c   : > { %v8069_v61 = vpop.f32.mrf.mxu1 }
 0x40d   : > { %12646 = vst [vmem:[#allocation64_spill] sm:$0xff] %v12034_v2  ;;  %v8070_v0 = vadd.f32 %v8069_v61, %v8068_v52  ;;  %v12038_v38 = vpop.f32.mrf.mxu0 }
 0x40e   : > { %v8071_v51 = vpop.f32.mrf.mxu1 }
 0x40f   : > { %v12040_v23 = vadd.f32 %v8070_v0, %v6692_v27  ;;  %v12042_v29 = vpop.f32.mrf.mxu0 }
 0x410   : > { %v8072_v19 = vpop.f32.mrf.mxu1 }
 0x411   : > { %v8073_v14 = vadd.f32 %v8072_v19, %v8071_v51  ;;  %v12044_v25 = vpop.f32.mrf.mxu0 }
 0x412   : > { %v8074_v33 = vpop.f32.mrf.mxu1 }
 0x413   : > { %v12046_v47 = vadd.f32 %v8073_v14, %v6695_v30  ;;  %v12048_v8 = vpop.f32.mrf.mxu0 }
 0x414   : > { %v8075_v45 = vpop.f32.mrf.mxu1 }
 0x415   : > { %v8076_v16 = vadd.f32 %v8075_v45, %v8074_v33  ;;  %v12050_v31 = vpop.f32.mrf.mxu0 }
 0x416   : > { %v8077_v22 = vpop.f32.mrf.mxu1 }
 0x417   : > { %v12052_v9 = vadd.f32 %v8076_v16, %v6700_v24  ;;  %v12054_v17 = vpop.f32.mrf.mxu0 }
 0x418   : > { %v8078_v15 = vpop.f32.mrf.mxu1 }
 0x419   : > { %v8079_v60 = vadd.f32 %v8078_v15, %v8077_v22  ;;  %v12056_v27 = vpop.f32.mrf.mxu0 }
 0x41a   : > { %v8160_v10 = vpop.f32.mrf.mxu1 }
 0x41b   : > { %v12058_v36 = vadd.f32 %v8079_v60, %v6703_v53  ;;  %v12060_v13 = vpop.f32.mrf.mxu0 }
 0x41c   : > { %v8161_v37 = vpop.f32.mrf.mxu1 }
 0x41d   : > { %12647 = vst [vmem:[#allocation66_spill] sm:$0xff] %v12058_v36  ;;  %v12062_v20 = vpop.f32.mrf.mxu0  ;;  %v8162_v36 = vadd.f32 %v8161_v37, %v8160_v10  ;;  %v8104_v10 = vadd.f32 %v12042_v29, %v12038_v38 }
 0x41e   : > { %v8163_v35 = vpop.f32.mrf.mxu1 }
 0x41f   : > { %v12064_v7 = vpop.f32.mrf.mxu0 }
 0x420   : > { %v8164_v62 = vpop.f32.mrf.mxu1 }
 0x421   : > { %v12066_v49 = vpop.f32.mrf.mxu0 }
 0x422   : > { %v8166_v30 = vpop.f32.mrf.mxu1 }
 0x423   : > { %v12068_v48 = vpop.f32.mrf.mxu0 }
 0x424   : > { %v8167_v34 = vpop.f32.mrf.mxu1 }
 0x425   : > { %v12070_v57 = vpop.f32.mrf.mxu0 }
 0x426   : > { %v8169_v6 = vpop.f32.mrf.mxu1 }
 0x427   : > { %v12072_v11 = vpop.f32.mrf.mxu0 }
 0x428   : > { %v8170_v42 = vpop.f32.mrf.mxu1 }
 0x429   : > { %v12076_v44 = vpop.f32.mrf.mxu0  ;;  %v8171_v29 = vadd.f32 %v8170_v42, %v8169_v6  ;;  %v8113_v6 = vadd.f32 %v12060_v13, %v12056_v27  ;;  %v8116_v27 = vadd.f32 %v12064_v7, %v12062_v20 }
 0x42a   : > { %v12074_v24 = vpop.f32.mrf.mxu1  ;;  %12648 = vst [vmem:[#allocation69_spill] sm:$0xff] %v12076_v44 }
 0x42b   : > { %v12080_v18 = vpop.f32.mrf.mxu0  ;;  %v6862_v7 = vadd.f32 %v8116_v27, %v12010_v28 }
 0x42c   : > { %v12078_v46 = vpop.f32.mrf.mxu1  ;;  %12649 = vst [vmem:[#allocation63_spill] sm:$0xff] %v12080_v18 }
 0x42d   : > { %v12084_v21 = vpop.f32.mrf.mxu0 }
 0x42e   : > { %v12082_v4 = vpop.f32.mrf.mxu1  ;;  %12650 = vst [vmem:[#allocation65_spill] sm:$0xff] %v12084_v21 }
 0x42f   : > { %v12088_v53 = vpop.f32.mrf.mxu0 }
 0x430   : > { %v12086_v63 = vpop.f32.mrf.mxu1  ;;  %12651 = vst [vmem:[#allocation68_spill] sm:$0xff] %v12088_v53  ;;  %v8098_v53 = vadd.f32 %v12030_v54, %v12026_v26 }
 0x431   : > { %v12092_v12 = vpop.f32.mrf.mxu0 }
 0x432   : > { %v12090_v5 = vpop.f32.mrf.mxu1  ;;  %12652 = vst [vmem:[#allocation71_spill] sm:$0xff] %v12092_v12  ;;  %v6838_v44 = vadd.f32 %v8098_v53, %v11986_v59 }
 0x433   : > { %v12096_v61 = vpop.f32.mrf.mxu0 }
 0x434   : > { %v12094_v52 = vpop.f32.mrf.mxu1  ;;  %12653 = vst [vmem:[#allocation83_spill] sm:$0xff] %v12096_v61 }
 0x435   : > { %v12100_v51 = vpop.f32.mrf.mxu0 }
 0x436   : > { %v12098_v0 = vpop.f32.mrf.mxu1 }
 0x437   : > { %v8133_v14 = vpop.f32.mrf.mxu0 }
 0x438   : > { %v12102_v19 = vpop.f32.mrf.mxu1 }
 0x439   : > { %v12106_v45 = vpop.f32.mrf.mxu0 }
 0x43a   : > { %v12104_v33 = vpop.f32.mrf.mxu1 }
 0x43b   : > { %12654 = vst [vmem:[#allocation70_spill] sm:$0xff] %v12104_v33  ;;  %v12110_v22 = vpop.f32.mrf.mxu0  ;;  %v8165_v33 = vadd.f32 %v8164_v62, %v8163_v35 }
 0x43c   : > { %v12108_v16 = vpop.f32.mrf.mxu1 }
 0x43d   : > { %12655 = vst [vmem:[#allocation73_spill] sm:$0xff] %v12108_v16  ;;  %v12114_v60 = vpop.f32.mrf.mxu0  ;;  %v6935_v16 = vadd.f32 %v8162_v36, %v6838_v44  ;;  %v6846_v36 = vadd.f32 %v8104_v10, %v11994_v1 }
 0x43e   : > { %v12112_v15 = vpop.f32.mrf.mxu1 }
 0x43f   : > { %12656 = vst [vmem:[#allocation84_spill] sm:$0xff] %v12112_v15  ;;  %v12118_v61 = vpop.f32.mrf.mxu0 }
 0x440   : > { %v12116_v2 = vpop.f32.mrf.mxu1 }
 0x441   : > { %12657 = vst [vmem:[#allocation72_spill] sm:$0xff] %v12116_v2  ;;  %v12122_v40 = vpop.f32.mrf.mxu0  ;;  %v8101_v2 = vadd.f32 %v12036_v43, %v12032_v58 }
 0x442   : > { %v12120_v12 = vpop.f32.mrf.mxu1  ;;  %12659 = vst [vmem:[#allocation74_spill] sm:$0xff] %v12122_v40  ;;  %v8168_v40 = vadd.f32 %v8167_v34, %v8166_v30  ;;  %v8110_v34 = vadd.f32 %v12054_v17, %v12050_v31  ;;  %v8177_v17 = vadd.f32 %v12086_v63, %v12082_v4 }
 0x443   : > { %12658 = vst [vmem:[#allocation75_spill] sm:$0xff] %v12120_v12  ;;  %v12128_v32 = vpop.f32.mrf.mxu0 }
 0x444   : > { %v12126_v21 = vpop.f32.mrf.mxu1  ;;  %12661 = vst [vmem:[#allocation76_spill] sm:$0xff] %v12128_v32  ;;  %v6841_v32 = vadd.f32 %v8101_v2, %v11990_v41  ;;  %v6943_v38 = vadd.f32 %v8168_v40, %v6846_v36 }
 0x445   : > { %12660 = vst [vmem:[#allocation77_spill] sm:$0xff] %v12126_v21  ;;  %v8224_v15 = vpop.f32.mrf.mxu0 }
 0x446   : > { %v12130_v18 = vpop.f32.mrf.mxu1 }
 0x447   : > { %12662 = vst [vmem:[#allocation79_spill] sm:$0xff] %v12130_v18  ;;  %v8225_v3 = vpop.f32.mrf.mxu0  ;;  %v6938_v18 = vadd.f32 %v8165_v33, %v6841_v32 }
 0x448   : > { %v12135_v12 = vpop.f32.mrf.mxu1  ;;  %v8226_v26 = vadd.f32 %v8225_v3, %v8224_v15  ;;  %v8107_v3 = vadd.f32 %v12048_v8, %v12044_v25  ;;  %v8174_v8 = vadd.f32 %v12078_v46, %v12074_v24  ;;  %v6857_v46 = vadd.f32 %v8113_v6, %v12006_v56 }
 0x449   : > { %12663 = vst [vmem:[#allocation85_spill] sm:$0xff] %v12135_v12  ;;  %v8227_v21 = vpop.f32.mrf.mxu0 }
 0x44a   : > { %v8196_v54 = vpop.f32.mrf.mxu1  ;;  %v7032_v37 = vadd.f32 %v8226_v26, %v6935_v16  ;;  %v6849_v30 = vadd.f32 %v8107_v3, %v11998_v55  ;;  %v6854_v55 = vadd.f32 %v8110_v34, %v12002_v39  ;;  %v6954_v63 = vadd.f32 %v8177_v17, %v6857_v46 }
 0x44b   : > { %v8228_v53 = vpop.f32.mrf.mxu0 }
 0x44c   : > { %v8197_v59 = vpop.f32.mrf.mxu1  ;;  %7096 = vst [vmem:[%s11788_s26 + $0x10] sm:$0xff] %v7032_v37  ;;  %v8229_v58 = vadd.f32 %v8228_v53, %v8227_v21  ;;  %v6946_v25 = vadd.f32 %v8171_v29, %v6849_v30  ;;  %v6951_v26 = vadd.f32 %v8174_v8, %v6854_v55 }
 0x44d   : > { %v8230_v12 = vpop.f32.mrf.mxu0  ;;  %v8198_v10 = vadd.f32 %v8197_v59, %v8196_v54  ;;  %v8180_v54 = vadd.f32 %v12094_v52, %v12090_v5  ;;  %v8140_v5 = vadd.f32 %v12118_v61, %v12114_v60  ;;  %v8122_v61 = vadd.f32 %v12072_v11, %v12070_v57 }
 0x44e   : > { %v8199_v43 = vpop.f32.mrf.mxu1  ;;  %v7035_v35 = vadd.f32 %v8229_v58, %v6938_v18 }
 0x44f   : > { %v8231_v2 = vpop.f32.mrf.mxu0 }
 0x450   : > { %v8200_v41 = vpop.f32.mrf.mxu1  ;;  %7099 = vst [vmem:[%s11788_s26 + $0x28] sm:$0xff] %v7035_v35  ;;  %v8232_v62 = vadd.f32 %v8231_v2, %v8230_v12  ;;  %v8134_v12 = vadd.f32 %v8133_v14, %v12100_v51  ;;  %v8137_v14 = vadd.f32 %v12110_v22, %v12106_v45  ;;  %v8183_v35 = vadd.f32 %v12102_v19, %v12098_v0  ;;  %v12664_v0 = vld [vmem:[#allocation74_spill] sm:$0xff]  ;;  %v12665_v19 = vld [vmem:[#allocation76_spill] sm:$0xff] }
 0x451   : > { %v8233_v32 = vpop.f32.mrf.mxu0  ;;  %v8201_v58 = vadd.f32 %v8200_v41, %v8199_v43  ;;  %v6959_v43 = vadd.f32 %v8180_v54, %v6862_v7  ;;  %v12674_v54 = vld [vmem:[#allocation67_spill] sm:$0xff] }
 0x452   : > { %v8202_v44 = vpop.f32.mrf.mxu1  ;;  %v7040_v21 = vadd.f32 %v8232_v62, %v6943_v38  ;;  %v6886_v51 = vadd.f32 %v8134_v12, %v12040_v23  ;;  %v8119_v23 = vadd.f32 %v12068_v48, %v12066_v49  ;;  %v6889_v36 = vadd.f32 %v8137_v14, %v12046_v47  ;;  %v12669_v12 = vld [vmem:[#allocation69_spill] sm:$0xff] }
 0x453   : > { %v8234_v33 = vpop.f32.mrf.mxu0  ;;  %v6894_v62 = vadd.f32 %v8140_v5, %v12052_v9  ;;  %v12668_v9 = vld [vmem:[#allocation49_spill] sm:$0xff] }
 0x454   : > { %v8203_v1 = vpop.f32.mrf.mxu1  ;;  %7102 = vst [vmem:[%s11788_s26 + $0x40] sm:$0xff] %v7040_v21  ;;  %v8235_v40 = vadd.f32 %v8234_v33, %v8233_v32  ;;  %v6983_v53 = vadd.f32 %v8198_v10, %v6886_v51  ;;  %v6986_v38 = vadd.f32 %v8201_v58, %v6889_v36  ;;  %v6865_v47 = vadd.f32 %v8119_v23, %v12014_v50  ;;  %v12666_v21 = vld [vmem:[#allocation70_spill] sm:$0xff] }
 0x455   : > { %v8236_v18 = vpop.f32.mrf.mxu0  ;;  %v8204_v28 = vadd.f32 %v8203_v1, %v8202_v44  ;;  %v8143_v32 = vadd.f32 %v12665_v19, %v12664_v0  ;;  %v12667_v1 = vld [vmem:[#allocation73_spill] sm:$0xff]  ;;  %v6870_v6 = vadd.f32 %v8122_v61, %v12668_v9 }
 0x456   : > { %v8205_v42 = vpop.f32.mrf.mxu1  ;;  %v7043_v31 = vadd.f32 %v8235_v40, %v6946_v25  ;;  %v6962_v34 = vadd.f32 %v8183_v35, %v6865_v47  ;;  %v8186_v33 = vadd.f32 %v12667_v1, %v12666_v21  ;;  %v12680_v35 = vld [vmem:[#allocation71_spill] sm:$0xff]  ;;  %v12683_v47 = vld [vmem:[#allocation85_spill] sm:$0xff] }
 0x457   : > { %v8237_v15 = vpop.f32.mrf.mxu0  ;;  %v6991_v40 = vadd.f32 %v8204_v28, %v6894_v62  ;;  %v12684_v62 = vld [vmem:[#allocation64_spill] sm:$0xff] }
 0x458   : > { %v8206_v16 = vpop.f32.mrf.mxu1  ;;  %7105 = vst [vmem:[%s11788_s26 + $0x58] sm:$0xff] %v7043_v31  ;;  %v8238_v24 = vadd.f32 %v8237_v15, %v8236_v18  ;;  %v12670_v31 = vld [vmem:[#allocation63_spill] sm:$0xff]  ;;  %v12671_v15 = vld [vmem:[#allocation66_spill] sm:$0xff]  ;;  %v6967_v46 = vadd.f32 %v8186_v33, %v6870_v6 }
 0x459   : > { %v8239_v39 = vpop.f32.mrf.mxu0  ;;  %v8207_v50 = vadd.f32 %v8206_v16, %v8205_v42  ;;  %v8125_v17 = vadd.f32 %v12670_v31, %v12669_v12  ;;  %v12672_v16 = vld [vmem:[#allocation84_spill] sm:$0xff] }
 0x45a   : > { %v8260_v13 = vpop.f32.mrf.mxu1  ;;  %v7048_v4 = vadd.f32 %v8238_v24, %v6951_v26  ;;  %v6897_v26 = vadd.f32 %v8143_v32, %v12671_v15 }
 0x45b   : > { %v8240_v59 = vpop.f32.mrf.mxu0 }
 0x45c   : > { %v8261_v37 = vpop.f32.mrf.mxu1  ;;  %7108 = vst [vmem:[%s11788_s26 + $0x70] sm:$0xff] %v7048_v4  ;;  %v8241_v20 = vadd.f32 %v8240_v59, %v8239_v39  ;;  %v6994_v51 = vadd.f32 %v8207_v50, %v6897_v26  ;;  %v12675_v59 = vld [vmem:[#allocation65_spill] sm:$0xff] }
 0x45d   : > { %v8262_v56 = vadd.f32 %v8261_v37, %v8260_v13  ;;  %v8242_v22 = vpop.f32.mrf.mxu0  ;;  %v12673_v13 = vld [vmem:[#allocation72_spill] sm:$0xff]  ;;  %v6873_v37 = vadd.f32 %v8125_v17, %v12674_v54 }
 0x45e   : > { %v8263_v45 = vpop.f32.mrf.mxu1  ;;  %v7051_v3 = vadd.f32 %v8241_v20, %v6954_v63  ;;  %v8189_v39 = vadd.f32 %v12673_v13, %v12672_v16 }
 0x45f   : > { %v7080_v52 = vadd.f32 %v8262_v56, %v6983_v53  ;;  %v8243_v2 = vpop.f32.mrf.mxu0  ;;  %v12676_v53 = vld [vmem:[#allocation68_spill] sm:$0xff] }
 0x460   : > { %v8264_v41 = vpop.f32.mrf.mxu1  ;;  %7111 = vst [vmem:[%s11788_s26 + $0x88] sm:$0xff] %v7051_v3  ;;  %v8244_v48 = vadd.f32 %v8243_v2, %v8242_v22  ;;  %v8128_v58 = vadd.f32 %v12676_v53, %v12675_v59  ;;  %v6970_v23 = vadd.f32 %v8189_v39, %v6873_v37  ;;  %v12678_v22 = vld [vmem:[#allocation77_spill] sm:$0xff] }
 0x461   : > { %7132 = vst [vmem:[%s11788_s26 + $0x130] sm:$0xff] %v7080_v52  ;;  %v8265_v49 = vadd.f32 %v8264_v41, %v8263_v45  ;;  %v8245_v29 = vpop.f32.mrf.mxu0  ;;  %v12677_v45 = vld [vmem:[#allocation75_spill] sm:$0xff]  ;;  %v12679_v3 = vld [vmem:[#allocation61_spill] sm:$0xff] }
 0x462   : > { %v8266_v60 = vpop.f32.mrf.mxu1  ;;  %v7056_v44 = vadd.f32 %v8244_v48, %v6959_v43  ;;  %v8192_v36 = vadd.f32 %v12678_v22, %v12677_v45  ;;  %v6878_v43 = vadd.f32 %v8128_v58, %v12679_v3  ;;  %v12681_v41 = vld [vmem:[#allocation83_spill] sm:$0xff] }
 0x463   : > { %v7083_v30 = vadd.f32 %v8265_v49, %v6986_v38  ;;  %v8246_v8 = vpop.f32.mrf.mxu0  ;;  %v8131_v2 = vadd.f32 %v12681_v41, %v12680_v35  ;;  %v12682_v48 = vld [vmem:[#allocation79_spill] sm:$0xff] }
 0x464   : > { %v8267_v25 = vpop.f32.mrf.mxu1  ;;  %7114 = vst [vmem:[%s11788_s26 + $0xa0] sm:$0xff] %v7056_v44  ;;  %v8247_v11 = vadd.f32 %v8246_v8, %v8245_v29  ;;  %v6975_v49 = vadd.f32 %v8192_v36, %v6878_v43  ;;  %v8195_v61 = vadd.f32 %v12683_v47, %v12682_v48 }
 0x465   : > { %7135 = vst [vmem:[%s11788_s26 + $0x148] sm:$0xff] %v7083_v30  ;;  %v8268_v57 = vadd.f32 %v8267_v25, %v8266_v60  ;;  %v8248_v55 = vpop.f32.mrf.mxu0  ;;  %v6881_v0 = vadd.f32 %v8131_v2, %v12684_v62 }
 0x466   : > { %v8269_v18 = vpop.f32.mrf.mxu1  ;;  %v7059_v24 = vadd.f32 %v8247_v11, %v6962_v34 }
 0x467   : > { %v7088_v10 = vadd.f32 %v8268_v57, %v6991_v40  ;;  %v8249_v42 = vpop.f32.mrf.mxu0  ;;  %v6978_v30 = vadd.f32 %v8195_v61, %v6881_v0 }
 0x468   : > { %v8270_v27 = vpop.f32.mrf.mxu1  ;;  %7117 = vst [vmem:[%s11788_s26 + $0xb8] sm:$0xff] %v7059_v24  ;;  %v8250_v4 = vadd.f32 %v8249_v42, %v8248_v55 }
 0x469   : > { %7138 = vst [vmem:[%s11788_s26 + $0x160] sm:$0xff] %v7088_v10  ;;  %v8271_v14 = vadd.f32 %v8270_v27, %v8269_v18  ;;  %v8251_v63 = vpop.f32.mrf.mxu0 }
 0x46a   : > { %v7064_v20 = vadd.f32 %v8250_v4, %v6967_v46 }
 0x46b   : > { %v7091_v56 = vadd.f32 %v8271_v14, %v6994_v51  ;;  %v8252_v7 = vpop.f32.mrf.mxu0 }
 0x46c   : > { %7120 = vst [vmem:[%s11788_s26 + $0xd0] sm:$0xff] %v7064_v20  ;;  %v8253_v5 = vadd.f32 %v8252_v7, %v8251_v63 }
 0x46d   : > { %7141 = vst [vmem:[%s11788_s26 + $0x178] sm:$0xff] %v7091_v56  ;;  %v8254_v52 = vpop.f32.mrf.mxu0 }
 0x46e   : > { %v7067_v38 = vadd.f32 %v8253_v5, %v6970_v23 }
 0x46f   : > { %v8255_v28 = vpop.f32.mrf.mxu0 }
 0x470   : > { %7123 = vst [vmem:[%s11788_s26 + $0xe8] sm:$0xff] %v7067_v38  ;;  %v8256_v60 = vadd.f32 %v8255_v28, %v8254_v52 }
 0x471   : > { %v8257_v29 = vpop.f32.mrf.mxu0 }
 0x472   : > { %v7072_v19 = vadd.f32 %v8256_v60, %v6975_v49 }
 0x473   : > { %v8258_v32 = vpop.f32.mrf.mxu0 }
 0x474   : > { %7126 = vst [vmem:[%s11788_s26 + $0x100] sm:$0xff] %v7072_v19  ;;  %v8259_v44 = vadd.f32 %v8258_v32, %v8257_v29 }
 0x476   : > { %v7075_v34 = vadd.f32 %v8259_v44, %v6978_v30 }
 0x478   : > { %7129 = vst [vmem:[%s11788_s26 + $0x118] sm:$0xff] %v7075_v34 }
 0x479   : > { %9430 = shalt.err (!%p9427_p1)
}
 0x47a   : > { %s9431_s13 = scalar_lea.hbm %s12215_s11, 6144  ;;  %s9435_s7 = scalar_lea.hbm %s12266_s5, 12288 }
 0x47b   : > { %p9432_p10 = scmp.ne.s32.totalorder %s12215_s11, %s9431_s13  ;;  %p9436_p11 = scmp.lt.s32.totalorder %s12215_s11, %s12266_s5 }
 0x47c   : > { %p9437_p2 = scmp.lt.s32.totalorder %s9435_s7, %s9431_s13 }
 0x47d   : > { %p9433_p8 = pnand %p9432_p10, %p12685_p12 }
 0x47e   : > { %p9438_p3 = por %p9437_p2, %p9436_p11 }
 0x47f   : > { %p9434_p13 = pneg %p9433_p8 }
 0x481   : > { %p9439_p4 = pnand %p9438_p3, %p9434_p13 }
 0x483   : > { %9442 = shalt.err (!%p9439_p4)
}
 0x484   : > { %s9502_s14 = smov 384   ;;  %s9503_s8 = smov 24  }
 0x485   : > { %8311 = dma.vmem_to_hbm [thread:$0]  (%p12685_p12), %s12217_s30, 6144, %s12215_s11, %s7143_s22, %s9502_s14, %s9502_s14, %s9503_s8  }
 0x486 PF: > { %s7172_s10 = sand.u32 1, %s9477_s18   ;;  %p12686_p6 = scmp.ne.s32.totalorder %s12365_s25, 0 }
 0x487   : > { %p12687_p7 = scmp.ge.s32.totalorder %s9489_s21, 2  ;;  %s7173_s23 = scalar_lea.sflag [#allocation4], %s7172_s10 }
 0x489   : > { %p8331_p9 = pnand %p12687_p7, %p12686_p6 }
 0x48b   : > { %p8332_p0 = pneg %p8331_p9 }
 0x48d   : > { %9472 = dma.done.wait (%p8332_p0), %s7173_s23, 6144  }
 0x48e   : > { %9474 = vsyncadd (%p8332_p0), %s7173_s23, 4294961152  ;;  %p20_p5 = scmp.ge.s32.totalorder %s9625_s12, 4   ;;  %s12688_s18 = smov %s9481_s19 }
 0x48f   : > { %s12689_s19 = smov %s9485_s20  ;;  %s12690_s20 = smov %s9634_s16 }
 0x490   : > { %s12691_s21 = smov %s9625_s12  ;;  %22 = sbr.rel (!%p20_p5) target bundleno = 7 (0x7), region = 101 }
 0x495   :  { %7178 = vsyncpa [#allocation3], 1 }
 0x496   :  { %7180 = vsyncpa [#allocation3 + $0x1], 1 }
 0x497   :  { %7181 = vsyncpa [#allocation6], 1 }
 0x498   :  { %7182 = vsyncpa [#allocation9], 1 }
 0x499   :  { %7183 = vsyncpa [#allocation4], 1 }
 0x49a   :  { %7185 = vsyncpa [#allocation4 + $0x1], 1 }

</bundles_post_ra>
